<compile_context>
chip_gen: v6e
topology: v6e:2x2x1
jax: 0.10.0
libtpu: 0.0.40
codegen_flags: <defaults>
</compile_context>

<pallas_src>
import functools

import jax
import jax.numpy as jnp
from jax.experimental import pallas as pl
from jax.experimental.pallas import tpu as pltpu

EPS = 1e-5
LANE = 128

_CP = pltpu.CompilerParams(
    dimension_semantics=("parallel",),
    vmem_limit_bytes=48 << 20,        # safe on v5e/v6e (128 MiB) and v7x (64 MiB)
)


# --------------------------- Pallas kernels ---------------------------------

def _conv3x3_acc(x_ref, w_ref, *, stride, Ho, Wo):
    """Accumulate the 9 tap matmuls of a 3x3 conv.  Returns f32 (Ho*Wo, Cout)."""
    n_planes = stride * stride
    Hq = x_ref.shape[1] // n_planes          # rows per parity plane
    Cp = x_ref.shape[-1]
    acc = None
    for t in range(9):
        di, dj = divmod(t, 3)
        if stride == 1:
            r0, c0 = di, dj
        else:                                 # stride 2: parity-plane layout
            plane = (di % 2) * 2 + (dj % 2)
            r0 = plane * Hq + di // 2
            c0 = dj // 2
        xs = x_ref[0, r0:r0 + Ho, c0:c0 + Wo, :]            # (Ho, Wo, Cp) bf16
        d = jnp.dot(xs.reshape(Ho * Wo, Cp), w_ref[t],
                    preferred_element_type=jnp.float32)      # MXU, f32 accum
        acc = d if acc is None else acc + d
    return acc


def _conv_bn_prelu_kernel(x_ref, w_ref, bias_ref, alpha_ref, o_ref, *, stride):
    # conv3x3 (BN scale pre-folded into w) + bias + PReLU
    _, Ho, Wo, Cout = o_ref.shape
    y = _conv3x3_acc(x_ref, w_ref, stride=stride, Ho=Ho, Wo=Wo)
    y = y + bias_ref[...]
    y = jnp.where(y >= 0.0, y, alpha_ref[...] * y)
    o_ref[...] = y.reshape(1, Ho, Wo, Cout).astype(o_ref.dtype)


def _conv_bn_add_kernel(x_ref, w_ref, bias_ref, res_ref, o_ref, *, stride):
    # conv3x3 (BN scale pre-folded into w) + bias + residual add
    _, Ho, Wo, Cout = o_ref.shape
    y = _conv3x3_acc(x_ref, w_ref, stride=stride, Ho=Ho, Wo=Wo)
    y = y.reshape(1, Ho, Wo, Cout) + bias_ref[...] + res_ref[...]
    o_ref[...] = y.astype(o_ref.dtype)


def _matmul_bias_kernel(x_ref, w_ref, bias_ref, o_ref):
    # 1x1 conv (BN scale pre-folded into w) + bias
    o_ref[...] = jnp.dot(x_ref[...], w_ref[...],
                         preferred_element_type=jnp.float32) + bias_ref[...]


# --------------------------- pallas_call wrappers ----------------------------

def conv3x3_bn_prelu(x_planes, w9, bias, alpha, *, stride, Ho, Wo, out_dtype):
    N, Hq, Wq, Cp = x_planes.shape
    Coutp = w9.shape[-1]
    return pl.pallas_call(
        functools.partial(_conv_bn_prelu_kernel, stride=stride),
        out_shape=jax.ShapeDtypeStruct((N, Ho, Wo, Coutp), out_dtype),
        grid=(N,),
        in_specs=[pl.BlockSpec((1, Hq, Wq, Cp), lambda n: (n, 0, 0, 0)),
                  pl.BlockSpec((9, Cp, Coutp), lambda n: (0, 0, 0)),
                  pl.BlockSpec((1, Coutp), lambda n: (0, 0)),
                  pl.BlockSpec((1, Coutp), lambda n: (0, 0))],
        out_specs=pl.BlockSpec((1, Ho, Wo, Coutp), lambda n: (n, 0, 0, 0)),
        compiler_params=_CP,
    )(x_planes, w9, bias, alpha)


def conv3x3_bn_add(x_planes, w9, bias, res, *, stride, Ho, Wo, out_dtype):
    N, Hq, Wq, Cp = x_planes.shape
    Coutp = w9.shape[-1]
    return pl.pallas_call(
        functools.partial(_conv_bn_add_kernel, stride=stride),
        out_shape=jax.ShapeDtypeStruct((N, Ho, Wo, Coutp), out_dtype),
        grid=(N,),
        in_specs=[pl.BlockSpec((1, Hq, Wq, Cp), lambda n: (n, 0, 0, 0)),
                  pl.BlockSpec((9, Cp, Coutp), lambda n: (0, 0, 0)),
                  pl.BlockSpec((1, Coutp), lambda n: (0, 0)),
                  pl.BlockSpec((1, Ho, Wo, Coutp), lambda n: (n, 0, 0, 0))],
        out_specs=pl.BlockSpec((1, Ho, Wo, Coutp), lambda n: (n, 0, 0, 0)),
        compiler_params=_CP,
    )(x_planes, w9, bias, res)


def _round_up(x, m):
    return (x + m - 1) // m * m


def _choose_tm(m):
    for tm in (1024, 512, 256, 128, 64, 32, 16, 8):
        if m >= tm:
            return tm
    return 8


def matmul_bias(x2d, w, bias):
    """(X @ W) + bias — 1x1 shortcut conv with folded BN scale."""
    M, K = x2d.shape
    Nc = w.shape[1]
    tm = _choose_tm(M)
    Mp = _round_up(M, tm)
    if Mp != M:
        x2d = jnp.pad(x2d, ((0, Mp - M), (0, 0)))
    out = pl.pallas_call(
        _matmul_bias_kernel,
        out_shape=jax.ShapeDtypeStruct((Mp, Nc), jnp.float32),
        grid=(Mp // tm,),
        in_specs=[pl.BlockSpec((tm, K), lambda i: (i, 0)),
                  pl.BlockSpec((K, Nc), lambda i: (0, 0)),
                  pl.BlockSpec((1, Nc), lambda i: (0, 0))],
        out_specs=pl.BlockSpec((tm, Nc), lambda i: (i, 0)),
        compiler_params=_CP,
    )(x2d, w, bias)
    return out[:M]


# --------------------------- plain-JAX glue ----------------------------------

def _fold_bn(bn):
    scale = bn["gamma"] / jnp.sqrt(bn["var"] + EPS)
    bias = bn["beta"] - bn["mean"] * scale
    return scale, bias


def _pad_vec(v, n):
    return jnp.pad(v, (0, n - v.shape[0])).reshape(1, n).astype(jnp.float32)


def _prep_conv_weight(w_oihw, scale, cin_p, cout_p):
    """(O,I,kh,kw) -> (kh*kw, cin_p, cout_p) bf16 with BN scale folded in."""
    O, I, kh, kw = w_oihw.shape
    w = jnp.transpose(w_oihw, (2, 3, 1, 0)) * scale[None, None, None, :]
    w = jnp.pad(w, ((0, 0), (0, 0), (0, cin_p - I), (0, cout_p - O)))
    return w.reshape(kh * kw, cin_p, cout_p).astype(jnp.bfloat16)


def _conv_input_planes(x_nhwc, stride):
    """Zero-pad (pad=1) and, for stride 2, decompose into 4 parity planes
    stacked along H so the kernel only needs stride-1 slices."""
    xp = jnp.pad(x_nhwc, ((0, 0), (1, 1), (1, 1), (0, 0)))
    if stride == 1:
        return xp
    H = x_nhwc.shape[1]
    W = x_nhwc.shape[2]
    Ho = (H - 1) // 2 + 1
    Wo = (W - 1) // 2 + 1
    planes = []
    for p in range(2):
        for q in range(2):
            pq = xp[:, p::2, q::2, :]
            pq = jnp.pad(pq, ((0, 0),
                              (0, Ho + 1 - pq.shape[1]),
                              (0, Wo + 1 - pq.shape[2]),
                              (0, 0)))
            planes.append(pq)
    return jnp.concatenate(planes, axis=1)       # (N, 4*(Ho+1), Wo+1, C)


# --------------------------- BasicBlockIR forward ----------------------------

@functools.partial(jax.jit, static_argnums=(2,))
def basic_block_ir_forward(x_nchw, params, stride):
    assert stride in (1, 2)  # TODO(synk): general strides via stride^2 parity planes
    x = jnp.transpose(x_nchw, (0, 2, 3, 1)).astype(jnp.float32)     # NCHW -> NHWC
    N, H, W, Cin = x.shape
    depth = params["conv1_w"].shape[0]
    cin_p = _round_up(Cin, LANE)
    cout_p = _round_up(depth, LANE)
    Ho = (H - 1) // stride + 1
    Wo = (W - 1) // stride + 1

    # ---- res branch: BN1 -> conv3x3 s1 p1 -> BN2 -> PReLU -> conv3x3 s p1 -> BN3
    s1, b1 = _fold_bn(params["bn1"])
    xb = x * s1 + b1                                   # BN1 on unpadded x (exact)
    xb = jnp.pad(xb, ((0, 0), (0, 0), (0, 0), (0, cin_p - Cin))).astype(jnp.bfloat16)

    s2, b2 = _fold_bn(params["bn2"])
    w1 = _prep_conv_weight(params["conv1_w"], s2, cin_p, cout_p)
    y1 = conv3x3_bn_prelu(_conv_input_planes(xb, 1), w1,
                          _pad_vec(b2, cout_p),
                          _pad_vec(params["prelu_alpha"], cout_p),
                          stride=1, Ho=H, Wo=W, out_dtype=jnp.bfloat16)

    # ---- shortcut branch
    if params["shortcut"] is not None:
        ss, sb = _fold_bn(params["shortcut"]["bn"])
        ws = _prep_conv_weight(params["shortcut"]["conv_w"], ss,
                               cin_p, cout_p).reshape(cin_p, cout_p)
        xs = x[:, ::stride, ::stride, :]
        xs = jnp.pad(xs, ((0, 0), (0, 0), (0, 0),
                          (0, cin_p - Cin))).astype(jnp.bfloat16)
        sc = matmul_bias(xs.reshape(N * Ho * Wo, cin_p), ws, _pad_vec(sb, cout_p))
        shortcut = sc.reshape(N, Ho, Wo, cout_p)
    else:
        shortcut = jnp.pad(x, ((0, 0), (0, 0), (0, 0), (0, cout_p - Cin)))

    # ---- conv2 + BN3 + residual add (fused)
    s3, b3 = _fold_bn(params["bn3"])
    w2 = _prep_conv_weight(params["conv2_w"], s3, cout_p, cout_p)
    out = conv3x3_bn_add(_conv_input_planes(y1, stride), w2,
                         _pad_vec(b3, cout_p), shortcut,
                         stride=stride, Ho=Ho, Wo=Wo, out_dtype=jnp.float32)

    out = out[..., :depth]
    return jnp.transpose(out, (0, 3, 1, 2))                          # NHWC -> NCHW


# --------------------------- deterministic params ----------------------------

def init_params(key, in_channel, depth, stride):
    ks = jax.random.split(key, 8)

    def bn(k, c):
        k1, k2, k3 = jax.random.split(k, 3)
        return dict(
            gamma=1.0 + 0.1 * jax.random.normal(k1, (c,), jnp.float32),
            beta=0.1 * jax.random.normal(k2, (c,), jnp.float32),
            mean=0.1 * jax.random.normal(k3, (c,), jnp.float32),
            var=jnp.ones((c,), jnp.float32),
        )

    params = dict(
        bn1=bn(ks[0], in_channel),
        conv1_w=0.1 * jax.random.normal(ks[1], (depth, in_channel, 3, 3), jnp.float32),
        bn2=bn(ks[2], depth),
        prelu_alpha=jnp.full((depth,), 0.25, jnp.float32),   # PyTorch PReLU default
        conv2_w=0.1 * jax.random.normal(ks[3], (depth, depth, 3, 3), jnp.float32),
        bn3=bn(ks[4], depth),
        shortcut=None,
    )
    if in_channel != depth or stride != 1:
        params["shortcut"] = dict(
            conv_w=0.1 * jax.random.normal(ks[5], (depth, in_channel, 1, 1), jnp.float32),
            bn=bn(ks[6], depth),
        )
    return params


# --------------------------- pure-JAX reference ------------------------------

def _ref_forward(x_nchw, params, stride):
    x = jnp.transpose(x_nchw, (0, 2, 3, 1)).astype(jnp.float32)

    def bn_apply(t, p):
        s = p["gamma"] / jnp.sqrt(p["var"] + EPS)
        return t * s + (p["beta"] - p["mean"] * s)

    def conv(t, w_oihw, st, pad):
        w = jnp.transpose(w_oihw, (2, 3, 1, 0))
        return jax.lax.conv_general_dilated(
            t, w, (st, st), [(pad, pad), (pad, pad)],
            dimension_numbers=("NHWC", "HWIO", "NHWC"))

    r = bn_apply(x, params["bn1"])
    r = conv(r, params["conv1_w"], 1, 1)
    r = bn_apply(r, params["bn2"])
    r = jnp.where(r >= 0, r, params["prelu_alpha"] * r)
    r = conv(r, params["conv2_w"], stride, 1)
    r = bn_apply(r, params["bn3"])

    if params["shortcut"] is not None:
        sc = conv(x, params["shortcut"]["conv_w"], stride, 0)
        sc = bn_apply(sc, params["shortcut"]["bn"])
    else:
        sc = x
    return jnp.transpose(r + sc, (0, 3, 1, 2))


# --------------------------- main --------------------------------------------

if __name__ == "__main__":
    in_channel, depth, stride = 8, 16, 2
    B, H, W = 2, 16, 16

    key = jax.random.PRNGKey(0)
    kx, kp = jax.random.split(key)
    x = jax.random.normal(kx, (B, in_channel, H, W), jnp.float32)
    params = init_params(kp, in_channel, depth, stride)

    out = basic_block_ir_forward(x, params, stride)
    out = jax.block_until_ready(out)
    assert out.shape == (B, depth, H // stride, W // stride), out.shape

    ref = _ref_forward(x, params, stride)
    err = float(jnp.max(jnp.abs(out - ref)))
    # bf16 MXU inputs (f32 accumulation) vs f32 reference -> relaxed tolerance.
    assert jnp.allclose(out, ref, atol=5e-2, rtol=5e-2), err

    print("KERNEL_OK")
</pallas_src>

<mosaic_0001>
module attributes {stable_mosaic.version = 11 : i64} {
  func.func @_conv_bn_prelu_kernel(%arg0: i32, %arg1: memref<1x18x18x128xbf16, #tpu.memory_space<vmem>>, %arg2: memref<9x128x128xbf16, #tpu.memory_space<vmem>>, %arg3: memref<1x128xf32, #tpu.memory_space<vmem>>, %arg4: memref<1x128xf32, #tpu.memory_space<vmem>>, %arg5: memref<1x16x16x128xbf16, #tpu.memory_space<vmem>>) attributes {dimension_semantics = [#tpu.dimension_semantics<parallel>], iteration_bounds = array<i64: 2>, scalar_prefetch = 0 : i64, scratch_operands = 0 : i64, tpu.core_type = #tpu.core_type<tc>, window_params = [{transform_indices = @transform_0, window_bounds = array<i64: 1, 18, 18, 128>}, {pipeline_mode = #tpu.pipeline_mode<synchronous>, transform_indices = @transform_1, window_bounds = array<i64: 9, 128, 128>}, {pipeline_mode = #tpu.pipeline_mode<synchronous>, transform_indices = @transform_2, window_bounds = array<i64: 1, 128>}, {pipeline_mode = #tpu.pipeline_mode<synchronous>, transform_indices = @transform_3, window_bounds = array<i64: 1, 128>}, {transform_indices = @transform_4, window_bounds = array<i64: 1, 16, 16, 128>}]} {
    %c0 = arith.constant 0 : index
    %c0_0 = arith.constant 0 : index
    %c0_1 = arith.constant 0 : index
    %c0_2 = arith.constant 0 : index
    %0 = vector.load %arg1[%c0, %c0_0, %c0_1, %c0_2] : memref<1x18x18x128xbf16, #tpu.memory_space<vmem>>, vector<1x16x16x128xbf16>
    %1 = vector.shape_cast %0 : vector<1x16x16x128xbf16> to vector<16x16x128xbf16>
    %2 = vector.shape_cast %1 : vector<16x16x128xbf16> to vector<256x128xbf16>
    %c0_3 = arith.constant 0 : index
    %c0_4 = arith.constant 0 : index
    %c0_5 = arith.constant 0 : index
    %3 = vector.load %arg2[%c0_3, %c0_4, %c0_5] : memref<9x128x128xbf16, #tpu.memory_space<vmem>>, vector<1x128x128xbf16>
    %4 = vector.shape_cast %3 : vector<1x128x128xbf16> to vector<128x128xbf16>
    %cst = arith.constant dense<0.000000e+00> : vector<256x128xf32>
    %5 = tpu.matmul %2, %4, %cst {dimension_numbers = #tpu.dot_dimension_numbers<[1], [0], [0], [1], [0, 0, 1, 1], [], []>} : vector<256x128xbf16>, vector<128x128xbf16>, vector<256x128xf32> -> vector<256x128xf32>
    %c0_6 = arith.constant 0 : index
    %c0_7 = arith.constant 0 : index
    %c1 = arith.constant 1 : index
    %c0_8 = arith.constant 0 : index
    %6 = vector.load %arg1[%c0_6, %c0_7, %c1, %c0_8] : memref<1x18x18x128xbf16, #tpu.memory_space<vmem>>, vector<1x16x16x128xbf16>
    %7 = vector.shape_cast %6 : vector<1x16x16x128xbf16> to vector<16x16x128xbf16>
    %8 = vector.shape_cast %7 : vector<16x16x128xbf16> to vector<256x128xbf16>
    %c1_9 = arith.constant 1 : index
    %c0_10 = arith.constant 0 : index
    %c0_11 = arith.constant 0 : index
    %9 = vector.load %arg2[%c1_9, %c0_10, %c0_11] : memref<9x128x128xbf16, #tpu.memory_space<vmem>>, vector<1x128x128xbf16>
    %10 = vector.shape_cast %9 : vector<1x128x128xbf16> to vector<128x128xbf16>
    %cst_12 = arith.constant dense<0.000000e+00> : vector<256x128xf32>
    %11 = tpu.matmul %8, %10, %cst_12 {dimension_numbers = #tpu.dot_dimension_numbers<[1], [0], [0], [1], [0, 0, 1, 1], [], []>} : vector<256x128xbf16>, vector<128x128xbf16>, vector<256x128xf32> -> vector<256x128xf32>
    %12 = arith.addf %5, %11 : vector<256x128xf32>
    %c0_13 = arith.constant 0 : index
    %c0_14 = arith.constant 0 : index
    %c2 = arith.constant 2 : index
    %c0_15 = arith.constant 0 : index
    %13 = vector.load %arg1[%c0_13, %c0_14, %c2, %c0_15] : memref<1x18x18x128xbf16, #tpu.memory_space<vmem>>, vector<1x16x16x128xbf16>
    %14 = vector.shape_cast %13 : vector<1x16x16x128xbf16> to vector<16x16x128xbf16>
    %15 = vector.shape_cast %14 : vector<16x16x128xbf16> to vector<256x128xbf16>
    %c2_16 = arith.constant 2 : index
    %c0_17 = arith.constant 0 : index
    %c0_18 = arith.constant 0 : index
    %16 = vector.load %arg2[%c2_16, %c0_17, %c0_18] : memref<9x128x128xbf16, #tpu.memory_space<vmem>>, vector<1x128x128xbf16>
    %17 = vector.shape_cast %16 : vector<1x128x128xbf16> to vector<128x128xbf16>
    %cst_19 = arith.constant dense<0.000000e+00> : vector<256x128xf32>
    %18 = tpu.matmul %15, %17, %cst_19 {dimension_numbers = #tpu.dot_dimension_numbers<[1], [0], [0], [1], [0, 0, 1, 1], [], []>} : vector<256x128xbf16>, vector<128x128xbf16>, vector<256x128xf32> -> vector<256x128xf32>
    %19 = arith.addf %12, %18 : vector<256x128xf32>
    %c0_20 = arith.constant 0 : index
    %c1_21 = arith.constant 1 : index
    %c0_22 = arith.constant 0 : index
    %c0_23 = arith.constant 0 : index
    %20 = vector.load %arg1[%c0_20, %c1_21, %c0_22, %c0_23] : memref<1x18x18x128xbf16, #tpu.memory_space<vmem>>, vector<1x16x16x128xbf16>
    %21 = vector.shape_cast %20 : vector<1x16x16x128xbf16> to vector<16x16x128xbf16>
    %22 = vector.shape_cast %21 : vector<16x16x128xbf16> to vector<256x128xbf16>
    %c3 = arith.constant 3 : index
    %c0_24 = arith.constant 0 : index
    %c0_25 = arith.constant 0 : index
    %23 = vector.load %arg2[%c3, %c0_24, %c0_25] : memref<9x128x128xbf16, #tpu.memory_space<vmem>>, vector<1x128x128xbf16>
    %24 = vector.shape_cast %23 : vector<1x128x128xbf16> to vector<128x128xbf16>
    %cst_26 = arith.constant dense<0.000000e+00> : vector<256x128xf32>
    %25 = tpu.matmul %22, %24, %cst_26 {dimension_numbers = #tpu.dot_dimension_numbers<[1], [0], [0], [1], [0, 0, 1, 1], [], []>} : vector<256x128xbf16>, vector<128x128xbf16>, vector<256x128xf32> -> vector<256x128xf32>
    %26 = arith.addf %19, %25 : vector<256x128xf32>
    %c0_27 = arith.constant 0 : index
    %c1_28 = arith.constant 1 : index
    %c1_29 = arith.constant 1 : index
    %c0_30 = arith.constant 0 : index
    %27 = vector.load %arg1[%c0_27, %c1_28, %c1_29, %c0_30] : memref<1x18x18x128xbf16, #tpu.memory_space<vmem>>, vector<1x16x16x128xbf16>
    %28 = vector.shape_cast %27 : vector<1x16x16x128xbf16> to vector<16x16x128xbf16>
    %29 = vector.shape_cast %28 : vector<16x16x128xbf16> to vector<256x128xbf16>
    %c4 = arith.constant 4 : index
    %c0_31 = arith.constant 0 : index
    %c0_32 = arith.constant 0 : index
    %30 = vector.load %arg2[%c4, %c0_31, %c0_32] : memref<9x128x128xbf16, #tpu.memory_space<vmem>>, vector<1x128x128xbf16>
    %31 = vector.shape_cast %30 : vector<1x128x128xbf16> to vector<128x128xbf16>
    %cst_33 = arith.constant dense<0.000000e+00> : vector<256x128xf32>
    %32 = tpu.matmul %29, %31, %cst_33 {dimension_numbers = #tpu.dot_dimension_numbers<[1], [0], [0], [1], [0, 0, 1, 1], [], []>} : vector<256x128xbf16>, vector<128x128xbf16>, vector<256x128xf32> -> vector<256x128xf32>
    %33 = arith.addf %26, %32 : vector<256x128xf32>
    %c0_34 = arith.constant 0 : index
    %c1_35 = arith.constant 1 : index
    %c2_36 = arith.constant 2 : index
    %c0_37 = arith.constant 0 : index
    %34 = vector.load %arg1[%c0_34, %c1_35, %c2_36, %c0_37] : memref<1x18x18x128xbf16, #tpu.memory_space<vmem>>, vector<1x16x16x128xbf16>
    %35 = vector.shape_cast %34 : vector<1x16x16x128xbf16> to vector<16x16x128xbf16>
    %36 = vector.shape_cast %35 : vector<16x16x128xbf16> to vector<256x128xbf16>
    %c5 = arith.constant 5 : index
    %c0_38 = arith.constant 0 : index
    %c0_39 = arith.constant 0 : index
    %37 = vector.load %arg2[%c5, %c0_38, %c0_39] : memref<9x128x128xbf16, #tpu.memory_space<vmem>>, vector<1x128x128xbf16>
    %38 = vector.shape_cast %37 : vector<1x128x128xbf16> to vector<128x128xbf16>
    %cst_40 = arith.constant dense<0.000000e+00> : vector<256x128xf32>
    %39 = tpu.matmul %36, %38, %cst_40 {dimension_numbers = #tpu.dot_dimension_numbers<[1], [0], [0], [1], [0, 0, 1, 1], [], []>} : vector<256x128xbf16>, vector<128x128xbf16>, vector<256x128xf32> -> vector<256x128xf32>
    %40 = arith.addf %33, %39 : vector<256x128xf32>
    %c0_41 = arith.constant 0 : index
    %c2_42 = arith.constant 2 : index
    %c0_43 = arith.constant 0 : index
    %c0_44 = arith.constant 0 : index
    %41 = vector.load %arg1[%c0_41, %c2_42, %c0_43, %c0_44] : memref<1x18x18x128xbf16, #tpu.memory_space<vmem>>, vector<1x16x16x128xbf16>
    %42 = vector.shape_cast %41 : vector<1x16x16x128xbf16> to vector<16x16x128xbf16>
    %43 = vector.shape_cast %42 : vector<16x16x128xbf16> to vector<256x128xbf16>
    %c6 = arith.constant 6 : index
    %c0_45 = arith.constant 0 : index
    %c0_46 = arith.constant 0 : index
    %44 = vector.load %arg2[%c6, %c0_45, %c0_46] : memref<9x128x128xbf16, #tpu.memory_space<vmem>>, vector<1x128x128xbf16>
    %45 = vector.shape_cast %44 : vector<1x128x128xbf16> to vector<128x128xbf16>
    %cst_47 = arith.constant dense<0.000000e+00> : vector<256x128xf32>
    %46 = tpu.matmul %43, %45, %cst_47 {dimension_numbers = #tpu.dot_dimension_numbers<[1], [0], [0], [1], [0, 0, 1, 1], [], []>} : vector<256x128xbf16>, vector<128x128xbf16>, vector<256x128xf32> -> vector<256x128xf32>
    %47 = arith.addf %40, %46 : vector<256x128xf32>
    %c0_48 = arith.constant 0 : index
    %c2_49 = arith.constant 2 : index
    %c1_50 = arith.constant 1 : index
    %c0_51 = arith.constant 0 : index
    %48 = vector.load %arg1[%c0_48, %c2_49, %c1_50, %c0_51] : memref<1x18x18x128xbf16, #tpu.memory_space<vmem>>, vector<1x16x16x128xbf16>
    %49 = vector.shape_cast %48 : vector<1x16x16x128xbf16> to vector<16x16x128xbf16>
    %50 = vector.shape_cast %49 : vector<16x16x128xbf16> to vector<256x128xbf16>
    %c7 = arith.constant 7 : index
    %c0_52 = arith.constant 0 : index
    %c0_53 = arith.constant 0 : index
    %51 = vector.load %arg2[%c7, %c0_52, %c0_53] : memref<9x128x128xbf16, #tpu.memory_space<vmem>>, vector<1x128x128xbf16>
    %52 = vector.shape_cast %51 : vector<1x128x128xbf16> to vector<128x128xbf16>
    %cst_54 = arith.constant dense<0.000000e+00> : vector<256x128xf32>
    %53 = tpu.matmul %50, %52, %cst_54 {dimension_numbers = #tpu.dot_dimension_numbers<[1], [0], [0], [1], [0, 0, 1, 1], [], []>} : vector<256x128xbf16>, vector<128x128xbf16>, vector<256x128xf32> -> vector<256x128xf32>
    %54 = arith.addf %47, %53 : vector<256x128xf32>
    %c0_55 = arith.constant 0 : index
    %c2_56 = arith.constant 2 : index
    %c2_57 = arith.constant 2 : index
    %c0_58 = arith.constant 0 : index
    %55 = vector.load %arg1[%c0_55, %c2_56, %c2_57, %c0_58] : memref<1x18x18x128xbf16, #tpu.memory_space<vmem>>, vector<1x16x16x128xbf16>
    %56 = vector.shape_cast %55 : vector<1x16x16x128xbf16> to vector<16x16x128xbf16>
    %57 = vector.shape_cast %56 : vector<16x16x128xbf16> to vector<256x128xbf16>
    %c8 = arith.constant 8 : index
    %c0_59 = arith.constant 0 : index
    %c0_60 = arith.constant 0 : index
    %58 = vector.load %arg2[%c8, %c0_59, %c0_60] : memref<9x128x128xbf16, #tpu.memory_space<vmem>>, vector<1x128x128xbf16>
    %59 = vector.shape_cast %58 : vector<1x128x128xbf16> to vector<128x128xbf16>
    %cst_61 = arith.constant dense<0.000000e+00> : vector<256x128xf32>
    %60 = tpu.matmul %57, %59, %cst_61 {dimension_numbers = #tpu.dot_dimension_numbers<[1], [0], [0], [1], [0, 0, 1, 1], [], []>} : vector<256x128xbf16>, vector<128x128xbf16>, vector<256x128xf32> -> vector<256x128xf32>
    %61 = arith.addf %54, %60 : vector<256x128xf32>
    %c0_62 = arith.constant 0 : index
    %c0_63 = arith.constant 0 : index
    %62 = vector.load %arg3[%c0_62, %c0_63] : memref<1x128xf32, #tpu.memory_space<vmem>>, vector<1x128xf32>
    %63 = vector.broadcast %62 : vector<1x128xf32> to vector<256x128xf32>
    %64 = arith.addf %61, %63 : vector<256x128xf32>
    %cst_64 = arith.constant 0.000000e+00 : f32
    %65 = vector.broadcast %cst_64 : f32 to vector<256x128xf32>
    %66 = arith.cmpf oge, %64, %65 : vector<256x128xf32>
    %c0_65 = arith.constant 0 : index
    %c0_66 = arith.constant 0 : index
    %67 = vector.load %arg4[%c0_65, %c0_66] : memref<1x128xf32, #tpu.memory_space<vmem>>, vector<1x128xf32>
    %68 = vector.broadcast %67 : vector<1x128xf32> to vector<256x128xf32>
    %69 = arith.mulf %68, %64 : vector<256x128xf32>
    %70 = arith.select %66, %64, %69 : vector<256x128xi1>, vector<256x128xf32>
    %71 = vector.shape_cast %70 : vector<256x128xf32> to vector<1x16x16x128xf32>
    %72 = arith.truncf %71 : vector<1x16x16x128xf32> to vector<1x16x16x128xbf16>
    %c0_67 = arith.constant 0 : index
    %c0_68 = arith.constant 0 : index
    %c0_69 = arith.constant 0 : index
    %c0_70 = arith.constant 0 : index
    %73 = vector.load %arg5[%c0_67, %c0_68, %c0_69, %c0_70] : memref<1x16x16x128xbf16, #tpu.memory_space<vmem>>, vector<1x16x16x128xbf16>
    tpu.vector_store %arg5[%c0_67, %c0_68, %c0_69, %c0_70], %72 {strides = array<i32>} : memref<1x16x16x128xbf16, #tpu.memory_space<vmem>>, vector<1x16x16x128xbf16>,
    return
  }
  func.func @transform_0(%arg0: i32) -> (i32, i32, i32, i32) {
    %c0_i32 = arith.constant 0 : i32
    %c0_i32_0 = arith.constant 0 : i32
    %c0_i32_1 = arith.constant 0 : i32
    %c0_i32_2 = arith.constant 0 : i32
    return %arg0, %c0_i32, %c0_i32_0, %c0_i32_1 : i32, i32, i32, i32
  }
  func.func @transform_1(%arg0: i32) -> (i32, i32, i32) {
    %c0_i32 = arith.constant 0 : i32
    %c0_i32_0 = arith.constant 0 : i32
    %c0_i32_1 = arith.constant 0 : i32
    %c0_i32_2 = arith.constant 0 : i32
    return %c0_i32, %c0_i32_0, %c0_i32_1 : i32, i32, i32
  }
  func.func @transform_2(%arg0: i32) -> (i32, i32) {
    %c0_i32 = arith.constant 0 : i32
    %c0_i32_0 = arith.constant 0 : i32
    %c0_i32_1 = arith.constant 0 : i32
    return %c0_i32, %c0_i32_0 : i32, i32
  }
  func.func @transform_3(%arg0: i32) -> (i32, i32) {
    %c0_i32 = arith.constant 0 : i32
    %c0_i32_0 = arith.constant 0 : i32
    %c0_i32_1 = arith.constant 0 : i32
    return %c0_i32, %c0_i32_0 : i32, i32
  }
  func.func @transform_4(%arg0: i32) -> (i32, i32, i32, i32) {
    %c0_i32 = arith.constant 0 : i32
    %c0_i32_0 = arith.constant 0 : i32
    %c0_i32_1 = arith.constant 0 : i32
    %c0_i32_2 = arith.constant 0 : i32
    return %arg0, %c0_i32, %c0_i32_0, %c0_i32_1 : i32, i32, i32, i32
  }
}

module attributes {stable_mosaic.version = 11 : i64} {
  func.func @_matmul_bias_kernel(%arg0: i32, %arg1: memref<128x128xbf16, #tpu.memory_space<vmem>>, %arg2: memref<128x128xbf16, #tpu.memory_space<vmem>>, %arg3: memref<1x128xf32, #tpu.memory_space<vmem>>, %arg4: memref<128x128xf32, #tpu.memory_space<vmem>>) attributes {dimension_semantics = [#tpu.dimension_semantics<parallel>], iteration_bounds = array<i64: 1>, scalar_prefetch = 0 : i64, scratch_operands = 0 : i64, tpu.core_type = #tpu.core_type<tc>, window_params = [{transform_indices = @transform_0, window_bounds = array<i64: 128, 128>}, {pipeline_mode = #tpu.pipeline_mode<synchronous>, transform_indices = @transform_1, window_bounds = array<i64: 128, 128>}, {pipeline_mode = #tpu.pipeline_mode<synchronous>, transform_indices = @transform_2, window_bounds = array<i64: 1, 128>}, {transform_indices = @transform_3, window_bounds = array<i64: 128, 128>}]} {
    %c0 = arith.constant 0 : index
    %c0_0 = arith.constant 0 : index
    %0 = vector.load %arg1[%c0, %c0_0] : memref<128x128xbf16, #tpu.memory_space<vmem>>, vector<128x128xbf16>
    %c0_1 = arith.constant 0 : index
    %c0_2 = arith.constant 0 : index
    %1 = vector.load %arg2[%c0_1, %c0_2] : memref<128x128xbf16, #tpu.memory_space<vmem>>, vector<128x128xbf16>
    %cst = arith.constant dense<0.000000e+00> : vector<128x128xf32>
    %2 = tpu.matmul %0, %1, %cst {dimension_numbers = #tpu.dot_dimension_numbers<[1], [0], [0], [1], [0, 0, 1, 1], [], []>} : vector<128x128xbf16>, vector<128x128xbf16>, vector<128x128xf32> -> vector<128x128xf32>
    %c0_3 = arith.constant 0 : index
    %c0_4 = arith.constant 0 : index
    %3 = vector.load %arg3[%c0_3, %c0_4] : memref<1x128xf32, #tpu.memory_space<vmem>>, vector<1x128xf32>
    %4 = vector.broadcast %3 : vector<1x128xf32> to vector<128x128xf32>
    %5 = arith.addf %2, %4 : vector<128x128xf32>
    %c0_5 = arith.constant 0 : index
    %c0_6 = arith.constant 0 : index
    %6 = vector.load %arg4[%c0_5, %c0_6] : memref<128x128xf32, #tpu.memory_space<vmem>>, vector<128x128xf32>
    tpu.vector_store %arg4[%c0_5, %c0_6], %5 {strides = array<i32>} : memref<128x128xf32, #tpu.memory_space<vmem>>, vector<128x128xf32>,
    return
  }
  func.func @transform_0(%arg0: i32) -> (i32, i32) {
    %c0_i32 = arith.constant 0 : i32
    %c0_i32_0 = arith.constant 0 : i32
    return %arg0, %c0_i32 : i32, i32
  }
  func.func @transform_1(%arg0: i32) -> (i32, i32) {
    %c0_i32 = arith.constant 0 : i32
    %c0_i32_0 = arith.constant 0 : i32
    %c0_i32_1 = arith.constant 0 : i32
    return %c0_i32, %c0_i32_0 : i32, i32
  }
  func.func @transform_2(%arg0: i32) -> (i32, i32) {
    %c0_i32 = arith.constant 0 : i32
    %c0_i32_0 = arith.constant 0 : i32
    %c0_i32_1 = arith.constant 0 : i32
    return %c0_i32, %c0_i32_0 : i32, i32
  }
  func.func @transform_3(%arg0: i32) -> (i32, i32) {
    %c0_i32 = arith.constant 0 : i32
    %c0_i32_0 = arith.constant 0 : i32
    return %arg0, %c0_i32 : i32, i32
  }
}

module attributes {stable_mosaic.version = 11 : i64} {
  func.func @_conv_bn_add_kernel(%arg0: i32, %arg1: memref<1x36x9x128xbf16, #tpu.memory_space<vmem>>, %arg2: memref<9x128x128xbf16, #tpu.memory_space<vmem>>, %arg3: memref<1x128xf32, #tpu.memory_space<vmem>>, %arg4: memref<1x8x8x128xf32, #tpu.memory_space<vmem>>, %arg5: memref<1x8x8x128xf32, #tpu.memory_space<vmem>>) attributes {dimension_semantics = [#tpu.dimension_semantics<parallel>], iteration_bounds = array<i64: 2>, scalar_prefetch = 0 : i64, scratch_operands = 0 : i64, tpu.core_type = #tpu.core_type<tc>, window_params = [{transform_indices = @transform_0, window_bounds = array<i64: 1, 36, 9, 128>}, {pipeline_mode = #tpu.pipeline_mode<synchronous>, transform_indices = @transform_1, window_bounds = array<i64: 9, 128, 128>}, {pipeline_mode = #tpu.pipeline_mode<synchronous>, transform_indices = @transform_2, window_bounds = array<i64: 1, 128>}, {transform_indices = @transform_3, window_bounds = array<i64: 1, 8, 8, 128>}, {transform_indices = @transform_4, window_bounds = array<i64: 1, 8, 8, 128>}]} {
    %c0 = arith.constant 0 : index
    %c0_0 = arith.constant 0 : index
    %c0_1 = arith.constant 0 : index
    %c0_2 = arith.constant 0 : index
    %0 = vector.load %arg1[%c0, %c0_0, %c0_1, %c0_2] : memref<1x36x9x128xbf16, #tpu.memory_space<vmem>>, vector<1x8x8x128xbf16>
    %1 = vector.shape_cast %0 : vector<1x8x8x128xbf16> to vector<8x8x128xbf16>
    %2 = vector.shape_cast %1 : vector<8x8x128xbf16> to vector<64x128xbf16>
    %c0_3 = arith.constant 0 : index
    %c0_4 = arith.constant 0 : index
    %c0_5 = arith.constant 0 : index
    %3 = vector.load %arg2[%c0_3, %c0_4, %c0_5] : memref<9x128x128xbf16, #tpu.memory_space<vmem>>, vector<1x128x128xbf16>
    %4 = vector.shape_cast %3 : vector<1x128x128xbf16> to vector<128x128xbf16>
    %cst = arith.constant dense<0.000000e+00> : vector<64x128xf32>
    %5 = tpu.matmul %2, %4, %cst {dimension_numbers = #tpu.dot_dimension_numbers<[1], [0], [0], [1], [0, 0, 1, 1], [], []>} : vector<64x128xbf16>, vector<128x128xbf16>, vector<64x128xf32> -> vector<64x128xf32>
    %c0_6 = arith.constant 0 : index
    %c9 = arith.constant 9 : index
    %c0_7 = arith.constant 0 : index
    %c0_8 = arith.constant 0 : index
    %6 = vector.load %arg1[%c0_6, %c9, %c0_7, %c0_8] : memref<1x36x9x128xbf16, #tpu.memory_space<vmem>>, vector<1x8x8x128xbf16>
    %7 = vector.shape_cast %6 : vector<1x8x8x128xbf16> to vector<8x8x128xbf16>
    %8 = vector.shape_cast %7 : vector<8x8x128xbf16> to vector<64x128xbf16>
    %c1 = arith.constant 1 : index
    %c0_9 = arith.constant 0 : index
    %c0_10 = arith.constant 0 : index
    %9 = vector.load %arg2[%c1, %c0_9, %c0_10] : memref<9x128x128xbf16, #tpu.memory_space<vmem>>, vector<1x128x128xbf16>
    %10 = vector.shape_cast %9 : vector<1x128x128xbf16> to vector<128x128xbf16>
    %cst_11 = arith.constant dense<0.000000e+00> : vector<64x128xf32>
    %11 = tpu.matmul %8, %10, %cst_11 {dimension_numbers = #tpu.dot_dimension_numbers<[1], [0], [0], [1], [0, 0, 1, 1], [], []>} : vector<64x128xbf16>, vector<128x128xbf16>, vector<64x128xf32> -> vector<64x128xf32>
    %12 = arith.addf %5, %11 : vector<64x128xf32>
    %c0_12 = arith.constant 0 : index
    %c0_13 = arith.constant 0 : index
    %c1_14 = arith.constant 1 : index
    %c0_15 = arith.constant 0 : index
    %13 = vector.load %arg1[%c0_12, %c0_13, %c1_14, %c0_15] : memref<1x36x9x128xbf16, #tpu.memory_space<vmem>>, vector<1x8x8x128xbf16>
    %14 = vector.shape_cast %13 : vector<1x8x8x128xbf16> to vector<8x8x128xbf16>
    %15 = vector.shape_cast %14 : vector<8x8x128xbf16> to vector<64x128xbf16>
    %c2 = arith.constant 2 : index
    %c0_16 = arith.constant 0 : index
    %c0_17 = arith.constant 0 : index
    %16 = vector.load %arg2[%c2, %c0_16, %c0_17] : memref<9x128x128xbf16, #tpu.memory_space<vmem>>, vector<1x128x128xbf16>
    %17 = vector.shape_cast %16 : vector<1x128x128xbf16> to vector<128x128xbf16>
    %cst_18 = arith.constant dense<0.000000e+00> : vector<64x128xf32>
    %18 = tpu.matmul %15, %17, %cst_18 {dimension_numbers = #tpu.dot_dimension_numbers<[1], [0], [0], [1], [0, 0, 1, 1], [], []>} : vector<64x128xbf16>, vector<128x128xbf16>, vector<64x128xf32> -> vector<64x128xf32>
    %19 = arith.addf %12, %18 : vector<64x128xf32>
    %c0_19 = arith.constant 0 : index
    %c18 = arith.constant 18 : index
    %c0_20 = arith.constant 0 : index
    %c0_21 = arith.constant 0 : index
    %20 = vector.load %arg1[%c0_19, %c18, %c0_20, %c0_21] : memref<1x36x9x128xbf16, #tpu.memory_space<vmem>>, vector<1x8x8x128xbf16>
    %21 = vector.shape_cast %20 : vector<1x8x8x128xbf16> to vector<8x8x128xbf16>
    %22 = vector.shape_cast %21 : vector<8x8x128xbf16> to vector<64x128xbf16>
    %c3 = arith.constant 3 : index
    %c0_22 = arith.constant 0 : index
    %c0_23 = arith.constant 0 : index
    %23 = vector.load %arg2[%c3, %c0_22, %c0_23] : memref<9x128x128xbf16, #tpu.memory_space<vmem>>, vector<1x128x128xbf16>
    %24 = vector.shape_cast %23 : vector<1x128x128xbf16> to vector<128x128xbf16>
    %cst_24 = arith.constant dense<0.000000e+00> : vector<64x128xf32>
    %25 = tpu.matmul %22, %24, %cst_24 {dimension_numbers = #tpu.dot_dimension_numbers<[1], [0], [0], [1], [0, 0, 1, 1], [], []>} : vector<64x128xbf16>, vector<128x128xbf16>, vector<64x128xf32> -> vector<64x128xf32>
    %26 = arith.addf %19, %25 : vector<64x128xf32>
    %c0_25 = arith.constant 0 : index
    %c27 = arith.constant 27 : index
    %c0_26 = arith.constant 0 : index
    %c0_27 = arith.constant 0 : index
    %27 = vector.load %arg1[%c0_25, %c27, %c0_26, %c0_27] : memref<1x36x9x128xbf16, #tpu.memory_space<vmem>>, vector<1x8x8x128xbf16>
    %28 = vector.shape_cast %27 : vector<1x8x8x128xbf16> to vector<8x8x128xbf16>
    %29 = vector.shape_cast %28 : vector<8x8x128xbf16> to vector<64x128xbf16>
    %c4 = arith.constant 4 : index
    %c0_28 = arith.constant 0 : index
    %c0_29 = arith.constant 0 : index
    %30 = vector.load %arg2[%c4, %c0_28, %c0_29] : memref<9x128x128xbf16, #tpu.memory_space<vmem>>, vector<1x128x128xbf16>
    %31 = vector.shape_cast %30 : vector<1x128x128xbf16> to vector<128x128xbf16>
    %cst_30 = arith.constant dense<0.000000e+00> : vector<64x128xf32>
    %32 = tpu.matmul %29, %31, %cst_30 {dimension_numbers = #tpu.dot_dimension_numbers<[1], [0], [0], [1], [0, 0, 1, 1], [], []>} : vector<64x128xbf16>, vector<128x128xbf16>, vector<64x128xf32> -> vector<64x128xf32>
    %33 = arith.addf %26, %32 : vector<64x128xf32>
    %c0_31 = arith.constant 0 : index
    %c18_32 = arith.constant 18 : index
    %c1_33 = arith.constant 1 : index
    %c0_34 = arith.constant 0 : index
    %34 = vector.load %arg1[%c0_31, %c18_32, %c1_33, %c0_34] : memref<1x36x9x128xbf16, #tpu.memory_space<vmem>>, vector<1x8x8x128xbf16>
    %35 = vector.shape_cast %34 : vector<1x8x8x128xbf16> to vector<8x8x128xbf16>
    %36 = vector.shape_cast %35 : vector<8x8x128xbf16> to vector<64x128xbf16>
    %c5 = arith.constant 5 : index
    %c0_35 = arith.constant 0 : index
    %c0_36 = arith.constant 0 : index
    %37 = vector.load %arg2[%c5, %c0_35, %c0_36] : memref<9x128x128xbf16, #tpu.memory_space<vmem>>, vector<1x128x128xbf16>
    %38 = vector.shape_cast %37 : vector<1x128x128xbf16> to vector<128x128xbf16>
    %cst_37 = arith.constant dense<0.000000e+00> : vector<64x128xf32>
    %39 = tpu.matmul %36, %38, %cst_37 {dimension_numbers = #tpu.dot_dimension_numbers<[1], [0], [0], [1], [0, 0, 1, 1], [], []>} : vector<64x128xbf16>, vector<128x128xbf16>, vector<64x128xf32> -> vector<64x128xf32>
    %40 = arith.addf %33, %39 : vector<64x128xf32>
    %c0_38 = arith.constant 0 : index
    %c1_39 = arith.constant 1 : index
    %c0_40 = arith.constant 0 : index
    %c0_41 = arith.constant 0 : index
    %41 = vector.load %arg1[%c0_38, %c1_39, %c0_40, %c0_41] : memref<1x36x9x128xbf16, #tpu.memory_space<vmem>>, vector<1x8x8x128xbf16>
    %42 = vector.shape_cast %41 : vector<1x8x8x128xbf16> to vector<8x8x128xbf16>
    %43 = vector.shape_cast %42 : vector<8x8x128xbf16> to vector<64x128xbf16>
    %c6 = arith.constant 6 : index
    %c0_42 = arith.constant 0 : index
    %c0_43 = arith.constant 0 : index
    %44 = vector.load %arg2[%c6, %c0_42, %c0_43] : memref<9x128x128xbf16, #tpu.memory_space<vmem>>, vector<1x128x128xbf16>
    %45 = vector.shape_cast %44 : vector<1x128x128xbf16> to vector<128x128xbf16>
    %cst_44 = arith.constant dense<0.000000e+00> : vector<64x128xf32>
    %46 = tpu.matmul %43, %45, %cst_44 {dimension_numbers = #tpu.dot_dimension_numbers<[1], [0], [0], [1], [0, 0, 1, 1], [], []>} : vector<64x128xbf16>, vector<128x128xbf16>, vector<64x128xf32> -> vector<64x128xf32>
    %47 = arith.addf %40, %46 : vector<64x128xf32>
    %c0_45 = arith.constant 0 : index
    %c10 = arith.constant 10 : index
    %c0_46 = arith.constant 0 : index
    %c0_47 = arith.constant 0 : index
    %48 = vector.load %arg1[%c0_45, %c10, %c0_46, %c0_47] : memref<1x36x9x128xbf16, #tpu.memory_space<vmem>>, vector<1x8x8x128xbf16>
    %49 = vector.shape_cast %48 : vector<1x8x8x128xbf16> to vector<8x8x128xbf16>
    %50 = vector.shape_cast %49 : vector<8x8x128xbf16> to vector<64x128xbf16>
    %c7 = arith.constant 7 : index
    %c0_48 = arith.constant 0 : index
    %c0_49 = arith.constant 0 : index
    %51 = vector.load %arg2[%c7, %c0_48, %c0_49] : memref<9x128x128xbf16, #tpu.memory_space<vmem>>, vector<1x128x128xbf16>
    %52 = vector.shape_cast %51 : vector<1x128x128xbf16> to vector<128x128xbf16>
    %cst_50 = arith.constant dense<0.000000e+00> : vector<64x128xf32>
    %53 = tpu.matmul %50, %52, %cst_50 {dimension_numbers = #tpu.dot_dimension_numbers<[1], [0], [0], [1], [0, 0, 1, 1], [], []>} : vector<64x128xbf16>, vector<128x128xbf16>, vector<64x128xf32> -> vector<64x128xf32>
    %54 = arith.addf %47, %53 : vector<64x128xf32>
    %c0_51 = arith.constant 0 : index
    %c1_52 = arith.constant 1 : index
    %c1_53 = arith.constant 1 : index
    %c0_54 = arith.constant 0 : index
    %55 = vector.load %arg1[%c0_51, %c1_52, %c1_53, %c0_54] : memref<1x36x9x128xbf16, #tpu.memory_space<vmem>>, vector<1x8x8x128xbf16>
    %56 = vector.shape_cast %55 : vector<1x8x8x128xbf16> to vector<8x8x128xbf16>
    %57 = vector.shape_cast %56 : vector<8x8x128xbf16> to vector<64x128xbf16>
    %c8 = arith.constant 8 : index
    %c0_55 = arith.constant 0 : index
    %c0_56 = arith.constant 0 : index
    %58 = vector.load %arg2[%c8, %c0_55, %c0_56] : memref<9x128x128xbf16, #tpu.memory_space<vmem>>, vector<1x128x128xbf16>
    %59 = vector.shape_cast %58 : vector<1x128x128xbf16> to vector<128x128xbf16>
    %cst_57 = arith.constant dense<0.000000e+00> : vector<64x128xf32>
    %60 = tpu.matmul %57, %59, %cst_57 {dimension_numbers = #tpu.dot_dimension_numbers<[1], [0], [0], [1], [0, 0, 1, 1], [], []>} : vector<64x128xbf16>, vector<128x128xbf16>, vector<64x128xf32> -> vector<64x128xf32>
    %61 = arith.addf %54, %60 : vector<64x128xf32>
    %62 = vector.shape_cast %61 : vector<64x128xf32> to vector<1x8x8x128xf32>
    %c0_58 = arith.constant 0 : index
    %c0_59 = arith.constant 0 : index
    %63 = vector.load %arg3[%c0_58, %c0_59] : memref<1x128xf32, #tpu.memory_space<vmem>>, vector<1x128xf32>
    %64 = vector.shape_cast %63 : vector<1x128xf32> to vector<1x1x1x128xf32>
    %65 = vector.broadcast %64 : vector<1x1x1x128xf32> to vector<1x8x8x128xf32>
    %66 = arith.addf %62, %65 : vector<1x8x8x128xf32>
    %c0_60 = arith.constant 0 : index
    %c0_61 = arith.constant 0 : index
    %c0_62 = arith.constant 0 : index
    %c0_63 = arith.constant 0 : index
    %67 = vector.load %arg4[%c0_60, %c0_61, %c0_62, %c0_63] : memref<1x8x8x128xf32, #tpu.memory_space<vmem>>, vector<1x8x8x128xf32>
    %68 = arith.addf %66, %67 : vector<1x8x8x128xf32>
    %c0_64 = arith.constant 0 : index
    %c0_65 = arith.constant 0 : index
    %c0_66 = arith.constant 0 : index
    %c0_67 = arith.constant 0 : index
    %69 = vector.load %arg5[%c0_64, %c0_65, %c0_66, %c0_67] : memref<1x8x8x128xf32, #tpu.memory_space<vmem>>, vector<1x8x8x128xf32>
    tpu.vector_store %arg5[%c0_64, %c0_65, %c0_66, %c0_67], %68 {strides = array<i32>} : memref<1x8x8x128xf32, #tpu.memory_space<vmem>>, vector<1x8x8x128xf32>,
    return
  }
  func.func @transform_0(%arg0: i32) -> (i32, i32, i32, i32) {
    %c0_i32 = arith.constant 0 : i32
    %c0_i32_0 = arith.constant 0 : i32
    %c0_i32_1 = arith.constant 0 : i32
    %c0_i32_2 = arith.constant 0 : i32
    return %arg0, %c0_i32, %c0_i32_0, %c0_i32_1 : i32, i32, i32, i32
  }
  func.func @transform_1(%arg0: i32) -> (i32, i32, i32) {
    %c0_i32 = arith.constant 0 : i32
    %c0_i32_0 = arith.constant 0 : i32
    %c0_i32_1 = arith.constant 0 : i32
    %c0_i32_2 = arith.constant 0 : i32
    return %c0_i32, %c0_i32_0, %c0_i32_1 : i32, i32, i32
  }
  func.func @transform_2(%arg0: i32) -> (i32, i32) {
    %c0_i32 = arith.constant 0 : i32
    %c0_i32_0 = arith.constant 0 : i32
    %c0_i32_1 = arith.constant 0 : i32
    return %c0_i32, %c0_i32_0 : i32, i32
  }
  func.func @transform_3(%arg0: i32) -> (i32, i32, i32, i32) {
    %c0_i32 = arith.constant 0 : i32
    %c0_i32_0 = arith.constant 0 : i32
    %c0_i32_1 = arith.constant 0 : i32
    %c0_i32_2 = arith.constant 0 : i32
    return %arg0, %c0_i32, %c0_i32_0, %c0_i32_1 : i32, i32, i32, i32
  }
  func.func @transform_4(%arg0: i32) -> (i32, i32, i32, i32) {
    %c0_i32 = arith.constant 0 : i32
    %c0_i32_0 = arith.constant 0 : i32
    %c0_i32_1 = arith.constant 0 : i32
    %c0_i32_2 = arith.constant 0 : i32
    return %arg0, %c0_i32, %c0_i32_0, %c0_i32_1 : i32, i32, i32, i32
  }
}

</mosaic_0001>

<bundles_post_ra>
// kernel: basic_block_ir_forward.4
= control target key start
LH: loop header
LB: loop body
LE: loop exit
PB: predicated region body
PF: predicated region fallthrough
CT: control target
= control target key end

     0   :  { %s483_s1 = inlined_call_operand.vmem [shape: bf16[128,128], index: 1, kind: input, shape index: {}]   ;;  %s484_s0 = inlined_call_operand.vmem [shape: bf16[128,128], index: 0, kind: input, shape index: {}]   ;;  %s485_s2 = inlined_call_operand.vmem [shape: f32[1,128], index: 2, kind: input, shape index: {}]   ;;  %s486_s3 = inlined_call_operand.vmem [shape: f32[128,128], index: 3, kind: output, shape index: {}]  }
   0x1   :  { %v348_v0 = vld [vmem:[%s483_s1 + $0x38] sm:$0xff]   ;;  %v349_v1 = vld [vmem:[%s483_s1 + $0x30] sm:$0xff]   ;;  %v350_v2 = vld [vmem:[%s483_s1 + $0x28] sm:$0xff]  }
   0x2   :  { %300 = vmatprep.subr.bf16.mxu0 %v348_v0  ;;  %332 = vmatprep.subr.bf16.mxu1 %v348_v0  ;;  %v351_v3 = vld [vmem:[%s483_s1 + $0x20] sm:$0xff]   ;;  %v352_v6 = vld [vmem:[%s483_s1 + $0x18] sm:$0xff]   ;;  %v353_v7 = vld [vmem:[%s483_s1 + $0x10] sm:$0xff]  }
   0x3   :  { %301 = vmatpush3.bf16.msra.mxu0 %v348_v0  ;;  %340 = vmatpush3.bf16.msra.mxu1 %v348_v0  ;;  %v356_v4 = vld [vmem:[%s484_s0] sm:$0xff]   ;;  %v354_v8 = vld [vmem:[%s483_s1 + $0x8] sm:$0xff]   ;;  %v360_v12 = vld [vmem:[%s484_s0 + $0x10] sm:$0xff]  }
   0x4   :  { %302 = vmatprep.subr.bf16.mxu0 %v349_v1  ;;  %333 = vmatprep.subr.bf16.mxu1 %v349_v1  ;;  %v357_v5 = vld [vmem:[%s484_s0 + $0x20] sm:$0xff]   ;;  %v358_v10 = vld [vmem:[%s484_s0 + $0x8] sm:$0xff]   ;;  %v361_v13 = vld [vmem:[%s484_s0 + $0x30] sm:$0xff]  }
   0x5   :  { %316 = vmatprep.mubr.bf16.mxu0 %v356_v4  ;;  %324 = vmatprep.mubr.bf16.mxu1 %v357_v5  ;;  %v355_v9 = vld [vmem:[%s483_s1] sm:$0xff]   ;;  %v359_v11 = vld [vmem:[%s484_s0 + $0x28] sm:$0xff]   ;;  %v362_v14 = vld [vmem:[%s484_s0 + $0x18] sm:$0xff]  }
   0x6   :  { %v363_v15 = vld [vmem:[%s484_s0 + $0x38] sm:$0xff]   ;;  %v267_v16 = vld [vmem:[%s485_s2] ss:$0 sm:$0xff] }
   0x7   :  { %303 = vmatpush3.bf16.msra.mxu0 %v349_v1  ;;  %341 = vmatpush3.bf16.msra.mxu1 %v349_v1 }
   0x8   :  { %304 = vmatprep.subr.bf16.mxu0 %v350_v2  ;;  %334 = vmatprep.subr.bf16.mxu1 %v350_v2 }
   0xb   :  { %305 = vmatpush3.bf16.msra.mxu0 %v350_v2  ;;  %342 = vmatpush3.bf16.msra.mxu1 %v350_v2 }
   0xc   :  { %306 = vmatprep.subr.bf16.mxu0 %v351_v3  ;;  %335 = vmatprep.subr.bf16.mxu1 %v351_v3 }
   0xf   :  { %307 = vmatpush3.bf16.msra.mxu0 %v351_v3  ;;  %343 = vmatpush3.bf16.msra.mxu1 %v351_v3 }
  0x10   :  { %308 = vmatprep.subr.bf16.mxu0 %v352_v6  ;;  %336 = vmatprep.subr.bf16.mxu1 %v352_v6 }
  0x13   :  { %309 = vmatpush3.bf16.msra.mxu0 %v352_v6  ;;  %344 = vmatpush3.bf16.msra.mxu1 %v352_v6 }
  0x14   :  { %310 = vmatprep.subr.bf16.mxu0 %v353_v7  ;;  %337 = vmatprep.subr.bf16.mxu1 %v353_v7 }
  0x17   :  { %311 = vmatpush3.bf16.msra.mxu0 %v353_v7  ;;  %345 = vmatpush3.bf16.msra.mxu1 %v353_v7 }
  0x18   :  { %312 = vmatprep.subr.bf16.mxu0 %v354_v8  ;;  %338 = vmatprep.subr.bf16.mxu1 %v354_v8 }
  0x1b   :  { %313 = vmatpush3.bf16.msra.mxu0 %v354_v8  ;;  %346 = vmatpush3.bf16.msra.mxu1 %v354_v8 }
  0x1c   :  { %314 = vmatprep.subr.bf16.mxu0 %v355_v9  ;;  %339 = vmatprep.subr.bf16.mxu1 %v355_v9 }
  0x1f   :  { %315 = vmatpush3.bf16.msra.mxu0 %v355_v9  ;;  %347 = vmatpush3.bf16.msra.mxu1 %v355_v9 }
  0x22   :  { %317 = vmatmul.mubr.bf16.vlgmr.msra.gmra.mxu0 %v358_v10  ;;  %325 = vmatmul.mubr.bf16.vlgmr.msra.gmra.mxu1 %v359_v11 }
  0x23   :  { %320 = vmatprep.mubr.bf16.mxu0 %v360_v12  ;;  %328 = vmatprep.mubr.bf16.mxu1 %v361_v13 }
  0x2a   :  { %321 = vmatmul.mubr.bf16.gmra.mxu0 %v362_v14  ;;  %329 = vmatmul.mubr.bf16.gmra.mxu1 %v363_v15 }
  0xe2   :  { %v318_v17 = vpop.f32.mrf.mxu0  ;;  %v326_v18 = vpop.f32.mrf.mxu1 }
  0xe3   :  { %v193_v19 = vadd.f32 %v318_v17, %v267_v16  ;;  %v225_v20 = vadd.f32 %v326_v18, %v267_v16 }
  0xe4   :  { %v184_v21 = vpop.f32.mrf.mxu0  ;;  %v216_v22 = vpop.f32.mrf.mxu1 }
  0xe5   :  { %249 = vst [vmem:[%s486_s3 + $0x10] sm:$0xff] %v193_v19  ;;  %257 = vst [vmem:[%s486_s3 + $0x50] sm:$0xff] %v225_v20  ;;  %v185_v23 = vadd.f32 %v267_v16, %v184_v21  ;;  %v217_v24 = vadd.f32 %v267_v16, %v216_v22 }
  0xe6   :  { %v319_v25 = vpop.f32.mrf.mxu0  ;;  %v327_v26 = vpop.f32.mrf.mxu1 }
  0xe7   :  { %247 = vst [vmem:[%s486_s3] sm:$0xff] %v185_v23  ;;  %255 = vst [vmem:[%s486_s3 + $0x40] sm:$0xff] %v217_v24  ;;  %v196_v27 = vadd.f32 %v319_v25, %v267_v16  ;;  %v228_v28 = vadd.f32 %v327_v26, %v267_v16 }
  0xe8   :  { %v187_v29 = vpop.f32.mrf.mxu0  ;;  %v219_v30 = vpop.f32.mrf.mxu1 }
  0xe9   :  { %250 = vst [vmem:[%s486_s3 + $0x18] sm:$0xff] %v196_v27  ;;  %258 = vst [vmem:[%s486_s3 + $0x58] sm:$0xff] %v228_v28  ;;  %v188_v31 = vadd.f32 %v267_v16, %v187_v29  ;;  %v220_v32 = vadd.f32 %v267_v16, %v219_v30 }
  0xea   :  { %v322_v33 = vpop.f32.mrf.mxu0  ;;  %v330_v34 = vpop.f32.mrf.mxu1 }
  0xeb   :  { %248 = vst [vmem:[%s486_s3 + $0x8] sm:$0xff] %v188_v31  ;;  %256 = vst [vmem:[%s486_s3 + $0x48] sm:$0xff] %v220_v32  ;;  %v209_v35 = vadd.f32 %v322_v33, %v267_v16  ;;  %v241_v36 = vadd.f32 %v330_v34, %v267_v16 }
  0xec   :  { %v200_v37 = vpop.f32.mrf.mxu0  ;;  %v232_v38 = vpop.f32.mrf.mxu1 }
  0xed   :  { %253 = vst [vmem:[%s486_s3 + $0x30] sm:$0xff] %v209_v35  ;;  %261 = vst [vmem:[%s486_s3 + $0x70] sm:$0xff] %v241_v36  ;;  %v201_v39 = vadd.f32 %v267_v16, %v200_v37  ;;  %v233_v40 = vadd.f32 %v267_v16, %v232_v38 }
  0xee   :  { %v323_v41 = vpop.f32.mrf.mxu0  ;;  %v331_v42 = vpop.f32.mrf.mxu1 }
  0xef   :  { %251 = vst [vmem:[%s486_s3 + $0x20] sm:$0xff] %v201_v39  ;;  %259 = vst [vmem:[%s486_s3 + $0x60] sm:$0xff] %v233_v40  ;;  %v212_v43 = vadd.f32 %v323_v41, %v267_v16  ;;  %v244_v44 = vadd.f32 %v331_v42, %v267_v16 }
  0xf0   :  { %v203_v45 = vpop.f32.mrf.mxu0  ;;  %v235_v46 = vpop.f32.mrf.mxu1 }
  0xf1   :  { %254 = vst [vmem:[%s486_s3 + $0x38] sm:$0xff] %v212_v43  ;;  %262 = vst [vmem:[%s486_s3 + $0x78] sm:$0xff] %v244_v44  ;;  %v204_v47 = vadd.f32 %v267_v16, %v203_v45  ;;  %v236_v48 = vadd.f32 %v267_v16, %v235_v46 }
  0xf3   :  { %252 = vst [vmem:[%s486_s3 + $0x28] sm:$0xff] %v204_v47  ;;  %260 = vst [vmem:[%s486_s3 + $0x68] sm:$0xff] %v236_v48 }

// kernel: basic_block_ir_forward.5
= control target key start
LH: loop header
LB: loop body
LE: loop exit
PB: predicated region body
PF: predicated region fallthrough
CT: control target
= control target key end

     0   :  { %s2983_s15 = smov 0   ;;  %s3399_s0 = inlined_call_operand.vmem [shape: bf16[2,36,9,128], index: 0, kind: input, shape index: {}]   ;;  %s3400_s1 = inlined_call_operand.vmem [shape: bf16[9,128,128], index: 1, kind: input, shape index: {}]   ;;  %s3401_s2 = inlined_call_operand.vmem [shape: f32[1,128], index: 2, kind: input, shape index: {}]   ;;  %s3402_s3 = inlined_call_operand.vmem [shape: f32[2,8,8,128], index: 3, kind: input, shape index: {}]   ;;  %s3403_s4 = inlined_call_operand.vmem [shape: f32[2,8,8,128], index: 4, kind: output, shape index: {}]  }
   0x1 LB: > { %s2182_s16 = sadd.s32 4294967295, %s2956_s15   ;;  %p2186_p0 = scmp.ge.s32.totalorder %s2956_s15, 1  ;;  %s2956_s15 = sphi %s2983_s15, %s14_s15  }
   0x2   : > { %p172_p1 = scmp.lt.s32.totalorder %s2956_s15, 3 }
   0x4   : > { %p173_p2 = pnand %p2186_p0, %p172_p1 }
   0x6   : > { %176 = sbr.rel (%p173_p2) target bundleno = 379 (0x17b), region = 36 }
   0xb   : > { %v2854_v0 = vld [vmem:[%s3400_s1 + $0x78] sm:$0xff]   ;;  %p203_p3 = scmp.lt.s32.totalorder %s2182_s16, 1  ;;  %v2856_v2 = vld [vmem:[%s3400_s1 + $0x70] sm:$0xff]   ;;  %v2858_v4 = vld [vmem:[%s3400_s1 + $0x68] sm:$0xff]   ;;  %vm559_vm0 = vsmask.f32 3328 }
   0xc   : > { %v2855_v1 = vld [vmem:[%s3400_s1 + $0x38] sm:$0xff]   ;;  %2613 = vmatprep.subr.bf16.mxu0 %v2854_v0  ;;  %v2857_v3 = vld [vmem:[%s3400_s1 + $0x30] sm:$0xff]   ;;  %v2859_v5 = vld [vmem:[%s3400_s1 + $0x28] sm:$0xff]   ;;  %vm560_vm1 = vsmask.f32 7440 }
   0xd   : > { %2637 = vmatprep.subr.bf16.mxu1 %v2855_v1  ;;  %2614 = vmatpush3.bf16.msra.mxu0 %v2854_v0  ;;  %s3417_s16 = smov (!%p203_p3, %s2182_s16), 1  ;;  %v2860_v6 = vld [vmem:[%s3400_s1 + $0x60] sm:$0xff]   ;;  %v2862_v8 = vld [vmem:[%s3400_s1 + $0x58] sm:$0xff]   ;;  %v2864_v10 = vld [vmem:[%s3400_s1 + $0x50] sm:$0xff]  }
   0xe   : > { %2638 = vmatpush3.bf16.msra.mxu1 %v2855_v1  ;;  %2615 = vmatprep.subr.bf16.mxu0 %v2856_v2  ;;  %v2861_v7 = vld [vmem:[%s3400_s1 + $0x20] sm:$0xff]   ;;  %s2845_s7 = smul.u32 288, %s3417_s16  ;;  %v2863_v9 = vld [vmem:[%s3400_s1 + $0x18] sm:$0xff]   ;;  %v2865_v11 = vld [vmem:[%s3400_s1 + $0x10] sm:$0xff]   ;;  %s2503_s25 = sshll.u32 %s3417_s16, 6 }
   0xf   : > { %2639 = vmatprep.subr.bf16.mxu1 %v2857_v3  ;;  %v2866_v14 = vld [vmem:[%s3400_s1 + $0x48] sm:$0xff]   ;;  %v2868_v16 = vld [vmem:[%s3400_s1 + $0x40] sm:$0xff]   ;;  %v2874_v19 = vld [vmem:[%s3400_s1 + $0xb8] sm:$0xff]   ;;  %s3364_s28 = scalar_lea.vmem %s3402_s3, %s2503_s25 }
  0x10   : > { %s3027_s14 = scalar_lea.vmem %s3399_s0, %s2845_s7  ;;  %v2867_v15 = vld [vmem:[%s3400_s1 + $0x8] sm:$0xff]   ;;  %v2869_v17 = vld [vmem:[%s3400_s1] sm:$0xff]   ;;  %v2875_v20 = vld [vmem:[%s3400_s1 + $0xf8] sm:$0xff]   ;;  %s3379_s7 = scalar_lea.vmem %s3403_s4, %s2503_s25 }
  0x11   : > { %2616 = vmatpush3.bf16.msra.mxu0 %v2856_v2  ;;  %v2870_v12 = vld [vmem:[%s3027_s14 + $0x48] ss:$8 sps:$4 sm:$0xff]   ;;  %v2872_v18 = vld [vmem:[%s3027_s14 + $0x58] ss:$8 sps:$4 sm:$0xff]   ;;  %v544_v33 = vld [vmem:[%s3027_s14 + $0x4] sm:$0x1] }
  0x12   : > { %2640 = vmatpush3.bf16.msra.mxu1 %v2857_v3  ;;  %2617 = vmatprep.subr.bf16.mxu0 %v2858_v4  ;;  %v2871_v13 = vld [vmem:[%s3027_s14] ss:$8 sps:$4 sm:$0xff]   ;;  %v2873_v21 = vld [vmem:[%s3027_s14 + $0x10] ss:$8 sps:$4 sm:$0xff]   ;;  %v546_v35 = vld [vmem:[%s3027_s14 + $0xc] sm:$0x1] }
  0x13   : > { %2641 = vmatprep.subr.bf16.mxu1 %v2859_v5  ;;  %2629 = vmatprep.mubr.bf16.mxu0 %v2870_v12  ;;  %v2876_v22 = vld [vmem:[%s3400_s1 + $0xb0] sm:$0xff]   ;;  %v2885_v25 = vld [vmem:[%s3027_s14 + $0x20] ss:$8 sps:$4 sm:$0xff]   ;;  %v2882_v36 = vld [vmem:[%s3400_s1 + $0x98] sm:$0xff]   ;;  %v572_v39 = vshll.u32 %v544_v33, 16  ;;  %v586_v42 = vshll.u32 %v546_v35, 16 }
  0x14   : > { %2653 = vmatprep.mubr.bf16.mxu1 %v2871_v13  ;;  %v2877_v23 = vld [vmem:[%s3400_s1 + $0xf0] sm:$0xff]   ;;  %v2878_v26 = vld [vmem:[%s3400_s1 + $0xa8] sm:$0xff]   ;;  %v2880_v28 = vld [vmem:[%s3400_s1 + $0xa0] sm:$0xff]  }
  0x15   : > { %2618 = vmatpush3.bf16.msra.mxu0 %v2858_v4  ;;  %v2884_v24 = vld [vmem:[%s3027_s14 + $0x68] ss:$8 sps:$4 sm:$0xff]   ;;  %v2886_v29 = vld [vmem:[%s3027_s14 + $0x78] ss:$8 sps:$4 sm:$0xff]   ;;  %v574_v49 = vrot.slane %v572_v39, 5  ;;  %vm3099_vm2 = vmor %vm559_vm0, %vm560_vm1  ;;  %v588_v61 = vrot.slane %v586_v42, 5 }
  0x16   : > { %2642 = vmatpush3.bf16.msra.mxu1 %v2859_v5  ;;  %2619 = vmatprep.subr.bf16.mxu0 %v2860_v6  ;;  %v2879_v27 = vld [vmem:[%s3400_s1 + $0xe8] sm:$0xff]   ;;  %v2881_v30 = vld [vmem:[%s3400_s1 + $0xe0] sm:$0xff]   ;;  %v2887_v31 = vld [vmem:[%s3027_s14 + $0x30] ss:$8 sps:$4 sm:$0xff]  }
  0x17   : > { %2643 = vmatprep.subr.bf16.mxu1 %v2861_v7  ;;  %v543_v32 = vld [vmem:[%s3027_s14] sm:$0xf]  ;;  %v545_v34 = vld [vmem:[%s3027_s14 + $0x8] sm:$0xf]  ;;  %v2894_v43 = vld [vmem:[%s3027_s14 + $0x90] ss:$8 sps:$4 sm:$0xff]  }
  0x18   : > { %v563_v37 = vshrl.u32 %v543_v32, 16  ;;  %v566_v38 = vshll.u32 %v543_v32, 16  ;;  %v577_v40 = vshrl.u32 %v545_v34, 16  ;;  %v580_v41 = vshll.u32 %v545_v34, 16  ;;  %v2883_v44 = vld [vmem:[%s3400_s1 + $0xd8] sm:$0xff]   ;;  %v2888_v58 = vld [vmem:[%s3400_s1 + $0x90] sm:$0xff]  }
  0x19   : > { %2620 = vmatpush3.bf16.msra.mxu0 %v2860_v6  ;;  %v547_v48 = vld [vmem:[%s3027_s14 + $0x10] sm:$0xf]  ;;  %v548_v51 = vld [vmem:[%s3027_s14 + $0x14] sm:$0x1]  ;;  %v549_v52 = vld [vmem:[%s3027_s14 + $0x18] sm:$0xf] }
  0x1a   : > { %2644 = vmatpush3.bf16.msra.mxu1 %v2861_v7  ;;  %2621 = vmatprep.subr.bf16.mxu0 %v2862_v8  ;;  %v565_v45 = vrot.slane %v563_v37, 4  ;;  %v568_v46 = vrot.slane %v566_v38, 5  ;;  %v579_v47 = vrot.slane %v577_v40, 4  ;;  %v582_v50 = vrot.slane %v580_v41, 5  ;;  %v550_v54 = vld [vmem:[%s3027_s14 + $0x1c] sm:$0x1] }
  0x1b   : > { %2645 = vmatprep.subr.bf16.mxu1 %v2863_v9  ;;  %v591_v55 = vshrl.u32 %v547_v48, 16  ;;  %v594_v56 = vshll.u32 %v547_v48, 16  ;;  %v600_v57 = vshll.u32 %v548_v51, 16  ;;  %v605_v62 = vshrl.u32 %v549_v52, 16  ;;  %v2889_v4 = vld [vmem:[%s3400_s1 + $0xd0] sm:$0xff]   ;;  %v2896_v51 = vld [vmem:[%s3400_s1 + $0x138] sm:$0xff]  }
  0x1c   : > { %v569_v53 = vor.u32 %v568_v46, %v565_v45  ;;  %v583_v60 = vor.u32 %v582_v50, %v579_v47  ;;  %v608_v63 = vshll.u32 %v549_v52, 16  ;;  %v614_v3 = vshll.u32 %v550_v54, 16  ;;  %v557_v40 = vld [vmem:[%s3027_s14 + $0x38] sm:$0xf] }
  0x1d   : > { %2622 = vmatpush3.bf16.msra.mxu0 %v2862_v8  ;;  %v593_v1 = vrot.slane %v591_v55, 4  ;;  %v596_v2 = vrot.slane %v594_v56, 5  ;;  %v3106_v6 = vrot.slane %v600_v57, 5  ;;  %v607_v7 = vrot.slane %v605_v62, 4  ;;  %v2897_v55 = vld [vmem:[%s3400_s1 + $0x178] sm:$0xff]  }
  0x1e   : > { %2646 = vmatpush3.bf16.msra.mxu1 %v2863_v9  ;;  %2623 = vmatprep.subr.bf16.mxu0 %v2864_v10  ;;  %v570_v0 = vrot.slane %v569_v53, 4  ;;  %v584_v5 = vrot.slane %v583_v60, 4  ;;  %v610_v8 = vrot.slane %v608_v63, 5  ;;  %v2890_v9 = vld [vmem:[%s3400_s1 + $0x88] sm:$0xff]   ;;  %v664_v50 = vshll.u32 %v557_v40, 16 }
  0x1f   : > { %2647 = vmatprep.subr.bf16.mxu1 %v2865_v11 }
  0x20   : > { %v589_v12 = vsel %vm3099_vm2, %v584_v5, %v588_v61  ;;  %v611_v13 = vor.u32 %v610_v8, %v607_v7  ;;  %v2895_v61 = vld [vmem:[%s3027_s14 + $0xa0] ss:$8 sps:$4 sm:$0xff]   ;;  %v2899_v7 = vld [vmem:[%s3400_s1 + $0x170] sm:$0xff]  }
  0x21   : > { %2624 = vmatpush3.bf16.msra.mxu0 %v2864_v10  ;;  %v575_v10 = vsel %vm3099_vm2, %v570_v0, %v574_v49  ;;  %v661_v49 = vshrl.u32 %v557_v40, 16  ;;  %v2345_v40 = vld [vmem:[%s3027_s14 + $0xa4] sm:$0x1] }
  0x22   : > { %2648 = vmatpush3.bf16.msra.mxu1 %v2865_v11  ;;  %2625 = vmatprep.subr.bf16.mxu0 %v2866_v14  ;;  %v597_v11 = vor.u32 %v596_v2, %v593_v1 }
  0x23   : > { %2649 = vmatprep.subr.bf16.mxu1 %v2867_v15  ;;  %v663_v57 = vrot.slane %v661_v49, 4 }
  0x25   : > { %2626 = vmatpush3.bf16.msra.mxu0 %v2866_v14  ;;  %v2256_v14 = vcombine.low %v575_v10, %v589_v12  ;;  %v2900_v10 = vld [vmem:[%s3400_s1 + $0x128] sm:$0xff]  }
  0x26   : > { %2650 = vmatpush3.bf16.msra.mxu1 %v2867_v15  ;;  %2627 = vmatprep.subr.bf16.mxu0 %v2868_v16  ;;  %v598_v15 = vrot.slane %v597_v11, 4 }
  0x27   : > { %2651 = vmatprep.subr.bf16.mxu1 %v2869_v17 }
  0x29   : > { %2628 = vmatpush3.bf16.msra.mxu0 %v2868_v16  ;;  %v616_v16 = vrot.slane %v614_v3, 5 }
  0x2a   : > { %2652 = vmatpush3.bf16.msra.mxu1 %v2869_v17  ;;  %2661 = vmatprep.subr.bf16.mxu0 %v2874_v19  ;;  %v2891_v17 = vld [vmem:[%s3400_s1 + $0xc8] sm:$0xff]  }
  0x2b   : > { %2685 = vmatprep.subr.bf16.mxu1 %v2875_v20 }
  0x2c   : > { %2630 = vmatmul.mubr.bf16.vlgmr.msra.gmra.mxu0 %v2872_v18  ;;  %v612_v18 = vrot.slane %v611_v13, 4  ;;  %v2901_v13 = vld [vmem:[%s3400_s1 + $0x168] sm:$0xff]  }
  0x2d   : > { %2654 = vmatmul.mubr.bf16.vlgmr.msra.gmra.mxu1 %v2873_v21  ;;  %2662 = vmatpush3.bf16.msra.mxu0 %v2874_v19  ;;  %v551_v19 = vld [vmem:[%s3027_s14 + $0x20] sm:$0xf]  ;;  %v553_v21 = vld [vmem:[%s3027_s14 + $0x28] sm:$0xf] }
  0x2e   : > { %2686 = vmatpush3.bf16.msra.mxu1 %v2875_v20  ;;  %2663 = vmatprep.subr.bf16.mxu0 %v2876_v22  ;;  %v552_v20 = vld [vmem:[%s3027_s14 + $0x24] sm:$0x1]  ;;  %v617_v32 = vsel %vm3099_vm2, %v612_v18, %v616_v16  ;;  %v2906_v18 = vld [vmem:[%s3400_s1 + $0x118] sm:$0xff]  }
  0x2f   : > { %2687 = vmatprep.subr.bf16.mxu1 %v2877_v23  ;;  %2633 = vmatprep.mubr.bf16.mxu0 %v2884_v24  ;;  %v622_v24 = vshll.u32 %v551_v19, 16  ;;  %v2904_v16 = vld [vmem:[%s3400_s1 + $0x120] sm:$0xff]  }
  0x30   : > { %2657 = vmatprep.mubr.bf16.mxu1 %v2885_v25  ;;  %v2892_v25 = vld [vmem:[%s3400_s1 + $0x80] sm:$0xff]  }
  0x31   : > { %2664 = vmatpush3.bf16.msra.mxu0 %v2876_v22  ;;  %v554_v22 = vld [vmem:[%s3027_s14 + $0x2c] sm:$0x1]  ;;  %v624_v34 = vrot.slane %v622_v24, 5 }
  0x32   : > { %2688 = vmatpush3.bf16.msra.mxu1 %v2877_v23  ;;  %2665 = vmatprep.subr.bf16.mxu0 %v2878_v26  ;;  %v619_v23 = vshrl.u32 %v551_v19, 16  ;;  %v642_v35 = vshll.u32 %v554_v22, 16  ;;  %v2914_v19 = vld [vmem:[%s3027_s14 + $0xd8] ss:$8 sps:$4 sm:$0xff]  }
  0x33   : > { %2689 = vmatprep.subr.bf16.mxu1 %v2879_v27  ;;  %v2342_v22 = vld [vmem:[%s3027_s14 + $0x98] sm:$0xf] }
  0x34   : > { %2634 = vmatmul.mubr.bf16.gmra.mxu0 %v2886_v29  ;;  %v636_v29 = vshll.u32 %v553_v21, 16  ;;  %v621_v33 = vrot.slane %v619_v23, 4  ;;  %v2343_v23 = vld [vmem:[%s3027_s14 + $0x9c] sm:$0x1] }
  0x35   : > { %2666 = vmatpush3.bf16.msra.mxu0 %v2878_v26  ;;  %2658 = vmatmul.mubr.bf16.gmra.mxu1 %v2887_v31  ;;  %v603_v26 = vsel %vm3099_vm2, %v598_v15, %v3106_v6  ;;  %v2893_v31 = vld [vmem:[%s3400_s1 + $0xc0] sm:$0xff]   ;;  %v2902_v6 = vld [vmem:[%s3027_s14 + $0xb0] ss:$8 sps:$4 sm:$0xff]  }
  0x36   : > { %2690 = vmatpush3.bf16.msra.mxu1 %v2879_v27  ;;  %2667 = vmatprep.subr.bf16.mxu0 %v2880_v28  ;;  %v628_v27 = vshll.u32 %v552_v20, 16  ;;  %v638_v39 = vrot.slane %v636_v29, 5  ;;  %v625_v42 = vor.u32 %v624_v34, %v621_v33  ;;  %v2257_v60 = vcombine.low %v603_v26, %v617_v32  ;;  %v2903_v15 = vld [vmem:[%s3027_s14 + $0xc0] ss:$8 sps:$4 sm:$0xff]   ;;  %v2340_v20 = vld [vmem:[%s3027_s14 + $0x90] sm:$0xf] }
  0x37   : > { %2691 = vmatprep.subr.bf16.mxu1 %v2881_v30  ;;  %2701 = vmatprep.mubr.bf16.mxu1 %v2894_v43  ;;  %v644_v43 = vrot.slane %v642_v35, 5  ;;  %v1187_v24 = vshrl.u32 %v2340_v20, 16  ;;  %v1210_v29 = vshll.u32 %v2343_v23, 16  ;;  %v2908_v33 = vld [vmem:[%s3400_s1 + $0x110] sm:$0xff]   ;;  %v2352_v23 = vld [vmem:[%s3027_s14 + $0xc0] sm:$0xf] }
  0x38   : > { %2677 = vmatprep.mubr.bf16.mxu0 %v2256_v14  ;;  %v630_v37 = vrot.slane %v628_v27, 5  ;;  %v626_v52 = vrot.slane %v625_v42, 4  ;;  %v1201_v27 = vshrl.u32 %v2342_v22, 16  ;;  %v2347_v42 = vld [vmem:[%s3027_s14 + $0xac] sm:$0x1] }
  0x39   : > { %2668 = vmatpush3.bf16.msra.mxu0 %v2880_v28  ;;  %v633_v28 = vshrl.u32 %v553_v21, 16  ;;  %v2341_v21 = vld [vmem:[%s3027_s14 + $0x94] sm:$0x1] }
  0x3a   : > { %2692 = vmatpush3.bf16.msra.mxu1 %v2881_v30  ;;  %2669 = vmatprep.subr.bf16.mxu0 %v2882_v36  ;;  %v555_v30 = vld [vmem:[%s3027_s14 + $0x30] sm:$0xf]  ;;  %v631_v62 = vsel %vm3099_vm2, %v626_v52, %v630_v37  ;;  %v1196_v26 = vshll.u32 %v2341_v21, 16  ;;  %v1203_v35 = vrot.slane %v1201_v27, 4  ;;  %v1212_v37 = vrot.slane %v1210_v29, 5 }
  0x3b   : > { %2693 = vmatprep.subr.bf16.mxu1 %v2883_v44  ;;  %v635_v38 = vrot.slane %v633_v28, 4  ;;  %v647_v41 = vshrl.u32 %v555_v30, 16  ;;  %v650_v45 = vshll.u32 %v555_v30, 16  ;;  %v1204_v28 = vshll.u32 %v2342_v22, 16  ;;  %v2907_v30 = vld [vmem:[%s3400_s1 + $0x158] sm:$0xff]  }
  0x3c   : > { %v1198_v34 = vrot.slane %v1196_v26, 5  ;;  %v2354_v29 = vld [vmem:[%s3027_s14 + $0xc8] sm:$0xf] }
  0x3d   : > { %2670 = vmatpush3.bf16.msra.mxu0 %v2882_v36  ;;  %v556_v36 = vld [vmem:[%s3027_s14 + $0x34] sm:$0x1]  ;;  %v639_v47 = vor.u32 %v638_v39, %v635_v38  ;;  %v649_v48 = vrot.slane %v647_v41, 4  ;;  %v652_v53 = vrot.slane %v650_v45, 5  ;;  %v2344_v38 = vld [vmem:[%s3027_s14 + $0xa0] sm:$0xf] }
  0x3e   : > { %2694 = vmatpush3.bf16.msra.mxu1 %v2883_v44  ;;  %2671 = vmatprep.subr.bf16.mxu0 %v2888_v58  ;;  %v558_v44 = vld [vmem:[%s3027_s14 + $0x3c] sm:$0x1]  ;;  %v656_v46 = vshll.u32 %v556_v36, 16  ;;  %v1206_v36 = vrot.slane %v1204_v28, 5  ;;  %v2346_v41 = vld [vmem:[%s3027_s14 + $0xa8] sm:$0xf] }
  0x3f   : > { %2695 = vmatprep.subr.bf16.mxu1 %v2889_v4  ;;  %v670_v54 = vshll.u32 %v558_v44, 16  ;;  %v640_v56 = vrot.slane %v639_v47, 4  ;;  %v653_v63 = vor.u32 %v652_v53, %v649_v48  ;;  %v1215_v45 = vshrl.u32 %v2344_v38, 16 }
  0x40   : > { %v658_v1 = vrot.slane %v656_v46, 5  ;;  %v1207_v44 = vor.u32 %v1206_v36, %v1203_v35  ;;  %v1218_v46 = vshll.u32 %v2344_v38, 16  ;;  %v1224_v47 = vshll.u32 %v2345_v40, 16  ;;  %v2920_v35 = vld [vmem:[%s3027_s14 + $0xf8] ss:$8 sps:$4 sm:$0xff]   ;;  %v2918_v40 = vld [vmem:[%s3400_s1 + $0x1b0] sm:$0xff]  }
  0x41   : > { %2672 = vmatpush3.bf16.msra.mxu0 %v2888_v58  ;;  %v666_v58 = vrot.slane %v664_v50, 5  ;;  %v645_v0 = vsel %vm3099_vm2, %v640_v56, %v644_v43  ;;  %v672_v3 = vrot.slane %v670_v54, 5  ;;  %v654_v5 = vrot.slane %v653_v63, 4  ;;  %v2909_v43 = vld [vmem:[%s3400_s1 + $0x150] sm:$0xff]  }
  0x42   : > { %2696 = vmatpush3.bf16.msra.mxu1 %v2889_v4  ;;  %2673 = vmatprep.subr.bf16.mxu0 %v2890_v9  ;;  %v2898_v4 = vld [vmem:[%s3400_s1 + $0x130] sm:$0xff]   ;;  %v2258_v8 = vcombine.low %v631_v62, %v645_v0  ;;  %v1229_v49 = vshrl.u32 %v2346_v41, 16  ;;  %v1232_v50 = vshll.u32 %v2346_v41, 16  ;;  %v1208_v52 = vrot.slane %v1207_v44, 4 }
  0x43   : > { %2697 = vmatprep.subr.bf16.mxu1 %v2891_v17  ;;  %v667_v2 = vor.u32 %v666_v58, %v663_v57  ;;  %v659_v11 = vsel %vm3099_vm2, %v654_v5, %v658_v1  ;;  %v1217_v53 = vrot.slane %v1215_v45, 4  ;;  %v1220_v54 = vrot.slane %v1218_v46, 5  ;;  %v2919_v45 = vld [vmem:[%s3400_s1 + $0x1f0] sm:$0xff]  }
  0x44   : > { %v1231_v57 = vrot.slane %v1229_v49, 4  ;;  %v1234_v58 = vrot.slane %v1232_v50, 5  ;;  %v1226_v0 = vrot.slane %v1224_v47, 5  ;;  %v1285_v38 = vshrl.u32 %v2354_v29, 16 }
  0x45   : > { %2674 = vmatpush3.bf16.msra.mxu0 %v2890_v9  ;;  %v668_v9 = vrot.slane %v667_v2, 4  ;;  %v1221_v62 = vor.u32 %v1220_v54, %v1217_v53 }
  0x46   : > { %2698 = vmatpush3.bf16.msra.mxu1 %v2891_v17  ;;  %2675 = vmatprep.subr.bf16.mxu0 %v2892_v25  ;;  %v2905_v17 = vld [vmem:[%s3400_s1 + $0x160] sm:$0xff]   ;;  %v1235_v1 = vor.u32 %v1234_v58, %v1231_v57  ;;  %v1287_v47 = vrot.slane %v1285_v38, 4  ;;  %v2923_v58 = vld [vmem:[%s3400_s1 + $0x1e8] sm:$0xff]   ;;  %v2939_v38 = vld [vmem:[%s3400_s1 + $0x230] sm:$0xff]  }
  0x47   : > { %2699 = vmatprep.subr.bf16.mxu1 %v2893_v31  ;;  %v673_v12 = vsel %vm3099_vm2, %v668_v9, %v672_v3  ;;  %v1222_v3 = vrot.slane %v1221_v62, 4  ;;  %v2916_v9 = vld [vmem:[%s3400_s1 + $0x1b8] sm:$0xff]   ;;  %v2921_v62 = vld [vmem:[%s3027_s14 + $0x108] ss:$8 sps:$4 sm:$0xff]  }
  0x48   : > { %v2259_v14 = vcombine.low %v659_v11, %v673_v12  ;;  %v1236_v5 = vrot.slane %v1235_v1, 4  ;;  %v2349_v11 = vld [vmem:[%s3027_s14 + $0xb4] sm:$0x1]  ;;  %v2350_v12 = vld [vmem:[%s3027_s14 + $0xb8] sm:$0xf] }
  0x49   : > { %2676 = vmatpush3.bf16.msra.mxu0 %v2892_v25  ;;  %v1190_v25 = vshll.u32 %v2340_v20, 16  ;;  %v1260_v21 = vshll.u32 %v2350_v12, 16 }
  0x4a   : > { %2700 = vmatpush3.bf16.msra.mxu1 %v2893_v31  ;;  %2709 = vmatprep.subr.bf16.mxu0 %v2896_v51  ;;  %v1189_v31 = vrot.slane %v1187_v24, 4  ;;  %v2353_v24 = vld [vmem:[%s3027_s14 + $0xc4] sm:$0x1] }
  0x4b   : > { %2733 = vmatprep.subr.bf16.mxu1 %v2897_v55  ;;  %v1192_v32 = vrot.slane %v1190_v25, 5 }
  0x4c   : > { %2678 = vmatmul.mubr.bf16.vlgmr.msra.gmra.mxu0 %v2257_v60  ;;  %v2911_v60 = vld [vmem:[%s3400_s1 + $0x148] sm:$0xff]  }
  0x4d   : > { %2702 = vmatmul.mubr.bf16.vlgmr.msra.gmra.mxu1 %v2895_v61  ;;  %2710 = vmatpush3.bf16.msra.mxu0 %v2896_v51  ;;  %v1193_v39 = vor.u32 %v1192_v32, %v1189_v31  ;;  %v1238_v51 = vshll.u32 %v2347_v42, 16  ;;  %v1213_v61 = vsel %vm3099_vm2, %v1208_v52, %v1212_v37  ;;  %v2355_v32 = vld [vmem:[%s3027_s14 + $0xcc] sm:$0x1]  ;;  %v1280_v37 = vshll.u32 %v2353_v24, 16  ;;  %v2464_v24 = vld [vmem:[%s3027_s14 + $0x28] sm:$0xf] }
  0x4e   : > { %2734 = vmatpush3.bf16.msra.mxu1 %v2897_v55  ;;  %2711 = vmatprep.subr.bf16.mxu0 %v2898_v4  ;;  %v2910_v55 = vld [vmem:[%s3400_s1 + $0x108] sm:$0xff]   ;;  %v1294_v44 = vshll.u32 %v2355_v32, 16  ;;  %v2467_v32 = vld [vmem:[%s3027_s14 + $0x34] sm:$0x1] }
  0x4f   : > { %2735 = vmatprep.subr.bf16.mxu1 %v2899_v7  ;;  %2681 = vmatprep.mubr.bf16.mxu0 %v2258_v8  ;;  %v1194_v48 = vrot.slane %v1193_v39, 4  ;;  %v1240_v2 = vrot.slane %v1238_v51, 5  ;;  %v1288_v39 = vshll.u32 %v2354_v29, 16  ;;  %v1282_v51 = vrot.slane %v1280_v37, 5 }
  0x50   : > { %2705 = vmatprep.mubr.bf16.mxu1 %v2902_v6  ;;  %v2913_v6 = vld [vmem:[%s3400_s1 + $0x140] sm:$0xff]   ;;  %v1296_v54 = vrot.slane %v1294_v44, 5  ;;  %v1870_v37 = vshll.u32 %v2464_v24, 16 }
  0x51   : > { %2712 = vmatpush3.bf16.msra.mxu0 %v2898_v4  ;;  %v1199_v56 = vsel %vm3099_vm2, %v1194_v48, %v1198_v34  ;;  %v2912_v4 = vld [vmem:[%s3400_s1 + $0x100] sm:$0xff]   ;;  %v1241_v8 = vsel %vm3099_vm2, %v1236_v5, %v1240_v2  ;;  %v1274_v34 = vshll.u32 %v2352_v23, 16  ;;  %v1290_v48 = vrot.slane %v1288_v39, 5  ;;  %v2934_v5 = vld [vmem:[%s3027_s14 + $0x8] ss:$8 sps:$4 sm:$0xff]  }
  0x52   : > { %2736 = vmatpush3.bf16.msra.mxu1 %v2899_v7  ;;  %2713 = vmatprep.subr.bf16.mxu0 %v2900_v10  ;;  %v2372_v63 = vcombine.low %v1199_v56, %v1213_v61  ;;  %v1227_v7 = vsel %vm3099_vm2, %v1222_v3, %v1226_v0  ;;  %v2924_v2 = vld [vmem:[%s3400_s1 + $0x1a0] sm:$0xff]  }
  0x53   : > { %2737 = vmatprep.subr.bf16.mxu1 %v2901_v13  ;;  %v2373_v20 = vcombine.low %v1227_v7, %v1241_v8  ;;  %v1291_v53 = vor.u32 %v1290_v48, %v1287_v47  ;;  %v2925_v3 = vld [vmem:[%s3400_s1 + $0x1e0] sm:$0xff]   ;;  %v2927_v7 = vld [vmem:[%s3400_s1 + $0x1d8] sm:$0xff]   ;;  %v2928_v8 = vld [vmem:[%s3400_s1 + $0x190] sm:$0xff]   ;;  %v1890_v47 = vshll.u32 %v2467_v32, 16 }
  0x54   : > { %2682 = vmatmul.mubr.bf16.gmra.mxu0 %v2259_v14  ;;  %v2351_v14 = vld [vmem:[%s3027_s14 + $0xbc] sm:$0x1]  ;;  %v2943_v48 = vld [vmem:[%s3027_s14 + $0x70] ss:$8 sps:$4 sm:$0xff]   ;;  %v2471_v32 = vld [vmem:[%s3027_s14 + $0x44] sm:$0x1] }
  0x55   : > { %2714 = vmatpush3.bf16.msra.mxu0 %v2900_v10  ;;  %2706 = vmatmul.mubr.bf16.gmra.mxu1 %v2903_v15  ;;  %v2348_v10 = vld [vmem:[%s3027_s14 + $0xb0] sm:$0xf]  ;;  %v1266_v22 = vshll.u32 %v2351_v14, 16  ;;  %v1292_v61 = vrot.slane %v1291_v53, 4  ;;  %v2938_v14 = vld [vmem:[%s3400_s1 + $0x238] sm:$0xff]  }
  0x56   : > { %2738 = vmatpush3.bf16.msra.mxu1 %v2901_v13  ;;  %2715 = vmatprep.subr.bf16.mxu0 %v2904_v16  ;;  %v2917_v13 = vld [vmem:[%s3400_s1 + $0x1f8] sm:$0xff]   ;;  %v1243_v15 = vshrl.u32 %v2348_v10, 16 }
  0x57   : > { %2739 = vmatprep.subr.bf16.mxu1 %v2905_v17  ;;  %2725 = vmatprep.mubr.bf16.mxu0 %v2914_v19  ;;  %v2915_v19 = vld [vmem:[%s3027_s14 + $0xe8] ss:$8 sps:$4 sm:$0xff]   ;;  %v1268_v31 = vrot.slane %v1266_v22, 5  ;;  %v1297_v0 = vsel %vm3099_vm2, %v1292_v61, %v1296_v54  ;;  %v2941_v61 = vld [vmem:[%s3027_s14 + $0x38] ss:$8 sps:$4 sm:$0xff]  }
  0x58   : > { %2749 = vmatprep.mubr.bf16.mxu1 %v2372_v63  ;;  %v1245_v25 = vrot.slane %v1243_v15, 4  ;;  %v2456_v15 = vld [vmem:[%s3027_s14 + $0x8] sm:$0xf] }
  0x59   : > { %2716 = vmatpush3.bf16.msra.mxu0 %v2904_v16  ;;  %v1246_v16 = vshll.u32 %v2348_v10, 16  ;;  %v2930_v10 = vld [vmem:[%s3400_s1 + $0x188] sm:$0xff]  }
  0x5a   : > { %2740 = vmatpush3.bf16.msra.mxu1 %v2905_v17  ;;  %2717 = vmatprep.subr.bf16.mxu0 %v2906_v18  ;;  %v1252_v17 = vshll.u32 %v2349_v11, 16  ;;  %v2931_v11 = vld [vmem:[%s3400_s1 + $0x1c8] sm:$0xff]  }
  0x5b   : > { %2741 = vmatprep.subr.bf16.mxu1 %v2907_v30  ;;  %v1248_v26 = vrot.slane %v1246_v16, 5  ;;  %v2457_v16 = vld [vmem:[%s3027_s14 + $0xc] sm:$0x1] }
  0x5c   : > { %v1254_v27 = vrot.slane %v1252_v17, 5  ;;  %v2458_v17 = vld [vmem:[%s3027_s14 + $0x10] sm:$0xf]  ;;  %v1820_v22 = vshll.u32 %v2457_v16, 16 }
  0x5d   : > { %2718 = vmatpush3.bf16.msra.mxu0 %v2906_v18  ;;  %v1257_v18 = vshrl.u32 %v2350_v12, 16  ;;  %v1249_v36 = vor.u32 %v1248_v26, %v1245_v25  ;;  %v2932_v12 = vld [vmem:[%s3400_s1 + $0x180] sm:$0xff]   ;;  %v1828_v25 = vshll.u32 %v2458_v17, 16  ;;  %v2465_v26 = vld [vmem:[%s3027_s14 + $0x2c] sm:$0x1] }
  0x5e   : > { %2742 = vmatpush3.bf16.msra.mxu1 %v2907_v30  ;;  %2719 = vmatprep.subr.bf16.mxu0 %v2908_v33  ;;  %v1262_v30 = vrot.slane %v1260_v21, 5  ;;  %v1814_v21 = vshll.u32 %v2456_v15, 16 }
  0x5f   : > { %2743 = vmatprep.subr.bf16.mxu1 %v2909_v43  ;;  %v1259_v28 = vrot.slane %v1257_v18, 4  ;;  %v1250_v46 = vrot.slane %v1249_v36, 4  ;;  %v2459_v18 = vld [vmem:[%s3027_s14 + $0x14] sm:$0x1]  ;;  %v1867_v36 = vshrl.u32 %v2464_v24, 16 }
  0x60   : > { %v1816_v29 = vrot.slane %v1814_v21, 5  ;;  %v2461_v21 = vld [vmem:[%s3027_s14 + $0x1c] sm:$0x1] }
  0x61   : > { %2720 = vmatpush3.bf16.msra.mxu0 %v2908_v33  ;;  %v1271_v33 = vshrl.u32 %v2352_v23, 16  ;;  %v1263_v41 = vor.u32 %v1262_v30, %v1259_v28  ;;  %v1255_v52 = vsel %vm3099_vm2, %v1250_v46, %v1254_v27  ;;  %v1825_v23 = vshrl.u32 %v2458_v17, 16  ;;  %v2466_v27 = vld [vmem:[%s3027_s14 + $0x30] sm:$0xf] }
  0x62   : > { %2744 = vmatpush3.bf16.msra.mxu1 %v2909_v43  ;;  %2721 = vmatprep.subr.bf16.mxu0 %v2910_v55  ;;  %v1276_v43 = vrot.slane %v1274_v34, 5  ;;  %v1822_v34 = vrot.slane %v1820_v22, 5  ;;  %v1872_v46 = vrot.slane %v1870_v37, 5  ;;  %v2948_v37 = vld [vmem:[%s3400_s1 + $0x208] sm:$0xff]  }
  0x63   : > { %2745 = vmatprep.subr.bf16.mxu1 %v2911_v60  ;;  %v1273_v42 = vrot.slane %v1271_v33, 4  ;;  %v1264_v49 = vrot.slane %v1263_v41, 4  ;;  %v1827_v30 = vrot.slane %v1825_v23, 4  ;;  %v2937_v33 = vld [vmem:[%s3027_s14 + $0x60] ss:$8 sps:$4 sm:$0xff]   ;;  %v1881_v41 = vshrl.u32 %v2466_v27, 16 }
  0x65   : > { %2722 = vmatpush3.bf16.msra.mxu0 %v2910_v55  ;;  %v1277_v50 = vor.u32 %v1276_v43, %v1273_v42  ;;  %v2922_v55 = vld [vmem:[%s3400_s1 + $0x1a8] sm:$0xff]   ;;  %v1269_v56 = vsel %vm3099_vm2, %v1264_v49, %v1268_v31  ;;  %v1834_v31 = vshll.u32 %v2459_v18, 16  ;;  %v1884_v42 = vshll.u32 %v2466_v27, 16 }
  0x66   : > { %2746 = vmatpush3.bf16.msra.mxu1 %v2911_v60  ;;  %2723 = vmatprep.subr.bf16.mxu0 %v2912_v4  ;;  %v2374_v60 = vcombine.low %v1255_v52, %v1269_v56  ;;  %v2940_v43 = vld [vmem:[%s3027_s14 + $0x28] ss:$8 sps:$4 sm:$0xff]  }
  0x67   : > { %2747 = vmatprep.subr.bf16.mxu1 %v2913_v6  ;;  %v1278_v57 = vrot.slane %v1277_v50, 4  ;;  %v1836_v50 = vrot.slane %v1834_v31, 5  ;;  %v1886_v52 = vrot.slane %v1884_v42, 5  ;;  %v2942_v56 = vld [vmem:[%s3400_s1 + $0x228] sm:$0xff]   ;;  %v2469_v31 = vld [vmem:[%s3027_s14 + $0x3c] sm:$0x1] }
  0x69   : > { %2724 = vmatpush3.bf16.msra.mxu0 %v2912_v4  ;;  %v1283_v63 = vsel %vm3099_vm2, %v1278_v57, %v1282_v51  ;;  %v2926_v4 = vld [vmem:[%s3400_s1 + $0x198] sm:$0xff]   ;;  %v1883_v51 = vrot.slane %v1881_v41, 4  ;;  %v1918_v41 = vshll.u32 %v2471_v32, 16 }
  0x6a   : > { %2748 = vmatpush3.bf16.msra.mxu1 %v2913_v6  ;;  %2757 = vmatprep.subr.bf16.mxu0 %v2916_v9  ;;  %v2375_v1 = vcombine.low %v1283_v63, %v1297_v0  ;;  %v2935_v6 = vld [vmem:[%s3027_s14 + $0x50] ss:$8 sps:$4 sm:$0xff]  }
  0x6b   : > { %2781 = vmatprep.subr.bf16.mxu1 %v2917_v13  ;;  %v1887_v57 = vor.u32 %v1886_v52, %v1883_v51 }
  0x6c   : > { %2726 = vmatmul.mubr.bf16.vlgmr.msra.gmra.mxu0 %v2915_v19  ;;  %v2936_v19 = vld [vmem:[%s3027_s14 + $0x18] ss:$8 sps:$4 sm:$0xff]  }
  0x6d   : > { %2750 = vmatmul.mubr.bf16.vlgmr.msra.gmra.mxu1 %v2373_v20  ;;  %2758 = vmatpush3.bf16.msra.mxu0 %v2916_v9  ;;  %v2929_v9 = vld [vmem:[%s3400_s1 + $0x1d0] sm:$0xff]   ;;  %v1811_v20 = vshrl.u32 %v2456_v15, 16  ;;  %v1888_v0 = vrot.slane %v1887_v57, 4  ;;  %v2946_v15 = vld [vmem:[%s3400_s1 + $0x218] sm:$0xff]  }
  0x6e   : > { %2782 = vmatpush3.bf16.msra.mxu1 %v2917_v13  ;;  %2759 = vmatprep.subr.bf16.mxu0 %v2918_v40  ;;  %v2933_v13 = vld [vmem:[%s3400_s1 + $0x1c0] sm:$0xff]  }
  0x6f   : > { %2783 = vmatprep.subr.bf16.mxu1 %v2919_v45  ;;  %2729 = vmatprep.mubr.bf16.mxu0 %v2920_v35  ;;  %v1813_v28 = vrot.slane %v1811_v20, 4  ;;  %v1830_v35 = vrot.slane %v1828_v25, 5  ;;  %v2947_v20 = vld [vmem:[%s3400_s1 + $0x210] sm:$0xff]  }
  0x70   : > { %2753 = vmatprep.mubr.bf16.mxu1 %v2374_v60 }
  0x71   : > { %2760 = vmatpush3.bf16.msra.mxu0 %v2918_v40  ;;  %v1817_v39 = vor.u32 %v1816_v29, %v1813_v28  ;;  %v1876_v40 = vshll.u32 %v2465_v26, 16  ;;  %v1831_v44 = vor.u32 %v1830_v35, %v1827_v30  ;;  %v2463_v26 = vld [vmem:[%s3027_s14 + $0x24] sm:$0x1] }
  0x72   : > { %2784 = vmatpush3.bf16.msra.mxu1 %v2919_v45  ;;  %2761 = vmatprep.subr.bf16.mxu0 %v2922_v55  ;;  %v1869_v45 = vrot.slane %v1867_v36, 4  ;;  %v1862_v36 = vshll.u32 %v2463_v26, 16 }
  0x73   : > { %2785 = vmatprep.subr.bf16.mxu1 %v2923_v58  ;;  %v1818_v49 = vrot.slane %v1817_v39, 4  ;;  %v1832_v53 = vrot.slane %v1831_v44, 4  ;;  %v1904_v39 = vshll.u32 %v2469_v31, 16 }
  0x74   : > { %2730 = vmatmul.mubr.bf16.gmra.mxu0 %v2921_v62  ;;  %v1873_v54 = vor.u32 %v1872_v46, %v1869_v45  ;;  %v1864_v45 = vrot.slane %v1862_v36, 5  ;;  %v2949_v46 = vld [vmem:[%s3400_s1 + $0x200] sm:$0xff]  }
  0x75   : > { %2762 = vmatpush3.bf16.msra.mxu0 %v2922_v55  ;;  %2754 = vmatmul.mubr.bf16.gmra.mxu1 %v2375_v1  ;;  %v1878_v55 = vrot.slane %v1876_v40, 5  ;;  %v1823_v62 = vsel %vm3099_vm2, %v1818_v49, %v1822_v34  ;;  %v1837_v63 = vsel %vm3099_vm2, %v1832_v53, %v1836_v50  ;;  %v2944_v1 = vld [vmem:[%s3027_s14 + $0x80] ss:$8 sps:$4 sm:$0xff]   ;;  %v1848_v34 = vshll.u32 %v2461_v21, 16 }
  0x76   : > { %2786 = vmatpush3.bf16.msra.mxu1 %v2923_v58  ;;  %2763 = vmatprep.subr.bf16.mxu0 %v2924_v2  ;;  %v1892_v58 = vrot.slane %v1890_v47, 5  ;;  %v1874_v60 = vrot.slane %v1873_v54, 4  ;;  %v1920_v50 = vrot.slane %v1918_v41, 5 }
  0x77   : > { %2787 = vmatprep.subr.bf16.mxu1 %v2925_v3  ;;  %2773 = vmatprep.mubr.bf16.mxu0 %v2934_v5  ;;  %v2460_v5 = vld [vmem:[%s3027_s14 + $0x18] sm:$0xf] }
  0x78   : > { %2797 = vmatprep.mubr.bf16.mxu1 %v2935_v6  ;;  %v2462_v6 = vld [vmem:[%s3027_s14 + $0x20] sm:$0xf] }
  0x79   : > { %2764 = vmatpush3.bf16.msra.mxu0 %v2924_v2  ;;  %v1879_v2 = vsel %vm3099_vm2, %v1874_v60, %v1878_v55 }
  0x7a   : > { %2788 = vmatpush3.bf16.msra.mxu1 %v2925_v3  ;;  %2765 = vmatprep.subr.bf16.mxu0 %v2926_v4  ;;  %v2945_v3 = vld [vmem:[%s3400_s1 + $0x220] sm:$0xff]  }
  0x7b   : > { %2789 = vmatprep.subr.bf16.mxu1 %v2927_v7 }
  0x7d   : > { %2766 = vmatpush3.bf16.msra.mxu0 %v2926_v4  ;;  %v1893_v4 = vsel %vm3099_vm2, %v1888_v0, %v1892_v58 }
  0x7e   : > { %2790 = vmatpush3.bf16.msra.mxu1 %v2927_v7  ;;  %2767 = vmatprep.subr.bf16.mxu0 %v2928_v8  ;;  %v2488_v7 = vcombine.low %v1823_v62, %v1837_v63 }
  0x7f   : > { %2791 = vmatprep.subr.bf16.mxu1 %v2929_v9 }
  0x81   : > { %2768 = vmatpush3.bf16.msra.mxu0 %v2928_v8  ;;  %v2468_v8 = vld [vmem:[%s3027_s14 + $0x38] sm:$0xf] }
  0x82   : > { %2792 = vmatpush3.bf16.msra.mxu1 %v2929_v9  ;;  %2769 = vmatprep.subr.bf16.mxu0 %v2930_v10  ;;  %v2470_v9 = vld [vmem:[%s3027_s14 + $0x40] sm:$0xf]  ;;  %v1895_v16 = vshrl.u32 %v2468_v8, 16  ;;  %v1898_v17 = vshll.u32 %v2468_v8, 16 }
  0x83   : > { %2793 = vmatprep.subr.bf16.mxu1 %v2931_v11  ;;  %v1909_v18 = vshrl.u32 %v2470_v9, 16 }
  0x84   : > { %v1897_v27 = vrot.slane %v1895_v16, 4  ;;  %v1900_v28 = vrot.slane %v1898_v17, 5 }
  0x85   : > { %2770 = vmatpush3.bf16.msra.mxu0 %v2930_v10  ;;  %v2490_v10 = vcombine.low %v1879_v2, %v1893_v4  ;;  %v1911_v29 = vrot.slane %v1909_v18, 4 }
  0x86   : > { %2794 = vmatpush3.bf16.msra.mxu1 %v2931_v11  ;;  %2771 = vmatprep.subr.bf16.mxu0 %v2932_v12  ;;  %v1839_v11 = vshrl.u32 %v2460_v5, 16 }
  0x87   : > { %2795 = vmatprep.subr.bf16.mxu1 %v2933_v13 }
  0x88   : > { %v1841_v22 = vrot.slane %v1839_v11, 4 }
  0x89   : > { %2772 = vmatpush3.bf16.msra.mxu0 %v2932_v12  ;;  %v1842_v12 = vshll.u32 %v2460_v5, 16 }
  0x8a   : > { %2796 = vmatpush3.bf16.msra.mxu1 %v2933_v13  ;;  %2805 = vmatprep.subr.bf16.mxu0 %v2938_v14  ;;  %v1853_v13 = vshrl.u32 %v2462_v6, 16 }
  0x8b   : > { %2829 = vmatprep.subr.bf16.mxu1 %v2938_v14  ;;  %v1844_v23 = vrot.slane %v1842_v12, 5 }
  0x8c   : > { %2774 = vmatmul.mubr.bf16.vlgmr.msra.gmra.mxu0 %v2936_v19  ;;  %v1912_v19 = vshll.u32 %v2470_v9, 16  ;;  %v1855_v24 = vrot.slane %v1853_v13, 4 }
  0x8d   : > { %2798 = vmatmul.mubr.bf16.vlgmr.msra.gmra.mxu1 %v2937_v33  ;;  %2806 = vmatpush3.bf16.msra.mxu0 %v2938_v14  ;;  %v1845_v33 = vor.u32 %v1844_v23, %v1841_v22 }
  0x8e   : > { %2837 = vmatpush3.bf16.msra.mxu1 %v2938_v14  ;;  %2807 = vmatprep.subr.bf16.mxu0 %v2939_v38  ;;  %v1856_v14 = vshll.u32 %v2462_v6, 16  ;;  %v1914_v30 = vrot.slane %v1912_v19, 5 }
  0x8f   : > { %2830 = vmatprep.subr.bf16.mxu1 %v2939_v38  ;;  %2777 = vmatprep.mubr.bf16.mxu0 %v2940_v43  ;;  %v1846_v42 = vrot.slane %v1845_v33, 4  ;;  %v1850_v43 = vrot.slane %v1848_v34, 5 }
  0x90   : > { %2801 = vmatprep.mubr.bf16.mxu1 %v2943_v48  ;;  %v1858_v25 = vrot.slane %v1856_v14, 5  ;;  %v1915_v40 = vor.u32 %v1914_v30, %v1911_v29  ;;  %v1906_v48 = vrot.slane %v1904_v39, 5 }
  0x91   : > { %2808 = vmatpush3.bf16.msra.mxu0 %v2939_v38  ;;  %v1851_v51 = vsel %vm3099_vm2, %v1846_v42, %v1850_v43 }
  0x92   : > { %2838 = vmatpush3.bf16.msra.mxu1 %v2939_v38  ;;  %2809 = vmatprep.subr.bf16.mxu0 %v2942_v56  ;;  %v1859_v35 = vor.u32 %v1858_v25, %v1855_v24  ;;  %v1901_v38 = vor.u32 %v1900_v28, %v1897_v27  ;;  %v1916_v49 = vrot.slane %v1915_v40, 4 }
  0x93   : > { %2831 = vmatprep.subr.bf16.mxu1 %v2942_v56 }
  0x94   : > { %2778 = vmatmul.mubr.bf16.gmra.mxu0 %v2941_v61  ;;  %v1860_v44 = vrot.slane %v1859_v35, 4  ;;  %v1902_v47 = vrot.slane %v1901_v38, 4  ;;  %v1921_v54 = vsel %vm3099_vm2, %v1916_v49, %v1920_v50 }
  0x95   : > { %2810 = vmatpush3.bf16.msra.mxu0 %v2942_v56  ;;  %2802 = vmatmul.mubr.bf16.gmra.mxu1 %v2944_v1 }
  0x96   : > { %2839 = vmatpush3.bf16.msra.mxu1 %v2942_v56  ;;  %2811 = vmatprep.subr.bf16.mxu0 %v2945_v3  ;;  %v1865_v52 = vsel %vm3099_vm2, %v1860_v44, %v1864_v45  ;;  %v1907_v53 = vsel %vm3099_vm2, %v1902_v47, %v1906_v48 }
  0x97   : > { %2832 = vmatprep.subr.bf16.mxu1 %v2945_v3  ;;  %2821 = vmatprep.mubr.bf16.mxu0 %v2488_v7  ;;  %v2489_v55 = vcombine.low %v1851_v51, %v1865_v52  ;;  %v2491_v56 = vcombine.low %v1907_v53, %v1921_v54 }
  0x98   : > { %2825 = vmatprep.mubr.bf16.mxu1 %v2490_v10 }
  0x99   : > { %2812 = vmatpush3.bf16.msra.mxu0 %v2945_v3 }
  0x9a   : > { %2840 = vmatpush3.bf16.msra.mxu1 %v2945_v3  ;;  %2813 = vmatprep.subr.bf16.mxu0 %v2946_v15 }
  0x9b   : > { %2833 = vmatprep.subr.bf16.mxu1 %v2946_v15 }
  0x9d   : > { %2814 = vmatpush3.bf16.msra.mxu0 %v2946_v15 }
  0x9e   : > { %2841 = vmatpush3.bf16.msra.mxu1 %v2946_v15  ;;  %2815 = vmatprep.subr.bf16.mxu0 %v2947_v20 }
  0x9f   : > { %2834 = vmatprep.subr.bf16.mxu1 %v2947_v20 }
  0xa1   : > { %2816 = vmatpush3.bf16.msra.mxu0 %v2947_v20 }
  0xa2   : > { %2842 = vmatpush3.bf16.msra.mxu1 %v2947_v20  ;;  %2817 = vmatprep.subr.bf16.mxu0 %v2948_v37 }
  0xa3   : > { %2835 = vmatprep.subr.bf16.mxu1 %v2948_v37 }
  0xa5   : > { %2818 = vmatpush3.bf16.msra.mxu0 %v2948_v37 }
  0xa6   : > { %2843 = vmatpush3.bf16.msra.mxu1 %v2948_v37  ;;  %2819 = vmatprep.subr.bf16.mxu0 %v2949_v46 }
  0xa7   : > { %2836 = vmatprep.subr.bf16.mxu1 %v2949_v46 }
  0xa9   : > { %2820 = vmatpush3.bf16.msra.mxu0 %v2949_v46 }
  0xaa   : > { %2844 = vmatpush3.bf16.msra.mxu1 %v2949_v46 }
  0xac   : > { %2822 = vmatmul.mubr.bf16.vlgmr.msra.gmra.mxu0 %v2489_v55 }
  0xad   : > { %2826 = vmatmul.mubr.bf16.vlgmr.msra.gmra.mxu1 %v2491_v56 }
  0xec   : > { %v2631_v57 = vpop.f32.mrf.mxu0 }
  0xed   : > { %v2655_v60 = vpop.f32.mrf.mxu1 }
  0xee   : > { %v375_v58 = vpop.f32.mrf.mxu0  ;;  %v521_v46 = vadd.f32 %v2655_v60, %v2631_v57 }
  0xef   : > { %v512_v62 = vpop.f32.mrf.mxu1 }
  0xf0   : > { %v2632_v61 = vpop.f32.mrf.mxu0  ;;  %v513_v50 = vadd.f32 %v512_v62, %v375_v58 }
  0xf1   : > { %v2656_v1 = vpop.f32.mrf.mxu1 }
  0xf2   : > { %v378_v63 = vpop.f32.mrf.mxu0  ;;  %v524_v54 = vadd.f32 %v2656_v1, %v2632_v61 }
  0xf3   : > { %v515_v3 = vpop.f32.mrf.mxu1 }
  0xf4   : > { %v2635_v0 = vpop.f32.mrf.mxu0 }
  0xf5   : > { %v2659_v4 = vpop.f32.mrf.mxu1 }
  0xf6   : > { %v391_v2 = vpop.f32.mrf.mxu0  ;;  %v537_v48 = vadd.f32 %v2659_v4, %v2635_v0 }
  0xf7   : > { %v528_v5 = vpop.f32.mrf.mxu1 }
  0xf8   : > { %v2636_v59 = vpop.f32.mrf.mxu0  ;;  %v529_v52 = vadd.f32 %v528_v5, %v391_v2 }
  0xf9   : > { %v2660_v8 = vpop.f32.mrf.mxu1 }
  0xfa   : > { %v394_v6 = vpop.f32.mrf.mxu0 }
  0xfb   : > { %v531_v10 = vpop.f32.mrf.mxu1 }
  0xfc   : > { %v532_v0 = vadd.f32 %v531_v10, %v394_v6 }
 0x10c   : > { %v2679_v7 = vpop.f32.mrf.mxu0 }
 0x10d   : > { %v2703_v11 = vpop.f32.mrf.mxu1  ;;  %v822_v51 = vadd.f32 %v2679_v7, %v521_v46 }
 0x10e   : > { %v789_v9 = vpop.f32.mrf.mxu0 }
 0x10f   : > { %v960_v13 = vpop.f32.mrf.mxu1  ;;  %v820_v55 = vadd.f32 %v789_v9, %v513_v50  ;;  %v993_v57 = vadd.f32 %v2703_v11, %v822_v51  ;;  %v2093_v50 = vld [vmem:[%s3364_s28 + $0x10] sm:$0xff] }
 0x110   : > { %v2680_v12 = vpop.f32.mrf.mxu0 }
 0x111   : > { %v2704_v15 = vpop.f32.mrf.mxu1  ;;  %v823_v60 = vadd.f32 %v2680_v12, %v524_v54  ;;  %v991_v62 = vadd.f32 %v960_v13, %v820_v55  ;;  %v2097_v55 = vld [vmem:[%s3364_s28 + $0x30] sm:$0xff] }
 0x112   : > { %v792_v14 = vpop.f32.mrf.mxu0 }
 0x113   : > { %v963_v17 = vpop.f32.mrf.mxu1  ;;  %v994_v1 = vadd.f32 %v2704_v15, %v823_v60 }
 0x114   : > { %v2683_v16 = vpop.f32.mrf.mxu0 }
 0x115   : > { %v2707_v19 = vpop.f32.mrf.mxu1  ;;  %v826_v53 = vadd.f32 %v2683_v16, %v537_v48 }
 0x116   : > { %v805_v18 = vpop.f32.mrf.mxu0 }
 0x117   : > { %v976_v21 = vpop.f32.mrf.mxu1  ;;  %v997_v4 = vadd.f32 %v2707_v19, %v826_v53 }
 0x118   : > { %v2684_v20 = vpop.f32.mrf.mxu0 }
 0x119   : > { %v2708_v23 = vpop.f32.mrf.mxu1 }
 0x11a   : > { %v808_v22 = vpop.f32.mrf.mxu0 }
 0x11b   : > { %v979_v25 = vpop.f32.mrf.mxu1  ;;  %v825_v5 = vadd.f32 %v808_v22, %v532_v0 }
 0x11d   : > { %v996_v12 = vadd.f32 %v979_v25, %v825_v5  ;;  %v2095_v5 = vld [vmem:[%s3364_s28 + $0x20] sm:$0xff] }
 0x12c   : > { %v2727_v24 = vpop.f32.mrf.mxu0 }
 0x12d   : > { %v2751_v27 = vpop.f32.mrf.mxu1  ;;  %v1164_v46 = vadd.f32 %v2727_v24, %v993_v57 }
 0x12e   : > { %v1131_v26 = vpop.f32.mrf.mxu0 }
 0x12f   : > { %v1413_v29 = vpop.f32.mrf.mxu1  ;;  %v1162_v9 = vadd.f32 %v1131_v26, %v991_v62 }
 0x130   : > { %v2728_v28 = vpop.f32.mrf.mxu0 }
 0x131   : > { %v3344_v31 = vpop.f32.mrf.mxu1  ;;  %v1165_v11 = vadd.f32 %v2728_v28, %v994_v1  ;;  %v1444_v13 = vadd.f32 %v1413_v29, %v1162_v9 }
 0x132   : > { %v1134_v30 = vpop.f32.mrf.mxu0  ;;  %3406 = vst [vmem:[#allocation2_spill] sm:$0xff] %v3344_v31 }
 0x133   : > { %v3346_v33 = vpop.f32.mrf.mxu1 }
 0x134   : > { %v2731_v32 = vpop.f32.mrf.mxu0  ;;  %3407 = vst [vmem:[#allocation3_spill] sm:$0xff] %v3346_v33  ;;  %v540_v33 = vadd.f32 %v2660_v8, %v2636_v59 }
 0x135   : > { %v2755_v34 = vpop.f32.mrf.mxu1  ;;  %v1168_v16 = vadd.f32 %v2731_v32, %v997_v4  ;;  %v2091_v4 = vld [vmem:[%s3364_s28] sm:$0xff] }
 0x136   : > { %v1147_v35 = vpop.f32.mrf.mxu0  ;;  %v827_v58 = vadd.f32 %v2684_v20, %v540_v33 }
 0x137   : > { %v1429_v36 = vpop.f32.mrf.mxu1  ;;  %v1450_v6 = vadd.f32 %v2755_v34, %v1168_v16 }
 0x138   : > { %v2732_v37 = vpop.f32.mrf.mxu0  ;;  %v998_v59 = vadd.f32 %v2708_v23, %v827_v58 }
 0x139   : > { %v2756_v38 = vpop.f32.mrf.mxu1  ;;  %v3411_v24 = vld [vmem:[#allocation2_spill] sm:$0xff] }
 0x13a   : > { %v1150_v39 = vpop.f32.mrf.mxu0  ;;  %v1169_v10 = vadd.f32 %v2732_v37, %v998_v59  ;;  %v1447_v23 = vadd.f32 %v3411_v24, %v1165_v11  ;;  %v2094_v59 = vld [vmem:[%s3364_s28 + $0x18] sm:$0xff] }
 0x13b   : > { %v3348_v41 = vpop.f32.mrf.mxu1  ;;  %v1167_v22 = vadd.f32 %v1150_v39, %v996_v12  ;;  %v3412_v28 = vld [vmem:[#allocation3_spill] sm:$0xff] }
 0x13c   : > { %3408 = vst [vmem:[#allocation4_spill] sm:$0xff] %v3348_v41  ;;  %v824_v41 = vadd.f32 %v805_v18, %v529_v52  ;;  %v1451_v32 = vadd.f32 %v2756_v38, %v1169_v10  ;;  %v2500_v38 = vld [vmem:[%s3401_s2] ss:$0 sm:$0xff] }
 0x13e   : > { %v995_v2 = vadd.f32 %v976_v21, %v824_v41 }
 0x140   : > { %v1166_v8 = vadd.f32 %v1147_v35, %v995_v2 }
 0x142   : > { %v1448_v21 = vadd.f32 %v1429_v36, %v1166_v8 }
 0x143   : > { %v3413_v29 = vld [vmem:[#allocation4_spill] sm:$0xff] }
 0x14c   : > { %v2775_v40 = vpop.f32.mrf.mxu0 }
 0x14d   : > { %v2799_v42 = vpop.f32.mrf.mxu1 }
 0x14e   : > { %v1584_v43 = vpop.f32.mrf.mxu0 }
 0x14f   : > { %v3350_v44 = vpop.f32.mrf.mxu1  ;;  %v1615_v26 = vadd.f32 %v1584_v43, %v1444_v13  ;;  %v2092_v13 = vld [vmem:[%s3364_s28 + $0x8] sm:$0xff] }
 0x150   : > { %3409 = vst [vmem:[#allocation5_spill] sm:$0xff] %v3350_v44  ;;  %v2776_v45 = vpop.f32.mrf.mxu0  ;;  %v516_v44 = vadd.f32 %v515_v3, %v378_v63  ;;  %v1446_v3 = vadd.f32 %v2751_v27, %v1164_v46 }
 0x151   : > { %v3352_v47 = vpop.f32.mrf.mxu1  ;;  %v1618_v34 = vadd.f32 %v2776_v45, %v1447_v23 }
 0x152   : > { %3410 = vst [vmem:[#allocation6_spill] sm:$0xff] %v3352_v47  ;;  %v1587_v49 = vpop.f32.mrf.mxu0  ;;  %v821_v7 = vadd.f32 %v792_v14, %v516_v44  ;;  %v1617_v19 = vadd.f32 %v2775_v40, %v1446_v3 }
 0x153   : > { %v3354_v56 = vpop.f32.mrf.mxu1 }
 0x154   : > { %v2779_v31 = vpop.f32.mrf.mxu0  ;;  %v992_v63 = vadd.f32 %v963_v17, %v821_v7  ;;  %v1788_v33 = vadd.f32 %v2799_v42, %v1617_v19 }
 0x155   : > { %v2803_v47 = vpop.f32.mrf.mxu1  ;;  %v1621_v15 = vadd.f32 %v2779_v31, %v1450_v6 }
 0x156   : > { %v1600_v61 = vpop.f32.mrf.mxu0  ;;  %v1163_v14 = vadd.f32 %v1134_v30, %v992_v63  ;;  %v1449_v30 = vadd.f32 %v3413_v29, %v1167_v22 }
 0x157   : > { %v1771_v48 = vpop.f32.mrf.mxu1  ;;  %v1619_v17 = vadd.f32 %v1600_v61, %v1448_v21  ;;  %v1792_v31 = vadd.f32 %v2803_v47, %v1621_v15  ;;  %v3414_v39 = vld [vmem:[#allocation5_spill] sm:$0xff]  ;;  %v2096_v21 = vld [vmem:[%s3364_s28 + $0x28] sm:$0xff] }
 0x158   : > { %v2780_v18 = vpop.f32.mrf.mxu0  ;;  %v1445_v25 = vadd.f32 %v3412_v28, %v1163_v14  ;;  %v1786_v40 = vadd.f32 %v3414_v39, %v1615_v26 }
 0x159   : > { %v2804_v20 = vpop.f32.mrf.mxu1  ;;  %v1622_v36 = vadd.f32 %v2780_v18, %v1451_v32  ;;  %v1790_v44 = vadd.f32 %v1771_v48, %v1619_v17  ;;  %v3415_v47 = vld [vmem:[#allocation6_spill] sm:$0xff] }
 0x15a   : > { %v1603_v27 = vpop.f32.mrf.mxu0  ;;  %v1616_v41 = vadd.f32 %v1587_v49, %v1445_v25  ;;  %v1789_v53 = vadd.f32 %v3415_v47, %v1618_v34 }
 0x15b   : > { %v1774_v35 = vpop.f32.mrf.mxu1  ;;  %v1620_v45 = vadd.f32 %v1603_v27, %v1449_v30  ;;  %v1793_v0 = vadd.f32 %v2804_v20, %v1622_v36 }
 0x15c   : > { %v1787_v7 = vadd.f32 %v3354_v56, %v1616_v41  ;;  %v2098_v56 = vld [vmem:[%s3364_s28 + $0x38] sm:$0xff] }
 0x15d   : > { %v1791_v1 = vadd.f32 %v1774_v35, %v1620_v45 }
 0x16c   : > { %v2823_v37 = vpop.f32.mrf.mxu0 }
 0x16d   : > { %v2070_v42 = vadd.f32 %v2823_v37, %v1788_v33  ;;  %v2827_v43 = vpop.f32.mrf.mxu1 }
 0x16e   : > { %v2074_v51 = vadd.f32 %v2827_v43, %v1792_v31  ;;  %v2037_v52 = vpop.f32.mrf.mxu0 }
 0x16f   : > { %v2085_v54 = vadd.f32 %v2500_v38, %v2070_v42  ;;  %v2068_v57 = vadd.f32 %v2037_v52, %v1786_v40  ;;  %v2053_v60 = vpop.f32.mrf.mxu1 }
 0x170   : > { %v2089_v49 = vadd.f32 %v2500_v38, %v2074_v51  ;;  %v2072_v58 = vadd.f32 %v2053_v60, %v1790_v44  ;;  %v2824_v62 = vpop.f32.mrf.mxu0 }
 0x171   : > { %v2101_v46 = vadd.f32 %v2093_v50, %v2085_v54  ;;  %v2083_v2 = vadd.f32 %v2500_v38, %v2068_v57  ;;  %v2071_v16 = vadd.f32 %v2824_v62, %v1789_v53  ;;  %v2828_v61 = vpop.f32.mrf.mxu1 }
 0x172   : > { %v2105_v9 = vadd.f32 %v2097_v55, %v2089_v49  ;;  %v2087_v48 = vadd.f32 %v2500_v38, %v2072_v58  ;;  %v2075_v8 = vadd.f32 %v2828_v61, %v1793_v0  ;;  %v2040_v63 = vpop.f32.mrf.mxu0 }
 0x173   : > { %2109 = vst [vmem:[%s3379_s7 + $0x10] sm:$0xff] %v2101_v46  ;;  %v2099_v3 = vadd.f32 %v2091_v4, %v2083_v2  ;;  %v2086_v11 = vadd.f32 %v2500_v38, %v2071_v16  ;;  %v2069_v12 = vadd.f32 %v2040_v63, %v1787_v7  ;;  %v2056_v6 = vpop.f32.mrf.mxu1 }
 0x174   : > { %2113 = vst [vmem:[%s3379_s7 + $0x30] sm:$0xff] %v2105_v9  ;;  %v2103_v10 = vadd.f32 %v2095_v5, %v2087_v48  ;;  %v2090_v18 = vadd.f32 %v2500_v38, %v2075_v8  ;;  %v2073_v14 = vadd.f32 %v2056_v6, %v1791_v1 }
 0x175   : > { %2107 = vst [vmem:[%s3379_s7] sm:$0xff] %v2099_v3  ;;  %v2102_v19 = vadd.f32 %v2094_v59, %v2086_v11  ;;  %v2084_v20 = vadd.f32 %v2500_v38, %v2069_v12 }
 0x176   : > { %2111 = vst [vmem:[%s3379_s7 + $0x20] sm:$0xff] %v2103_v10  ;;  %v2106_v22 = vadd.f32 %v2098_v56, %v2090_v18  ;;  %v2088_v15 = vadd.f32 %v2500_v38, %v2073_v14 }
 0x177   : > { %2110 = vst [vmem:[%s3379_s7 + $0x18] sm:$0xff] %v2102_v19  ;;  %v2100_v24 = vadd.f32 %v2092_v13, %v2084_v20 }
 0x178   : > { %2114 = vst [vmem:[%s3379_s7 + $0x38] sm:$0xff] %v2106_v22  ;;  %v2104_v23 = vadd.f32 %v2096_v21, %v2088_v15 }
 0x179   : > { %2108 = vst [vmem:[%s3379_s7 + $0x8] sm:$0xff] %v2100_v24 }
 0x17a   : > { %2112 = vst [vmem:[%s3379_s7 + $0x28] sm:$0xff] %v2104_v23 }
 0x17b PF: > { %s14_s15 = sadd.s32 1, %s2956_s15  }
 0x17c   : > { %p11_p4 = scmp.ge.s32.totalorder %s14_s15, 4  }
 0x17e   :  { %13 = sbr.rel (!%p11_p4) target bundleno = 1 (0x1), region = 82 }

// kernel: basic_block_ir_forward.3
= control target key start
LH: loop header
LB: loop body
LE: loop exit
PB: predicated region body
PF: predicated region fallthrough
CT: control target
= control target key end

     0   :  { %s6956_s15 = smov 0   ;;  %s9666_s0 = inlined_call_operand.vmem [shape: bf16[2,18,18,128], index: 0, kind: input, shape index: {}]   ;;  %s9667_s1 = inlined_call_operand.vmem [shape: bf16[9,128,128], index: 1, kind: input, shape index: {}]   ;;  %s9668_s2 = inlined_call_operand.vmem [shape: f32[1,128], index: 2, kind: input, shape index: {}]   ;;  %s9669_s3 = inlined_call_operand.vmem [shape: f32[1,128], index: 3, kind: input, shape index: {}]   ;;  %s9670_s4 = inlined_call_operand.vmem [shape: bf16[2,16,16,128], index: 4, kind: output, shape index: {}]  }
   0x1 LB: > { %s5365_s16 = sadd.s32 4294967295, %s6929_s15   ;;  %p5369_p0 = scmp.ge.s32.totalorder %s6929_s15, 1  ;;  %s6929_s15 = sphi %s6956_s15, %s14_s15  }
   0x2   : > { %p162_p1 = scmp.lt.s32.totalorder %s6929_s15, 3 }
   0x4   : > { %p163_p2 = pnand %p5369_p0, %p162_p1 }
   0x6   : > { %166 = sbr.rel (%p163_p2) target bundleno = 559 (0x22f), region = 36 }
   0xb   : > { %v6794_v0 = vld [vmem:[%s9667_s1 + $0x78] sm:$0xff]   ;;  %p188_p3 = scmp.lt.s32.totalorder %s5365_s16, 1  ;;  %v6795_v1 = vld [vmem:[%s9667_s1 + $0x70] sm:$0xff]   ;;  %v6796_v2 = vld [vmem:[%s9667_s1 + $0x68] sm:$0xff]   ;;  %vm263_vm0 = vsmask.f32 3328 }
   0xc   : > { %6337 = vmatprep.subr.bf16.mxu0 %v6794_v0  ;;  %6769 = vmatprep.subr.bf16.mxu1 %v6794_v0  ;;  %v6797_v3 = vld [vmem:[%s9667_s1 + $0x60] sm:$0xff]   ;;  %vm264_vm1 = vsmask.f32 7440  ;;  %v6798_v17 = vld [vmem:[%s9667_s1 + $0x58] sm:$0xff]   ;;  %v6799_v33 = vld [vmem:[%s9667_s1 + $0x50] sm:$0xff]   ;;  %vm1293_vm3 = vcmask 1042432  }
   0xd   : > { %s9863_s16 = smov (!%p188_p3, %s5365_s16), 1  ;;  %6338 = vmatpush3.bf16.msra.mxu0 %v6794_v0  ;;  %6777 = vmatpush3.bf16.msra.mxu1 %v6794_v0  ;;  %vm7010_vm2 = vmor %vm263_vm0, %vm264_vm1  ;;  %v6800_v58 = vld [vmem:[%s9667_s1 + $0x48] sm:$0xff]   ;;  %vm1294_vm4 = vcmask 1046532  }
   0xe   : > { %6339 = vmatprep.subr.bf16.mxu0 %v6795_v1  ;;  %6770 = vmatprep.subr.bf16.mxu1 %v6795_v1  ;;  %s6785_s23 = smul.u32 216, %s9863_s16  ;;  %vm7321_vm5 = vmor %vm1293_vm3, %vm1294_vm4  ;;  %s5993_s30 = sshll.u32 %s9863_s16, 7 }
   0xf   : > { %s9538_s6 = scalar_lea.vmem %s9670_s4, %s5993_s30 }
  0x10   : > { %s6979_s26 = scalar_lea.vmem %s9666_s0, %s6785_s23 }
  0x11   : > { %6340 = vmatpush3.bf16.msra.mxu0 %v6795_v1  ;;  %6778 = vmatpush3.bf16.msra.mxu1 %v6795_v1  ;;  %v6985_v4 = vld [vmem:[%s6979_s26] sm:$0xf]  ;;  %v6988_v5 = vld [vmem:[%s6979_s26 + $0x4] sm:$0xf]  ;;  %v6991_v6 = vld [vmem:[%s6979_s26 + $0x8] sm:$0x1] }
  0x12   : > { %6341 = vmatprep.subr.bf16.mxu0 %v6796_v2  ;;  %6771 = vmatprep.subr.bf16.mxu1 %v6796_v2  ;;  %v267_v7 = vshrl.u32 %v6985_v4, 16  ;;  %v270_v8 = vshll.u32 %v6985_v4, 16  ;;  %v276_v9 = vshll.u32 %v6988_v5, 16  ;;  %v280_v10 = vshrl.u32 %v6988_v5, 16  ;;  %v215_v12 = vld [vmem:[%s6979_s26 + $0x60] sm:$0xf] }
  0x13   : > { %v286_v11 = vshll.u32 %v6991_v6, 16  ;;  %v216_v15 = vld [vmem:[%s6979_s26 + $0x64] sm:$0xf]  ;;  %v255_v16 = vld [vmem:[%s6979_s26 + $0x68] sm:$0x1]  ;;  %v459_v21 = vshrl.u32 %v215_v12, 16 }
  0x14   : > { %v269_v13 = vrot.slane %v267_v7, 4  ;;  %v272_v14 = vrot.slane %v270_v8, 5  ;;  %v278_v18 = vrot.slane %v276_v9, 5  ;;  %v282_v19 = vrot.slane %v280_v10, 4  ;;  %v7006_v26 = vld [vmem:[%s6979_s26 + $0xc] sm:$0xf] }
  0x15   : > { %6342 = vmatpush3.bf16.msra.mxu0 %v6796_v2  ;;  %6779 = vmatpush3.bf16.msra.mxu1 %v6796_v2  ;;  %v462_v23 = vshll.u32 %v215_v12, 16  ;;  %v468_v24 = vshll.u32 %v216_v15, 16  ;;  %v472_v25 = vshrl.u32 %v216_v15, 16  ;;  %v288_v29 = vrot.slane %v286_v11, 5  ;;  %v7015_v32 = vld [vmem:[%s6979_s26 + $0x10] sm:$0xf] }
  0x16   : > { %6343 = vmatprep.subr.bf16.mxu0 %v6797_v3  ;;  %6772 = vmatprep.subr.bf16.mxu1 %v6797_v3  ;;  %v273_v22 = vor.u32 %v272_v14, %v269_v13  ;;  %v283_v28 = vor.u32 %v282_v19, %v278_v18  ;;  %v461_v30 = vrot.slane %v459_v21, 4  ;;  %v478_v31 = vshll.u32 %v255_v16, 16  ;;  %v7021_v40 = vld [vmem:[%s6979_s26 + $0x14] sm:$0x1]  ;;  %v217_v47 = vld [vmem:[%s6979_s26 + $0x6c] sm:$0xf] }
  0x17   : > { %v464_v35 = vrot.slane %v462_v23, 5  ;;  %v470_v36 = vrot.slane %v468_v24, 5  ;;  %v474_v37 = vrot.slane %v472_v25, 4  ;;  %v291_v41 = vshrl.u32 %v7006_v26, 16  ;;  %v218_v52 = vld [vmem:[%s6979_s26 + $0x70] sm:$0xf] }
  0x18   : > { %v274_v34 = vrot.slane %v273_v22, 4  ;;  %v284_v38 = vrot.slane %v283_v28, 4  ;;  %v480_v39 = vrot.slane %v478_v31, 5  ;;  %v294_v42 = vshll.u32 %v7006_v26, 16  ;;  %v256_v57 = vld [vmem:[%s6979_s26 + $0x74] sm:$0x1] }
  0x19   : > { %6344 = vmatpush3.bf16.msra.mxu0 %v6797_v3  ;;  %6780 = vmatpush3.bf16.msra.mxu1 %v6797_v3  ;;  %v465_v44 = vor.u32 %v464_v35, %v461_v30  ;;  %v475_v45 = vor.u32 %v474_v37, %v470_v36  ;;  %v300_v46 = vshll.u32 %v7015_v32, 16  ;;  %v293_v49 = vrot.slane %v291_v41, 4  ;;  %v7044_v14 = vld [vmem:[%s6979_s26 + $0x18] sm:$0xf]  ;;  %v6801_v15 = vld [vmem:[%s9667_s1 + $0x40] sm:$0xff]  }
  0x1a   : > { %6345 = vmatprep.subr.bf16.mxu0 %v6798_v17  ;;  %6773 = vmatprep.subr.bf16.mxu1 %v6798_v17  ;;  %v279_v43 = vsel %vm7010_vm2, %v274_v34, %v278_v18  ;;  %v289_v48 = vsel %vm7010_vm2, %v284_v38, %v288_v29  ;;  %v296_v50 = vrot.slane %v294_v42, 5  ;;  %v304_v51 = vshrl.u32 %v7015_v32, 16  ;;  %v7052_v19 = vld [vmem:[%s6979_s26 + $0x1c] sm:$0xf]  ;;  %v7057_v25 = vld [vmem:[%s6979_s26 + $0x20] sm:$0x1] }
  0x1b   : > { %v5389_v53 = vcombine.low %v279_v43, %v289_v48  ;;  %v466_v54 = vrot.slane %v465_v44, 4  ;;  %v476_v55 = vrot.slane %v475_v45, 4  ;;  %v302_v56 = vrot.slane %v300_v46, 5  ;;  %v219_v34 = vld [vmem:[%s6979_s26 + $0x78] sm:$0xf] }
  0x1c   : > { %v297_v59 = vor.u32 %v296_v50, %v293_v49  ;;  %v306_v60 = vrot.slane %v304_v51, 4  ;;  %v310_v61 = vshll.u32 %v7021_v40, 16  ;;  %v483_v1 = vshrl.u32 %v217_v47, 16  ;;  %v6802_v41 = vld [vmem:[%s9667_s1 + $0x38] sm:$0xff]   ;;  %v257_v49 = vld [vmem:[%s6979_s26 + $0x80] sm:$0x1] }
  0x1d   : > { %6346 = vmatpush3.bf16.msra.mxu0 %v6798_v17  ;;  %6781 = vmatpush3.bf16.msra.mxu1 %v6798_v17  ;;  %v471_v63 = vsel %vm7010_vm2, %v466_v54, %v470_v36  ;;  %v481_v0 = vsel %vm7010_vm2, %v476_v55, %v480_v39  ;;  %v486_v2 = vshll.u32 %v217_v47, 16  ;;  %v492_v12 = vshll.u32 %v218_v52, 16  ;;  %v7066_v39 = vld [vmem:[%s6979_s26 + $0x7c] sm:$0xf] }
  0x1e   : > { %6347 = vmatprep.subr.bf16.mxu0 %v6799_v33  ;;  %6774 = vmatprep.subr.bf16.mxu1 %v6799_v33  ;;  %v5397_v3 = vcombine.low %v471_v63, %v481_v0  ;;  %v298_v7 = vrot.slane %v297_v59, 4  ;;  %v307_v8 = vor.u32 %v306_v60, %v302_v56  ;;  %v312_v9 = vrot.slane %v310_v61, 5  ;;  %v6803_v42 = vld [vmem:[%s9667_s1 + $0xb8] sm:$0xff]   ;;  %v6805_v59 = vld [vmem:[%s9667_s1 + $0xb0] sm:$0xff]   ;;  %v7093_v0 = vld [vmem:[%s6979_s26 + $0x28] sm:$0xf] }
  0x1f   : > { %6353 = vmatprep.mubr.bf16.mxu0 %v5389_v53  ;;  %v485_v10 = vrot.slane %v483_v1, 4  ;;  %v488_v11 = vrot.slane %v486_v2, 5  ;;  %v496_v13 = vshrl.u32 %v218_v52, 16  ;;  %v502_v18 = vshll.u32 %v256_v57, 16  ;;  %v6804_v52 = vld [vmem:[%s9667_s1 + $0x30] sm:$0xff]  }
  0x20   : > { %v303_v16 = vsel %vm7010_vm2, %v298_v7, %v302_v56  ;;  %v308_v17 = vrot.slane %v307_v8, 4  ;;  %6369 = vmatprep.mubr.bf16.mxu1 %v5397_v3  ;;  %v494_v23 = vrot.slane %v492_v12, 5  ;;  %v315_v28 = vshrl.u32 %v7044_v14, 16  ;;  %v7084_v57 = vld [vmem:[%s6979_s26 + $0x24] sm:$0xf] }
  0x21   : > { %6348 = vmatpush3.bf16.msra.mxu0 %v6799_v33  ;;  %6782 = vmatpush3.bf16.msra.mxu1 %v6799_v33  ;;  %v489_v22 = vor.u32 %v488_v11, %v485_v10  ;;  %v498_v24 = vrot.slane %v496_v13, 4  ;;  %v504_v30 = vrot.slane %v502_v18, 5  ;;  %v318_v31 = vshll.u32 %v7044_v14, 16  ;;  %v7096_v8 = vld [vmem:[%s6979_s26 + $0x2c] sm:$0x1] }
  0x22   : > { %6349 = vmatprep.subr.bf16.mxu0 %v6800_v58  ;;  %6775 = vmatprep.subr.bf16.mxu1 %v6800_v58  ;;  %v313_v29 = vsel %vm7010_vm2, %v308_v17, %v312_v9  ;;  %v324_v33 = vshll.u32 %v7052_v19, 16  ;;  %v317_v38 = vrot.slane %v315_v28, 4  ;;  %v328_v45 = vshrl.u32 %v7052_v19, 16  ;;  %v7100_v13 = vld [vmem:[%s6979_s26 + $0x84] sm:$0xf] }
  0x23   : > { %v5390_v35 = vcombine.low %v303_v16, %v313_v29  ;;  %v490_v36 = vrot.slane %v489_v22, 4  ;;  %v499_v37 = vor.u32 %v498_v24, %v494_v23  ;;  %v320_v43 = vrot.slane %v318_v31, 5  ;;  %v7107_v22 = vld [vmem:[%s6979_s26 + $0x88] sm:$0xf] }
  0x24   : > { %v326_v44 = vrot.slane %v324_v33, 5  ;;  %v334_v46 = vshll.u32 %v7057_v25, 16  ;;  %v507_v50 = vshrl.u32 %v219_v34, 16  ;;  %v510_v51 = vshll.u32 %v219_v34, 16 }
  0x25   : > { %6350 = vmatpush3.bf16.msra.mxu0 %v6800_v58  ;;  %6783 = vmatpush3.bf16.msra.mxu1 %v6800_v58  ;;  %v495_v47 = vsel %vm7010_vm2, %v490_v36, %v494_v23  ;;  %v500_v48 = vrot.slane %v499_v37, 4  ;;  %v321_v53 = vor.u32 %v320_v43, %v317_v38  ;;  %v330_v54 = vrot.slane %v328_v45, 4  ;;  %v7116_v36 = vld [vmem:[%s6979_s26 + $0x8c] sm:$0x1] }
  0x26   : > { %6351 = vmatprep.subr.bf16.mxu0 %v6801_v15  ;;  %6776 = vmatprep.subr.bf16.mxu1 %v6801_v15  ;;  %v336_v55 = vrot.slane %v334_v46, 5  ;;  %v516_v56 = vshll.u32 %v7066_v39, 16  ;;  %v509_v60 = vrot.slane %v507_v50, 4  ;;  %v512_v61 = vrot.slane %v510_v51, 5  ;;  %v6807_v37 = vld [vmem:[%s9667_s1 + $0xa8] sm:$0xff]  }
  0x27   : > { %v505_v58 = vsel %vm7010_vm2, %v500_v48, %v504_v30  ;;  %v520_v63 = vshrl.u32 %v7066_v39, 16  ;;  %v322_v2 = vrot.slane %v321_v53, 4  ;;  %v331_v3 = vor.u32 %v330_v54, %v326_v44  ;;  %v6806_v30 = vld [vmem:[%s9667_s1 + $0x28] sm:$0xff]   ;;  %v7131_v53 = vld [vmem:[%s6979_s26 + $0x30] sm:$0xf] }
  0x28   : > { %v5398_v1 = vcombine.low %v495_v47, %v505_v58  ;;  %v518_v7 = vrot.slane %v516_v56, 5  ;;  %v513_v9 = vor.u32 %v512_v61, %v509_v60  ;;  %v526_v11 = vshll.u32 %v257_v49, 16  ;;  %v7140_v60 = vld [vmem:[%s6979_s26 + $0x34] sm:$0xf] }
  0x29   : > { %6352 = vmatpush3.bf16.msra.mxu0 %v6801_v15  ;;  %6784 = vmatpush3.bf16.msra.mxu1 %v6801_v15  ;;  %v522_v10 = vrot.slane %v520_v63, 4  ;;  %v339_v12 = vshrl.u32 %v7084_v57, 16  ;;  %v327_v15 = vsel %vm7010_vm2, %v322_v2, %v326_v44  ;;  %v332_v16 = vrot.slane %v331_v3, 4 }
  0x2a   : > { %6385 = vmatprep.subr.bf16.mxu1 %v6802_v41  ;;  %6433 = vmatprep.subr.bf16.mxu0 %v6803_v42  ;;  %v342_v17 = vshll.u32 %v7084_v57, 16  ;;  %v348_v18 = vshll.u32 %v7093_v0, 16  ;;  %v514_v23 = vrot.slane %v513_v9, 4  ;;  %v528_v28 = vrot.slane %v526_v11, 5 }
  0x2b   : > { %v523_v24 = vor.u32 %v522_v10, %v518_v7  ;;  %v341_v29 = vrot.slane %v339_v12, 4  ;;  %v337_v31 = vsel %vm7010_vm2, %v332_v16, %v336_v55  ;;  %v358_v43 = vshll.u32 %v7096_v8, 16  ;;  %v7148_v16 = vld [vmem:[%s6979_s26 + $0x38] sm:$0x1] }
  0x2c   : > { %6354 = vmatmul.mubr.bf16.vlgmr.msra.gmra.mxu0 %v5390_v35  ;;  %6370 = vmatmul.mubr.bf16.vlgmr.msra.gmra.mxu1 %v5398_v1  ;;  %v344_v33 = vrot.slane %v342_v17, 5  ;;  %v350_v34 = vrot.slane %v348_v18, 5  ;;  %v352_v35 = vshrl.u32 %v7093_v0, 16  ;;  %v5391_v38 = vcombine.low %v327_v15, %v337_v31  ;;  %v7152_v18 = vld [vmem:[%s6979_s26 + $0x90] sm:$0xf] }
  0x2d   : > { %6386 = vmatpush3.bf16.msra.mxu1 %v6802_v41  ;;  %6434 = vmatpush3.bf16.msra.mxu0 %v6803_v42  ;;  %v519_v41 = vsel %vm7010_vm2, %v514_v23, %v518_v7  ;;  %v524_v42 = vrot.slane %v523_v24, 4  ;;  %v531_v46 = vshrl.u32 %v7100_v13, 16  ;;  %v534_v47 = vshll.u32 %v7100_v13, 16  ;;  %v7158_v31 = vld [vmem:[%s6979_s26 + $0x94] sm:$0xf] }
  0x2e   : > { %6387 = vmatprep.subr.bf16.mxu1 %v6804_v52  ;;  %6435 = vmatprep.subr.bf16.mxu0 %v6805_v59  ;;  %v345_v44 = vor.u32 %v344_v33, %v341_v29  ;;  %v354_v45 = vrot.slane %v352_v35, 4  ;;  %v360_v49 = vrot.slane %v358_v43, 5  ;;  %v540_v50 = vshll.u32 %v7107_v22, 16 }
  0x2f   : > { %v529_v48 = vsel %vm7010_vm2, %v524_v42, %v528_v28  ;;  %v544_v51 = vshrl.u32 %v7107_v22, 16  ;;  %6357 = vmatprep.mubr.bf16.mxu0 %v5391_v38  ;;  %v533_v58 = vrot.slane %v531_v46, 4  ;;  %v536_v61 = vrot.slane %v534_v47, 5  ;;  %v6811_v38 = vld [vmem:[%s9667_s1 + $0x98] sm:$0xff]   ;;  %v6812_v46 = vld [vmem:[%s9667_s1 + $0x10] sm:$0xff]  }
  0x30   : > { %v5399_v54 = vcombine.low %v519_v41, %v529_v48  ;;  %v346_v55 = vrot.slane %v345_v44, 4  ;;  %v355_v56 = vor.u32 %v354_v45, %v350_v34  ;;  %v542_v63 = vrot.slane %v540_v50, 5  ;;  %v7168_v44 = vld [vmem:[%s6979_s26 + $0x98] sm:$0x1] }
  0x31   : > { %6388 = vmatpush3.bf16.msra.mxu1 %v6804_v52  ;;  %6436 = vmatpush3.bf16.msra.mxu0 %v6805_v59  ;;  %v6808_v52 = vld [vmem:[%s9667_s1 + $0x20] sm:$0xff]   ;;  %v546_v1 = vrot.slane %v544_v51, 4  ;;  %v550_v2 = vshll.u32 %v7116_v36, 16  ;;  %v363_v9 = vshrl.u32 %v7131_v53, 16  ;;  %v366_v10 = vshll.u32 %v7131_v53, 16 }
  0x32   : > { %6389 = vmatprep.subr.bf16.mxu1 %v6806_v30  ;;  %v6809_v59 = vld [vmem:[%s9667_s1 + $0xa0] sm:$0xff]   ;;  %6437 = vmatprep.subr.bf16.mxu0 %v6807_v37  ;;  %v351_v3 = vsel %vm7010_vm2, %v346_v55, %v350_v34  ;;  %v356_v7 = vrot.slane %v355_v56, 4  ;;  %v537_v11 = vor.u32 %v536_v61, %v533_v58  ;;  %v372_v17 = vshll.u32 %v7140_v60, 16  ;;  %v7181_v51 = vld [vmem:[%s6979_s26 + $0x3c] sm:$0xf]  ;;  %v6813_v55 = vld [vmem:[%s9667_s1 + $0x90] sm:$0xff]  }
  0x33   : > { %6373 = vmatprep.mubr.bf16.mxu1 %v5399_v54  ;;  %v547_v12 = vor.u32 %v546_v1, %v542_v63  ;;  %v552_v15 = vrot.slane %v550_v2, 5  ;;  %v365_v24 = vrot.slane %v363_v9, 4  ;;  %v368_v28 = vrot.slane %v366_v10, 5  ;;  %v7184_v54 = vld [vmem:[%s6979_s26 + $0x40] sm:$0xf] }
  0x34   : > { %v361_v23 = vsel %vm7010_vm2, %v356_v7, %v360_v49  ;;  %v376_v29 = vshrl.u32 %v7140_v60, 16  ;;  %v538_v34 = vrot.slane %v537_v11, 4  ;;  %v382_v43 = vshll.u32 %v7148_v16, 16  ;;  %v7191_v7 = vld [vmem:[%s6979_s26 + $0x44] sm:$0x1] }
  0x35   : > { %6390 = vmatpush3.bf16.msra.mxu1 %v6806_v30  ;;  %6438 = vmatpush3.bf16.msra.mxu0 %v6807_v37  ;;  %v6810_v30 = vld [vmem:[%s9667_s1 + $0x18] sm:$0xff]   ;;  %v5392_v33 = vcombine.low %v351_v3, %v361_v23  ;;  %v548_v35 = vrot.slane %v547_v12, 4  ;;  %v374_v37 = vrot.slane %v372_v17, 5  ;;  %v369_v41 = vor.u32 %v368_v28, %v365_v24  ;;  %v7203_v28 = vld [vmem:[%s6979_s26 + $0xa0] sm:$0xf] }
  0x36   : > { %6391 = vmatprep.subr.bf16.mxu1 %v6808_v52  ;;  %6439 = vmatprep.subr.bf16.mxu0 %v6809_v59  ;;  %v378_v42 = vrot.slane %v376_v29, 4  ;;  %v555_v45 = vshrl.u32 %v7152_v18, 16  ;;  %v543_v47 = vsel %vm7010_vm2, %v538_v34, %v542_v63  ;;  %v558_v49 = vshll.u32 %v7152_v18, 16  ;;  %v7194_v9 = vld [vmem:[%s6979_s26 + $0x9c] sm:$0xf]  ;;  %v6814_v29 = vld [vmem:[%s9667_s1 + $0x8] sm:$0xff]  }
  0x37   : > { %6358 = vmatmul.mubr.bf16.gmra.mxu0 %v5392_v33  ;;  %v553_v48 = vsel %vm7010_vm2, %v548_v35, %v552_v15  ;;  %v564_v50 = vshll.u32 %v7158_v31, 16  ;;  %v370_v58 = vrot.slane %v369_v41, 4  ;;  %v384_v63 = vrot.slane %v382_v43, 5  ;;  %v6815_v41 = vld [vmem:[%s9667_s1 + $0x88] sm:$0xff]  }
  0x38   : > { %v5400_v56 = vcombine.low %v543_v47, %v553_v48  ;;  %v379_v61 = vor.u32 %v378_v42, %v374_v37  ;;  %v560_v1 = vrot.slane %v558_v49, 5  ;;  %v568_v3 = vshrl.u32 %v7158_v31, 16 }
  0x39   : > { %6392 = vmatpush3.bf16.msra.mxu1 %v6808_v52  ;;  %6440 = vmatpush3.bf16.msra.mxu0 %v6809_v59  ;;  %v557_v52 = vrot.slane %v555_v45, 4  ;;  %v566_v2 = vrot.slane %v564_v50, 5  ;;  %v375_v10 = vsel %vm7010_vm2, %v370_v58, %v374_v37  ;;  %v574_v11 = vshll.u32 %v7168_v44, 16 }
  0x3a   : > { %6393 = vmatprep.subr.bf16.mxu1 %v6810_v30  ;;  %6441 = vmatprep.subr.bf16.mxu0 %v6811_v38  ;;  %v380_v59 = vrot.slane %v379_v61, 4  ;;  %v387_v12 = vshrl.u32 %v7181_v51, 16  ;;  %v570_v17 = vrot.slane %v568_v3, 4  ;;  %v390_v23 = vshll.u32 %v7181_v51, 16  ;;  %v7219_v61 = vld [vmem:[%s6979_s26 + $0xa4] sm:$0x1] }
  0x3b   : > { %6374 = vmatmul.mubr.bf16.gmra.mxu1 %v5400_v56  ;;  %v561_v15 = vor.u32 %v560_v1, %v557_v52  ;;  %v396_v24 = vshll.u32 %v7184_v54, 16  ;;  %v576_v34 = vrot.slane %v574_v11, 5  ;;  %v400_v37 = vshrl.u32 %v7184_v54, 16 }
  0x3c   : > { %v385_v33 = vsel %vm7010_vm2, %v380_v59, %v384_v63  ;;  %v389_v35 = vrot.slane %v387_v12, 4  ;;  %v571_v43 = vor.u32 %v570_v17, %v566_v2  ;;  %v392_v45 = vrot.slane %v390_v23, 5  ;;  %v7224_v59 = vld [vmem:[%s6979_s26 + $0x48] sm:$0xf]  ;;  %v7233_v17 = vld [vmem:[%s6979_s26 + $0x4c] sm:$0xf] }
  0x3d   : > { %6394 = vmatpush3.bf16.msra.mxu1 %v6810_v30  ;;  %6442 = vmatpush3.bf16.msra.mxu0 %v6811_v38  ;;  %v5393_v42 = vcombine.low %v375_v10, %v385_v33  ;;  %v562_v30 = vrot.slane %v561_v15, 4  ;;  %v398_v47 = vrot.slane %v396_v24, 5  ;;  %v402_v48 = vrot.slane %v400_v37, 4 }
  0x3e   : > { %6395 = vmatprep.subr.bf16.mxu1 %v6812_v46  ;;  %6443 = vmatprep.subr.bf16.mxu0 %v6813_v55  ;;  %v406_v49 = vshll.u32 %v7191_v7, 16  ;;  %v579_v50 = vshrl.u32 %v7194_v9, 16  ;;  %v572_v56 = vrot.slane %v571_v43, 4  ;;  %v393_v58 = vor.u32 %v392_v45, %v389_v35 }
  0x3f   : > { %6361 = vmatprep.mubr.bf16.mxu0 %v5393_v42  ;;  %v567_v38 = vsel %vm7010_vm2, %v562_v30, %v566_v2  ;;  %v582_v63 = vshll.u32 %v7194_v9, 16  ;;  %v403_v52 = vor.u32 %v402_v48, %v398_v47  ;;  %v588_v10 = vshll.u32 %v7203_v28, 16  ;;  %v6816_v2 = vld [vmem:[%s9667_s1] sm:$0xff]   ;;  %v7242_v30 = vld [vmem:[%s6979_s26 + $0x50] sm:$0x1] }
  0x40   : > { %v408_v1 = vrot.slane %v406_v49, 5  ;;  %v581_v3 = vrot.slane %v579_v50, 4  ;;  %v577_v11 = vsel %vm7010_vm2, %v572_v56, %v576_v34  ;;  %v394_v12 = vrot.slane %v393_v58, 4 }
  0x41   : > { %6396 = vmatpush3.bf16.msra.mxu1 %v6812_v46  ;;  %6444 = vmatpush3.bf16.msra.mxu0 %v6813_v55  ;;  %v584_v15 = vrot.slane %v582_v63, 5  ;;  %v592_v46 = vshrl.u32 %v7203_v28, 16  ;;  %v6817_v55 = vld [vmem:[%s9667_s1 + $0x80] sm:$0xff]   ;;  %v5401_v23 = vcombine.low %v567_v38, %v577_v11  ;;  %v404_v24 = vrot.slane %v403_v52, 4  ;;  %v7250_v38 = vld [vmem:[%s6979_s26 + $0xa8] sm:$0xf] }
  0x42   : > { %6397 = vmatprep.subr.bf16.mxu1 %v6814_v29  ;;  %6445 = vmatprep.subr.bf16.mxu0 %v6815_v41  ;;  %v590_v33 = vrot.slane %v588_v10, 5  ;;  %v598_v35 = vshll.u32 %v7219_v61, 16  ;;  %v399_v34 = vsel %vm7010_vm2, %v394_v12, %v398_v47  ;;  %v411_v43 = vshrl.u32 %v7224_v59, 16  ;;  %9697 = vst [vmem:[#allocation2_spill] sm:$0xff] %v7250_v38  ;;  %v7255_v47 = vld [vmem:[%s9667_s1 + $0xf8] sm:$0xff]  }
  0x43   : > { %v585_v37 = vor.u32 %v584_v15, %v581_v3  ;;  %v594_v42 = vrot.slane %v592_v46, 4  ;;  %6377 = vmatprep.mubr.bf16.mxu1 %v5401_v23  ;;  %v409_v45 = vsel %vm7010_vm2, %v404_v24, %v408_v1  ;;  %v414_v49 = vshll.u32 %v7224_v59, 16  ;;  %v7258_v52 = vld [vmem:[%s6979_s26 + $0xac] sm:$0xf]  ;;  %v7263_v1 = vld [vmem:[%s9667_s1 + $0x138] sm:$0xff]  }
  0x44   : > { %v600_v48 = vrot.slane %v598_v35, 5  ;;  %v420_v50 = vshll.u32 %v7233_v17, 16  ;;  %v413_v63 = vrot.slane %v411_v43, 4  ;;  %v424_v10 = vshrl.u32 %v7233_v17, 16  ;;  %v7268_v12 = vld [vmem:[%s6979_s26 + $0xb0] sm:$0x1] }
  0x45   : > { %6398 = vmatpush3.bf16.msra.mxu1 %v6814_v29  ;;  %6446 = vmatpush3.bf16.msra.mxu0 %v6815_v41  ;;  %v5394_v29 = vcombine.low %v399_v34, %v409_v45  ;;  %v586_v56 = vrot.slane %v585_v37, 4  ;;  %v595_v58 = vor.u32 %v594_v42, %v590_v33  ;;  %v416_v41 = vrot.slane %v414_v49, 5  ;;  %9698 = vst [vmem:[#allocation3_spill] sm:$0xff] %v7268_v12  ;;  %v7271_v15 = vld [vmem:[%s6979_s26 + $0x54] sm:$0xf] }
  0x46   : > { %6399 = vmatprep.subr.bf16.mxu1 %v6816_v2  ;;  %6447 = vmatprep.subr.bf16.mxu0 %v6817_v55  ;;  %v422_v3 = vrot.slane %v420_v50, 5  ;;  %v430_v11 = vshll.u32 %v7242_v30, 16  ;;  %v603_v24 = vshrl.u32 %v7250_v38, 16  ;;  %v606_v35 = vshll.u32 %v7250_v38, 16  ;;  %v7278_v34 = vld [vmem:[%s6979_s26 + $0x58] sm:$0xf] }
  0x47   : > { %6362 = vmatmul.mubr.bf16.gmra.mxu0 %v5394_v29  ;;  %v591_v46 = vsel %vm7010_vm2, %v586_v56, %v590_v33  ;;  %v596_v23 = vrot.slane %v595_v58, 4  ;;  %v417_v37 = vor.u32 %v416_v41, %v413_v63  ;;  %v426_v42 = vrot.slane %v424_v10, 4 }
  0x48   : > { %v432_v43 = vrot.slane %v430_v11, 5  ;;  %v612_v45 = vshll.u32 %v7258_v52, 16  ;;  %v605_v49 = vrot.slane %v603_v24, 4  ;;  %v608_v50 = vrot.slane %v606_v35, 5 }
  0x49   : > { %6400 = vmatpush3.bf16.msra.mxu1 %v6816_v2  ;;  %6448 = vmatpush3.bf16.msra.mxu0 %v6817_v55  ;;  %v601_v33 = vsel %vm7010_vm2, %v596_v23, %v600_v48  ;;  %v616_v29 = vshrl.u32 %v7258_v52, 16  ;;  %v418_v56 = vrot.slane %v417_v37, 4  ;;  %v427_v58 = vor.u32 %v426_v42, %v422_v3  ;;  %v7287_v55 = vld [vmem:[%s6979_s26 + $0x5c] sm:$0x1]  ;;  %v7292_v48 = vld [vmem:[%s6979_s26 + $0xb4] sm:$0xf] }
  0x4a   : > { %6481 = vmatprep.subr.bf16.mxu1 %v7255_v47  ;;  %6529 = vmatprep.subr.bf16.mxu0 %v7263_v1  ;;  %v5402_v2 = vcombine.low %v591_v46, %v601_v33  ;;  %v614_v63 = vrot.slane %v612_v45, 5  ;;  %v609_v41 = vor.u32 %v608_v50, %v605_v49  ;;  %v622_v11 = vshll.u32 %v7268_v12, 16  ;;  %9699 = vst [vmem:[#allocation4_spill] sm:$0xff] %v7292_v48  ;;  %v7299_v37 = vld [vmem:[%s6979_s26 + $0xb8] sm:$0xf] }
  0x4b   : > { %v618_v10 = vrot.slane %v616_v29, 4  ;;  %v435_v21 = vshrl.u32 %v7271_v15, 16  ;;  %v423_v23 = vsel %vm7010_vm2, %v418_v56, %v422_v3  ;;  %v428_v24 = vrot.slane %v427_v58, 4  ;;  %9700 = vst [vmem:[#allocation5_spill] sm:$0xff] %v7299_v37  ;;  %v7305_v3 = vld [vmem:[%s6979_s26 + $0xbc] sm:$0x1] }
  0x4c   : > { %6378 = vmatmul.mubr.bf16.gmra.mxu1 %v5402_v2  ;;  %v438_v46 = vshll.u32 %v7271_v15, 16  ;;  %v444_v35 = vshll.u32 %v7278_v34, 16  ;;  %v610_v42 = vrot.slane %v609_v41, 4  ;;  %v624_v33 = vrot.slane %v622_v11, 5  ;;  %9701 = vst [vmem:[#allocation6_spill] sm:$0xff] %v7305_v3 }
  0x4d   : > { %v619_v45 = vor.u32 %v618_v10, %v614_v63  ;;  %v437_v49 = vrot.slane %v435_v21, 4  ;;  %v433_v50 = vsel %vm7010_vm2, %v428_v24, %v432_v43  ;;  %v448_v62 = vshrl.u32 %v7278_v34, 16  ;;  %v1245_v10 = vld [vmem:[%s6979_s26] sm:$0xe] }
  0x4e   : > { %v440_v29 = vrot.slane %v438_v46, 5  ;;  %v446_v2 = vrot.slane %v444_v35, 5  ;;  %v5395_v56 = vcombine.low %v423_v23, %v433_v50  ;;  %v615_v58 = vsel %vm7010_vm2, %v610_v42, %v614_v63 }
  0x4f   : > { %v620_v20 = vrot.slane %v619_v45, 4  ;;  %v454_v41 = vshll.u32 %v7287_v55, 16  ;;  %v450_v21 = vrot.slane %v448_v62, 4  ;;  %v627_v12 = vshrl.u32 %v7292_v48, 16 }
  0x50   : > { %v441_v11 = vor.u32 %v440_v29, %v437_v49  ;;  %v630_v43 = vshll.u32 %v7292_v48, 16  ;;  %6365 = vmatprep.mubr.bf16.mxu0 %v5395_v56  ;;  %v636_v46 = vshll.u32 %v7299_v37, 16  ;;  %v640_v63 = vshrl.u32 %v7299_v37, 16  ;;  %v1246_v49 = vld [vmem:[%s6979_s26 + $0xc] sm:$0xe] }
  0x51   : > { %v625_v24 = vsel %vm7010_vm2, %v620_v20, %v624_v33  ;;  %v456_v23 = vrot.slane %v454_v41, 5  ;;  %v451_v45 = vor.u32 %v450_v21, %v446_v2  ;;  %v629_v50 = vrot.slane %v627_v12, 4  ;;  %v1247_v20 = vld [vmem:[%s6979_s26 + $0x18] sm:$0xe] }
  0x52   : > { %v5403_v35 = vcombine.low %v615_v58, %v625_v24  ;;  %v442_v42 = vrot.slane %v441_v11, 4  ;;  %v632_v62 = vrot.slane %v630_v43, 5  ;;  %v638_v29 = vrot.slane %v636_v46, 5 }
  0x53   : > { %v642_v38 = vrot.slane %v640_v63, 4  ;;  %v646_v48 = vshll.u32 %v7305_v3, 16  ;;  %v452_v58 = vrot.slane %v451_v45, 4  ;;  %v5437_v41 = vrot.slane %v1245_v10, 9 }
  0x54   : > { %6381 = vmatprep.mubr.bf16.mxu1 %v5403_v35  ;;  %v447_v33 = vsel %vm7010_vm2, %v442_v42, %v446_v2  ;;  %v1298_v12 = vrot.slane %v6988_v5, 5  ;;  %v633_v11 = vor.u32 %v632_v62, %v629_v50  ;;  %v5438_v24 = vrot.slane %v1246_v49, 9 }
  0x55   : > { %v643_v21 = vor.u32 %v642_v38, %v638_v29  ;;  %v648_v43 = vrot.slane %v646_v48, 5  ;;  %v457_v46 = vsel %vm7010_vm2, %v452_v58, %v456_v23  ;;  %v1305_v35 = vrot.slane %v7015_v32, 5 }
  0x56   : > { %v1299_v63 = vsel %vm7321_vm5, %v5437_v41, %v1298_v12  ;;  %v1300_v3 = vrot.slane %v1298_v12, 4  ;;  %v5396_v37 = vcombine.low %v447_v33, %v457_v46  ;;  %v634_v2 = vrot.slane %v633_v11, 4  ;;  %v1249_v12 = vld [vmem:[%s6979_s26 + $0x30] sm:$0xe]  ;;  %v1251_v46 = vld [vmem:[%s6979_s26 + $0x48] sm:$0xe] }
  0x57   : > { %v644_v42 = vrot.slane %v643_v21, 4  ;;  %v5413_v10 = vcombine.low %v6985_v4, %v6988_v5  ;;  %v9704_v38 = vrot.slane %v6991_v6, 5  ;;  %v1307_v45 = vrot.slane %v1305_v35, 4 }
  0x58   : > { %v5439_v23 = vrot.slane %v1247_v20, 9  ;;  %6366 = vmatmul.mubr.bf16.gmra.mxu0 %v5396_v37  ;;  %v639_v50 = vsel %vm7010_vm2, %v634_v2, %v638_v29  ;;  %v1312_v33 = vrot.slane %v7052_v19, 5  ;;  %v1306_v4 = vsel %vm7321_vm5, %v5438_v24, %v1305_v35  ;;  %v1250_v24 = vld [vmem:[%s6979_s26 + $0x3c] sm:$0xe] }
  0x59   : > { %v1302_v48 = vsel %vm7321_vm5, %v1300_v3, %v9704_v38  ;;  %v649_v49 = vsel %vm7010_vm2, %v644_v42, %v648_v43  ;;  %v9705_v5 = vrot.slane %v7021_v40, 5  ;;  %v1315_v37 = vrot.slane %v7057_v25, 5  ;;  %v1248_v3 = vld [vmem:[%s6979_s26 + $0x24] sm:$0xe]  ;;  %v6825_v25 = vld [vmem:[%s9667_s1 + $0x130] sm:$0xff]  }
  0x5a   : > { %v5469_v62 = vcombine.low %v1299_v63, %v1302_v48  ;;  %v5404_v58 = vcombine.low %v639_v50, %v649_v49  ;;  %v1313_v29 = vsel %vm7321_vm5, %v5439_v23, %v1312_v33  ;;  %v1314_v20 = vrot.slane %v1312_v33, 4  ;;  %v6824_v23 = vld [vmem:[%s9667_s1 + $0xf0] sm:$0xff]  }
  0x5b   : > { %v1309_v6 = vsel %vm7321_vm5, %v1307_v45, %v9705_v5  ;;  %v1319_v41 = vrot.slane %v7093_v0, 5  ;;  %v5440_v21 = vrot.slane %v1248_v3, 9  ;;  %v1326_v43 = vrot.slane %v7140_v60, 5  ;;  %v7396_v3 = vld [vmem:[%s6979_s26 + $0x68] sm:$0x1] }
  0x5c   : > { %6449 = vmatprep.mubr.bf16.mxu0 %v5469_v62  ;;  %6382 = vmatmul.mubr.bf16.gmra.mxu1 %v5404_v58  ;;  %v5470_v11 = vcombine.low %v1306_v4, %v1309_v6  ;;  %v1316_v40 = vsel %vm7321_vm5, %v1314_v20, %v1315_v37  ;;  %v1322_v2 = vrot.slane %v7096_v8, 5  ;;  %v5441_v42 = vrot.slane %v1249_v12, 9  ;;  %v1252_v37 = vld [vmem:[%s6979_s26 + $0x54] sm:$0xe]  ;;  %v7420_v12 = vld [vmem:[%s6979_s26 + $0x60] sm:$0xe] }
  0x5d   : > { %6401 = vmatprep.mubr.bf16.mxu1 %v5413_v10  ;;  %v5471_v63 = vcombine.low %v1313_v29, %v1316_v40  ;;  %v1321_v35 = vrot.slane %v1319_v41, 4  ;;  %v1328_v38 = vrot.slane %v1326_v43, 4  ;;  %v1329_v10 = vrot.slane %v7148_v16, 5 }
  0x5e   : > { %v1333_v48 = vrot.slane %v7184_v54, 5  ;;  %v5415_v45 = vcombine.low %v7044_v14, %v7052_v19  ;;  %v1340_v50 = vrot.slane %v7233_v17, 5  ;;  %v5442_v49 = vrot.slane %v1250_v24, 9  ;;  %v6833_v24 = vld [vmem:[%s9667_s1 + $0x120] sm:$0xff]  }
  0x5f   : > { %v1336_v8 = vrot.slane %v7191_v7, 5  ;;  %v5443_v33 = vrot.slane %v1251_v46, 9  ;;  %v1320_v14 = vsel %vm7321_vm5, %v5440_v21, %v1319_v41  ;;  %v1323_v19 = vsel %vm7321_vm5, %v1321_v35, %v1322_v2  ;;  %v7432_v46 = vld [vmem:[%s6979_s26 + $0x78] sm:$0xe]  ;;  %v6832_v2 = vld [vmem:[%s9667_s1 + $0xe0] sm:$0xff]  }
  0x60   : > { %6450 = vmatmul.mubr.bf16.vlgmr.msra.gmra.mxu0 %v5470_v11  ;;  %v1335_v62 = vrot.slane %v1333_v48, 4  ;;  %v1342_v16 = vrot.slane %v1340_v50, 4  ;;  %v1343_v58 = vrot.slane %v7242_v30, 5  ;;  %v1327_v4 = vsel %vm7321_vm5, %v5441_v42, %v1326_v43  ;;  %v7423_v11 = vld [vmem:[%s6979_s26 + $0x6c] sm:$0xe] }
  0x61   : > { %6530 = vmatpush3.bf16.msra.mxu0 %v7263_v1  ;;  %6453 = vmatprep.mubr.bf16.mxu0 %v5471_v63  ;;  %v1330_v7 = vsel %vm7321_vm5, %v1328_v38, %v1329_v10  ;;  %v6829_v1 = vld [vmem:[%s9667_s1 + $0x128] sm:$0xff]   ;;  %v1347_v5 = vrot.slane %v7278_v34, 5  ;;  %v9706_v6 = vcombine.low %v7006_v26, %v7015_v32  ;;  %v5416_v30 = vcombine.low %v7084_v57, %v7093_v0  ;;  %v1256_v63 = vld [vmem:[%s6979_s26 + $0x84] sm:$0xe]  ;;  %v1257_v42 = vld [vmem:[%s6979_s26 + $0x90] sm:$0xe] }
  0x62   : > { %6531 = vmatprep.subr.bf16.mxu0 %v6825_v25  ;;  %v1357_v29 = vrot.slane %v7396_v3, 5  ;;  %v5472_v20 = vcombine.low %v1320_v14, %v1323_v19  ;;  %v7402_v41 = vsel %vm7321_vm5, %v5442_v49, %v1333_v48  ;;  %v7406_v26 = vsel %vm7321_vm5, %v1335_v62, %v1336_v8  ;;  %v6828_v32 = vld [vmem:[%s9667_s1 + $0xe8] sm:$0xff]   ;;  %v7451_v48 = vld [vmem:[%s6979_s26 + $0x64] sm:$0xf]  ;;  %v1258_v49 = vld [vmem:[%s6979_s26 + $0x9c] sm:$0xe] }
  0x63   : > { %v5473_v57 = vcombine.low %v1327_v4, %v1330_v7  ;;  %v7413_v0 = vsel %vm7321_vm5, %v5443_v33, %v1340_v50  ;;  %v5417_v40 = vcombine.low %v7131_v53, %v7140_v60  ;;  %v5444_v21 = vrot.slane %v1252_v37, 9  ;;  %v7473_v4 = vld [vmem:[%s6979_s26 + $0x74] sm:$0x1] }
  0x64   : > { %6402 = vmatmul.mubr.bf16.vlgmr.msra.gmra.mxu1 %v9706_v6  ;;  %v1350_v43 = vrot.slane %v7287_v55, 5  ;;  %v5418_v35 = vcombine.low %v7181_v51, %v7184_v54  ;;  %v5474_v53 = vcombine.low %v7402_v41, %v7406_v26  ;;  %v5419_v60 = vcombine.low %v7224_v59, %v7233_v17  ;;  %v6918_v54 = vld [vmem:[%s6979_s26 + $0x80] sm:$0x1] }
  0x65   : > { %6482 = vmatpush3.bf16.msra.mxu1 %v7255_v47  ;;  %6405 = vmatprep.mubr.bf16.mxu1 %v5415_v45  ;;  %v7417_v47 = vsel %vm7321_vm5, %v1342_v16, %v1343_v58  ;;  %v5420_v55 = vcombine.low %v7271_v15, %v7278_v34  ;;  %v5445_v10 = vrot.slane %v7420_v12, 9  ;;  %v1354_v45 = vrot.slane %v7451_v48, 5  ;;  %v7469_v16 = vld [vmem:[%s6979_s26 + $0x70] sm:$0xf]  ;;  %v6919_v17 = vld [vmem:[%s6979_s26 + $0x60] sm:$0xf] }
  0x66   : > { %6483 = vmatprep.subr.bf16.mxu1 %v6824_v23  ;;  %6532 = vmatpush3.bf16.msra.mxu0 %v6825_v25  ;;  %v1349_v25 = vrot.slane %v1347_v5, 4  ;;  %v5475_v38 = vcombine.low %v7413_v0, %v7417_v47  ;;  %v5446_v62 = vrot.slane %v7423_v11, 9  ;;  %v1375_v8 = vrot.slane %v7107_v22, 5  ;;  %v1259_v0 = vld [vmem:[%s6979_s26 + $0xa8] sm:$0xe]  ;;  %v7653_v15 = vld [vmem:[%s9667_s1 + $0x1b8] sm:$0xff]  }
  0x67   : > { %6533 = vmatprep.subr.bf16.mxu0 %v6829_v1  ;;  %v1378_v33 = vrot.slane %v7116_v36, 5  ;;  %v7462_v14 = vsel %vm7321_vm5, %v5444_v21, %v1347_v5  ;;  %v1361_v58 = vrot.slane %v7469_v16, 5  ;;  %v1364_v7 = vrot.slane %v7473_v4, 5  ;;  %v6836_v36 = vld [vmem:[%s9667_s1 + $0xd8] sm:$0xff]  }
  0x68   : > { %6454 = vmatmul.mubr.bf16.gmra.mxu0 %v5472_v20  ;;  %v7466_v19 = vsel %vm7321_vm5, %v1349_v25, %v1350_v43  ;;  %v5447_v5 = vrot.slane %v7432_v46, 9  ;;  %v1377_v37 = vrot.slane %v1375_v8, 4  ;;  %v5449_v41 = vrot.slane %v1257_v42, 9  ;;  %v5565_v42 = vld [vmem:[%s6979_s26 + $0xc] sm:$0xf] }
  0x69   : > { %6484 = vmatpush3.bf16.msra.mxu1 %v6824_v23  ;;  %6457 = vmatprep.mubr.bf16.mxu0 %v5473_v57  ;;  %v5448_v23 = vrot.slane %v1256_v63, 9  ;;  %v1382_v26 = vrot.slane %v7158_v31, 5  ;;  %v1385_v57 = vrot.slane %v7168_v44, 5  ;;  %v1368_v47 = vrot.slane %v7066_v39, 5 }
  0x6a   : > { %6485 = vmatprep.subr.bf16.mxu1 %v6828_v32  ;;  %6534 = vmatpush3.bf16.msra.mxu0 %v6829_v1  ;;  %v6837_v1 = vld [vmem:[%s9667_s1 + $0x118] sm:$0xff]   ;;  %v7497_v21 = vsel %vm7321_vm5, %v1377_v37, %v1378_v33  ;;  %v1389_v63 = vrot.slane %v7203_v28, 5  ;;  %v5451_v33 = vrot.slane %v1259_v0, 9  ;;  %v1396_v37 = vrot.slane %v7258_v52, 5  ;;  %v6840_v0 = vld [vmem:[%s9667_s1 + $0xd0] sm:$0xff]  }
  0x6b   : > { %6535 = vmatprep.subr.bf16.mxu0 %v6833_v24  ;;  %v7485_v6 = vsel %vm7321_vm5, %v5448_v23, %v1375_v8  ;;  %v7505_v44 = vsel %vm7321_vm5, %v5449_v41, %v1382_v26  ;;  %v1384_v43 = vrot.slane %v1382_v26, 4  ;;  %v6841_v23 = vld [vmem:[%s9667_s1 + $0x110] sm:$0xff]   ;;  %v1392_v8 = vrot.slane %v7219_v61, 5  ;;  %v9708_v61 = vld [vmem:[#allocation3_spill] sm:$0xff] }
  0x6c   : > { %6406 = vmatmul.mubr.bf16.gmra.mxu1 %v5416_v30  ;;  %v1356_v30 = vrot.slane %v1354_v45, 4  ;;  %v1391_v20 = vrot.slane %v1389_v63, 4  ;;  %v1399_v50 = vrot.slane %v9708_v61, 5  ;;  %v1355_v61 = vsel %vm7321_vm5, %v5445_v10, %v1354_v45  ;;  %v5568_v45 = vld [vmem:[%s6979_s26 + $0x18] sm:$0xf] }
  0x6d   : > { %6409 = vmatprep.mubr.bf16.mxu1 %v5417_v40  ;;  %6486 = vmatpush3.bf16.msra.mxu1 %v6828_v32  ;;  %v5450_v40 = vrot.slane %v1258_v49, 9  ;;  %v7517_v32 = vld [vmem:[%s6979_s26 + $0x10] sm:$0xf]  ;;  %v7521_v41 = vsel %vm7321_vm5, %v1384_v43, %v1385_v57  ;;  %v1398_v57 = vrot.slane %v1396_v37, 4  ;;  %v2166_v12 = vshrl.u32 %v5565_v42, 16 }
  0x6e   : > { %6487 = vmatprep.subr.bf16.mxu1 %v6832_v2  ;;  %6536 = vmatpush3.bf16.msra.mxu0 %v6833_v24  ;;  %v9707_v24 = vld [vmem:[#allocation2_spill] sm:$0xff]  ;;  %v9710_v43 = vld [vmem:[#allocation4_spill] sm:$0xff]  ;;  %v2169_v10 = vshll.u32 %v5565_v42, 16  ;;  %v1363_v51 = vrot.slane %v1361_v58, 4  ;;  %v2175_v59 = vshll.u32 %v7517_v32, 16  ;;  %v1369_v4 = vsel %vm7321_vm5, %v5447_v5, %v1368_v47 }
  0x6f   : > { %6537 = vmatprep.subr.bf16.mxu0 %v6837_v1  ;;  %v7525_v26 = vsel %vm7321_vm5, %v5450_v40, %v1389_v63  ;;  %v9709_v40 = vld [vmem:[#allocation5_spill] sm:$0xff]  ;;  %v7591_v42 = vld [vmem:[%s6979_s26 + $0x14] sm:$0x1]  ;;  %v2168_v63 = vrot.slane %v2166_v12, 4  ;;  %v9712_v5 = vld [vmem:[#allocation6_spill] sm:$0xff] }
  0x70   : > { %6458 = vmatmul.mubr.bf16.gmra.mxu0 %v5474_v53  ;;  %v2171_v49 = vrot.slane %v2169_v10, 5  ;;  %v5571_v53 = vld [vmem:[%s6979_s26 + $0x24] sm:$0xf]  ;;  %v1365_v11 = vsel %vm7321_vm5, %v1363_v51, %v1364_v7 }
  0x71   : > { %6488 = vmatpush3.bf16.msra.mxu1 %v6832_v2  ;;  %6461 = vmatprep.mubr.bf16.mxu0 %v5475_v38  ;;  %v7535_v2 = vsel %vm7321_vm5, %v5451_v33, %v1396_v37  ;;  %v5476_v38 = vcombine.low %v7462_v14, %v7466_v19  ;;  %v1358_v33 = vsel %vm7321_vm5, %v1356_v30, %v1357_v29  ;;  %v6845_v14 = vld [vmem:[%s9667_s1 + $0x108] sm:$0xff]   ;;  %v6849_v30 = vld [vmem:[%s9667_s1 + $0x100] sm:$0xff]   ;;  %v7610_v19 = vrot.slane %v2175_v59, 5 }
  0x72   : > { %6489 = vmatprep.subr.bf16.mxu1 %v6836_v36  ;;  %6538 = vmatpush3.bf16.msra.mxu0 %v6837_v1  ;;  %v7553_v37 = vsel %vm7321_vm5, %v1391_v20, %v1392_v8  ;;  %v7565_v29 = vsel %vm7321_vm5, %v1398_v57, %v1399_v50  ;;  %v6844_v50 = vld [vmem:[%s9667_s1 + $0xc8] sm:$0xff]   ;;  %v7580_v1 = vld [vmem:[%s6979_s26 + $0xb4] sm:$0xe]  ;;  %v5477_v20 = vcombine.low %v1355_v61, %v1358_v33  ;;  %v2179_v8 = vshrl.u32 %v7517_v32, 16  ;;  %v7608_v61 = vld [vmem:[%s6979_s26 + $0x1c] sm:$0xf] }
  0x73   : > { %6539 = vmatprep.subr.bf16.mxu0 %v6841_v23  ;;  %v7595_v57 = vld [vmem:[%s6979_s26 + $0x6c] sm:$0xf]  ;;  %v2190_v33 = vshrl.u32 %v5568_v45, 16  ;;  %v2199_v51 = vshll.u32 %v7608_v61, 16  ;;  %v2203_v39 = vshrl.u32 %v7608_v61, 16  ;;  %v2214_v59 = vshrl.u32 %v5571_v53, 16 }
  0x74   : > { %6410 = vmatmul.mubr.bf16.gmra.mxu1 %v5418_v35  ;;  %v1371_v35 = vrot.slane %v6918_v54, 5  ;;  %v5422_v54 = vcombine.low %v7595_v57, %v7469_v16  ;;  %v2181_v3 = vrot.slane %v2179_v8, 4  ;;  %v2217_v46 = vshll.u32 %v5571_v53, 16  ;;  %v6922_v8 = vld [vmem:[%s6979_s26 + $0x7c] sm:$0xf] }
  0x75   : > { %6413 = vmatprep.mubr.bf16.mxu1 %v5419_v60  ;;  %6490 = vmatpush3.bf16.msra.mxu1 %v6836_v36  ;;  %v5421_v60 = vcombine.low %v6919_v17, %v7451_v48  ;;  %v1370_v36 = vrot.slane %v1368_v47, 4  ;;  %v7605_v48 = vsel %vm7321_vm5, %v5446_v62, %v1361_v58  ;;  %v2193_v17 = vshll.u32 %v5568_v45, 16  ;;  %v6848_v58 = vld [vmem:[%s9667_s1 + $0xc0] sm:$0xff]   ;;  %v7635_v45 = vld [vmem:[%s6979_s26 + $0x28] sm:$0xf] }
  0x76   : > { %6491 = vmatprep.subr.bf16.mxu1 %v6840_v0  ;;  %6540 = vmatpush3.bf16.msra.mxu0 %v6841_v23  ;;  %v9680_v62 = vrot.slane %v9709_v40, 5  ;;  %v7622_v23 = vld [vmem:[%s6979_s26 + $0x20] sm:$0x1]  ;;  %v2192_v12 = vrot.slane %v2190_v33, 4  ;;  %9711 = vst [vmem:[#allocation2_spill] sm:$0xff] %v7635_v45  ;;  %v5478_v34 = vcombine.low %v7605_v48, %v1365_v11  ;;  %v2223_v53 = vshll.u32 %v7635_v45, 16 }
  0x77   : > { %6541 = vmatprep.subr.bf16.mxu0 %v6845_v14  ;;  %v2195_v10 = vrot.slane %v2193_v17, 5  ;;  %v1372_v7 = vsel %vm7321_vm5, %v1370_v36, %v1371_v35  ;;  %v2172_v35 = vor.u32 %v2171_v49, %v2168_v63  ;;  %v7648_v36 = vld [vmem:[%s9667_s1 + $0x178] sm:$0xff]   ;;  %v5574_v63 = vld [vmem:[%s6979_s26 + $0x30] sm:$0xf]  ;;  %v7669_v48 = vld [vmem:[%s6979_s26 + $0x34] sm:$0xf] }
  0x78   : > { %6462 = vmatmul.mubr.bf16.gmra.mxu0 %v5476_v38  ;;  %v2185_v38 = vshll.u32 %v7591_v42, 16  ;;  %v5479_v17 = vcombine.low %v1369_v4, %v1372_v7  ;;  %9714 = vst [vmem:[#allocation5_spill] sm:$0xff] %v7669_v48  ;;  %v7671_v11 = vrot.slane %v2199_v51, 5  ;;  %v2219_v47 = vrot.slane %v2217_v46, 5  ;;  %v7690_v46 = vld [vmem:[%s6979_s26 + $0x40] sm:$0xf] }
  0x79   : > { %6492 = vmatpush3.bf16.msra.mxu1 %v6840_v0  ;;  %6465 = vmatprep.mubr.bf16.mxu0 %v5477_v20  ;;  %v2182_v20 = vor.u32 %v2181_v3, %v7610_v19  ;;  %v2196_v49 = vor.u32 %v2195_v10, %v2192_v12  ;;  %v6921_v3 = vld [vmem:[%s6979_s26 + $0x78] sm:$0xf]  ;;  %v2205_v12 = vrot.slane %v2203_v39, 4  ;;  %v2216_v10 = vrot.slane %v2214_v59, 4  ;;  %9715 = vst [vmem:[#allocation4_spill] sm:$0xff] %v7690_v46 }
  0x7a   : > { %6493 = vmatprep.subr.bf16.mxu1 %v6844_v50  ;;  %6542 = vmatpush3.bf16.msra.mxu0 %v6845_v14  ;;  %v2209_v14 = vshll.u32 %v7622_v23, 16  ;;  %v5423_v33 = vcombine.low %v6921_v3, %v6922_v8  ;;  %v7662_v25 = vrot.slane %v2185_v38, 5  ;;  %v7674_v0 = vld [vmem:[%s6979_s26 + $0x38] sm:$0x1]  ;;  %v7676_v4 = vrot.slane %v2172_v35, 4 }
  0x7b   : > { %6543 = vmatprep.subr.bf16.mxu0 %v6849_v30  ;;  %v7678_v7 = vrot.slane %v2182_v20, 4  ;;  %v2238_v3 = vshrl.u32 %v5574_v63, 16  ;;  %v5577_v8 = vld [vmem:[%s6979_s26 + $0x3c] sm:$0xf]  ;;  %v7686_v51 = vrot.slane %v2223_v53, 5  ;;  %v2241_v39 = vshll.u32 %v5574_v63, 16 }
  0x7c   : > { %6414 = vmatmul.mubr.bf16.gmra.mxu1 %v5420_v55  ;;  %v1405_v55 = vrot.slane %v9680_v62, 4  ;;  %v7680_v38 = vrot.slane %v2209_v14, 5  ;;  %v2247_v59 = vshll.u32 %v7669_v48, 16  ;;  %v2251_v20 = vshrl.u32 %v7669_v48, 16 }
  0x7d   : > { %6417 = vmatprep.mubr.bf16.mxu1 %v5421_v60  ;;  %6494 = vmatpush3.bf16.msra.mxu1 %v6844_v50  ;;  %v7665_v60 = vld [vmem:[%s6979_s26 + $0x2c] sm:$0x1]  ;;  %v2227_v50 = vshrl.u32 %v7635_v45, 16  ;;  %v2206_v14 = vor.u32 %v2205_v12, %v7671_v11  ;;  %v2240_v53 = vrot.slane %v2238_v3, 4  ;;  %v2243_v63 = vrot.slane %v2241_v39, 5 }
  0x7e   : > { %6495 = vmatprep.subr.bf16.mxu1 %v6848_v58  ;;  %9713 = vst [vmem:[#allocation3_spill] sm:$0xff] %v7665_v60  ;;  %6544 = vmatpush3.bf16.msra.mxu0 %v6849_v30  ;;  %v7684_v30 = vrot.slane %v2196_v49, 4  ;;  %v2262_v49 = vshrl.u32 %v5577_v8, 16  ;;  %v2265_v62 = vshll.u32 %v5577_v8, 16  ;;  %v2253_v48 = vrot.slane %v2251_v20, 4 }
  0x7f   : > { %6625 = vmatprep.subr.bf16.mxu0 %v7653_v15  ;;  %v2229_v35 = vrot.slane %v2227_v50, 4  ;;  %v7700_v50 = vrot.slane %v2247_v59, 5  ;;  %v7703_v45 = vld [vmem:[%s6979_s26 + $0x44] sm:$0x1]  ;;  %v2275_v12 = vshrl.u32 %v7690_v46, 16  ;;  %v9716_v16 = vrot.slane %v9709_v40, 5 }
  0x80   : > { %6466 = vmatmul.mubr.bf16.gmra.mxu0 %v5478_v34  ;;  %v2233_v34 = vshll.u32 %v7665_v60, 16  ;;  %v9717_v57 = vrot.slane %v7580_v1, 9  ;;  %v7724_v39 = vld [vmem:[%s6979_s26 + $0x4c] sm:$0xf]  ;;  %v2264_v59 = vrot.slane %v2262_v49, 4  ;;  %v2267_v20 = vrot.slane %v2265_v62, 5 }
  0x81   : > { %6496 = vmatpush3.bf16.msra.mxu1 %v6848_v58  ;;  %6469 = vmatprep.mubr.bf16.mxu0 %v5479_v17  ;;  %v2220_v58 = vor.u32 %v2219_v47, %v2216_v10  ;;  %v2257_v17 = vshll.u32 %v7674_v0, 16  ;;  %v2271_v47 = vshll.u32 %v7690_v46, 16  ;;  %v5580_v10 = vld [vmem:[%s6979_s26 + $0x48] sm:$0xf]  ;;  %v2230_v8 = vor.u32 %v2229_v35, %v7686_v51 }
  0x82   : > { %6577 = vmatprep.subr.bf16.mxu1 %v7648_v36  ;;  %v2277_v1 = vrot.slane %v2275_v12, 4  ;;  %v7728_v46 = vrot.slane %v2206_v14, 4  ;;  %v2178_v62 = vsel %vm7010_vm2, %v7676_v4, %v7610_v19  ;;  %v2188_v35 = vsel %vm7010_vm2, %v7678_v7, %v7662_v25  ;;  %v5583_v4 = vld [vmem:[%s6979_s26 + $0x54] sm:$0xf] }
  0x83   : > { %v7726_v60 = vrot.slane %v2271_v47, 5  ;;  %v2289_v14 = vshll.u32 %v5580_v10, 16  ;;  %v2281_v49 = vshll.u32 %v7703_v45, 16  ;;  %v2299_v19 = vshrl.u32 %v7724_v39, 16 }
  0x84   : > { %6418 = vmatmul.mubr.bf16.gmra.mxu1 %v5422_v54  ;;  %v7714_v54 = vsel %vm7321_vm5, %v9717_v57, %v9716_v16  ;;  %v7730_v16 = vrot.slane %v2220_v58, 4  ;;  %v7732_v57 = vrot.slane %v2233_v34, 5  ;;  %v2295_v58 = vshll.u32 %v7724_v39, 16 }
  0x85   : > { %6421 = vmatprep.mubr.bf16.mxu1 %v5423_v33  ;;  %v9718_v33 = vrot.slane %v9712_v5, 5  ;;  %v2286_v5 = vshrl.u32 %v5580_v10, 16  ;;  %v9720_v34 = vcombine.low %v7505_v44, %v7521_v41  ;;  %v7753_v47 = vrot.slane %v2230_v8, 4  ;;  %v7759_v10 = vld [vmem:[%s6979_s26 + $0x58] sm:$0xf] }
  0x86   : > { %v7755_v12 = vrot.slane %v2257_v17, 5  ;;  %v2268_v25 = vor.u32 %v2267_v20, %v2264_v59  ;;  %v2278_v7 = vor.u32 %v2277_v1, %v7726_v60  ;;  %v9721_v44 = vcombine.low %v7100_v13, %v7107_v22  ;;  %v7765_v41 = vld [vmem:[%s6979_s26 + $0x50] sm:$0x1] }
  0x87   : > { %v7720_v3 = vsel %vm7321_vm5, %v1405_v55, %v9718_v33  ;;  %v9719_v55 = vcombine.low %v7485_v6, %v7497_v21  ;;  %v2244_v6 = vor.u32 %v2243_v63, %v2240_v53  ;;  %v2254_v21 = vor.u32 %v2253_v48, %v7700_v50 }
  0x88   : > { %v2288_v48 = vrot.slane %v2286_v5, 4  ;;  %v2291_v53 = vrot.slane %v2289_v14, 5  ;;  %v7767_v63 = vrot.slane %v2295_v58, 5  ;;  %v2301_v17 = vrot.slane %v2299_v19, 4  ;;  %v5586_v5 = vld [vmem:[%s6979_s26 + $0x60] sm:$0xf] }
  0x89   : > { %6470 = vmatmul.mubr.bf16.gmra.mxu0 %v9719_v55  ;;  %v9722_v33 = vcombine.low %v7152_v18, %v7158_v31  ;;  %v2310_v8 = vshrl.u32 %v5583_v4, 16  ;;  %v2313_v59 = vshll.u32 %v5583_v4, 16  ;;  %v7772_v20 = vrot.slane %v2244_v6, 4  ;;  %v7789_v31 = vld [vmem:[%s6979_s26 + $0x64] sm:$0xf] }
  0x8a   : > { %6473 = vmatprep.mubr.bf16.mxu0 %v9720_v34  ;;  %v7774_v1 = vrot.slane %v2254_v21, 4  ;;  %v7776_v13 = vrot.slane %v2281_v49, 5  ;;  %v2319_v22 = vshll.u32 %v7759_v10, 16  ;;  %v5484_v55 = vcombine.low %v7714_v54, %v7720_v3  ;;  %v7785_v34 = vld [vmem:[%s6979_s26 + $0x5c] sm:$0x1] }
  0x8b   : > { %v5629_v14 = vcombine.low %v2178_v62, %v2188_v35  ;;  %v7782_v58 = vrot.slane %v2268_v25, 4  ;;  %v2323_v18 = vshrl.u32 %v7759_v10, 16  ;;  %v7791_v6 = vrot.slane %v2278_v7, 4 }
  0x8c   : > { %6422 = vmatmul.mubr.bf16.gmra.mxu1 %v9721_v44  ;;  %v2305_v21 = vshll.u32 %v7765_v41, 16  ;;  %v2334_v49 = vshrl.u32 %v5586_v5, 16  ;;  %v2337_v19 = vshll.u32 %v5586_v5, 16  ;;  %v9723_v4 = vcombine.low %v7525_v26, %v7553_v37 }
  0x8d   : > { %6425 = vmatprep.mubr.bf16.mxu1 %v9722_v33  ;;  %v2292_v54 = vor.u32 %v2291_v53, %v2288_v48  ;;  %v2302_v3 = vor.u32 %v2301_v17, %v7767_v63  ;;  %v2312_v62 = vrot.slane %v2310_v8, 4  ;;  %v2315_v35 = vrot.slane %v2313_v59, 5  ;;  %v7829_v8 = vld [vmem:[%s6979_s26 + $0x70] sm:$0xf] }
  0x8e   : > { %v9724_v25 = vcombine.low %v7535_v2, %v7565_v29  ;;  %v7801_v7 = vrot.slane %v2319_v22, 5  ;;  %v2325_v44 = vrot.slane %v2323_v18, 4  ;;  %v2329_v33 = vshll.u32 %v7785_v34, 16 }
  0x8f   : > { %v2343_v26 = vshll.u32 %v7789_v31, 16  ;;  %v2202_v37 = vsel %vm7010_vm2, %v7684_v30, %v7671_v11  ;;  %v2212_v2 = vsel %vm7010_vm2, %v7728_v46, %v7680_v38  ;;  %v2336_v29 = vrot.slane %v2334_v49, 4  ;;  %v5589_v46 = vld [vmem:[%s6979_s26 + $0x6c] sm:$0xf] }
  0x90   : > { %v2339_v48 = vrot.slane %v2337_v19, 5  ;;  %v9725_v53 = vcombine.low %v7194_v9, %v7203_v28  ;;  %v2226_v17 = vsel %vm7010_vm2, %v7730_v16, %v7686_v51  ;;  %v2236_v11 = vsel %vm7010_vm2, %v7753_v47, %v7732_v57  ;;  %v7837_v16 = vld [vmem:[%s6979_s26 + $0x68] sm:$0x1] }
  0x91   : > { %6474 = vmatmul.mubr.bf16.gmra.mxu0 %v9723_v4  ;;  %v7824_v30 = vrot.slane %v2305_v21, 5  ;;  %v2347_v38 = vshrl.u32 %v7789_v31, 16  ;;  %v9726_v9 = vcombine.low %v9707_v24, %v7258_v52  ;;  %v7834_v28 = vrot.slane %v2292_v54, 4  ;;  %v6850_v52 = vld [vmem:[%s6979_s26 + $0xc] sm:$0xff]  }
  0x92   : > { %6477 = vmatprep.mubr.bf16.mxu0 %v9724_v25  ;;  %v2316_v51 = vor.u32 %v2315_v35, %v2312_v62  ;;  %v2358_v59 = vshrl.u32 %v5589_v46, 16  ;;  %v2361_v57 = vshll.u32 %v5589_v46, 16  ;;  %v7839_v47 = vrot.slane %v2302_v3, 4  ;;  %v7850_v62 = vld [vmem:[%s6979_s26 + $0x74] sm:$0x1] }
  0x93   : > { %v2326_v22 = vor.u32 %v2325_v44, %v7801_v7  ;;  %v7842_v5 = vrot.slane %v2329_v33, 5  ;;  %v2367_v18 = vshll.u32 %v7829_v8, 16  ;;  %v2340_v24 = vor.u32 %v2339_v48, %v2336_v29  ;;  %v5592_v25 = vld [vmem:[%s6979_s26 + $0x78] sm:$0xf]  ;;  %v7854_v44 = vld [vmem:[%s6979_s26 + $0x7c] sm:$0xf] }
  0x94   : > { %6426 = vmatmul.mubr.bf16.gmra.mxu1 %v9725_v53  ;;  %v7846_v21 = vrot.slane %v2343_v26, 5  ;;  %v2349_v49 = vrot.slane %v2347_v38, 4  ;;  %v2371_v19 = vshrl.u32 %v7829_v8, 16  ;;  %v5630_v4 = vcombine.low %v2202_v37, %v2212_v2  ;;  %v7861_v26 = vld [vmem:[%s6979_s26 + $0x80] sm:$0x1] }
  0x95   : > { %6429 = vmatprep.mubr.bf16.mxu1 %v9726_v9  ;;  %v5631_v54 = vcombine.low %v2226_v17, %v2236_v11  ;;  %v2360_v3 = vrot.slane %v2358_v59, 4  ;;  %v2363_v35 = vrot.slane %v2361_v57, 5  ;;  %v7856_v33 = vrot.slane %v2316_v51, 4 }
  0x96   : > { %v7858_v53 = vrot.slane %v2367_v18, 5  ;;  %v2373_v29 = vrot.slane %v2371_v19, 4  ;;  %v2382_v48 = vshrl.u32 %v5592_v25, 16  ;;  %v2353_v37 = vshll.u32 %v7837_v16, 16  ;;  %v5595_v19 = vld [vmem:[%s6979_s26 + $0x84] sm:$0xf] }
  0x97   : > { %v2385_v2 = vshll.u32 %v5592_v25, 16  ;;  %v2391_v17 = vshll.u32 %v7854_v44, 16  ;;  %v2395_v11 = vshrl.u32 %v7854_v44, 16  ;;  %v7866_v38 = vrot.slane %v2326_v22, 4  ;;  %v6854_v25 = vld [vmem:[%s6979_s26 + $0x24] sm:$0xff]  }
  0x98   : > { %v7868_v46 = vrot.slane %v2340_v24, 4  ;;  %v2384_v9 = vrot.slane %v2382_v48, 4  ;;  %v9727_v51 = vcombine.low %v9710_v43, %v9709_v40  ;;  %v2250_v22 = vsel %vm7010_vm2, %v7772_v20, %v7700_v50 }
  0x99   : > { %6478 = vmatmul.mubr.bf16.gmra.mxu0 %v5484_v55  ;;  %v2350_v55 = vor.u32 %v2349_v49, %v7846_v21  ;;  %v2387_v59 = vrot.slane %v2385_v2, 5  ;;  %v7874_v57 = vrot.slane %v2391_v17, 5  ;;  %v2397_v18 = vrot.slane %v2395_v11, 4  ;;  %v7923_v17 = vld [vmem:[%s6979_s26 + $0x8c] sm:$0x1] }
  0x9a   : > { %6545 = vmatprep.mubr.bf16.mxu0 %v5629_v14  ;;  %v2364_v14 = vor.u32 %v2363_v35, %v2360_v3  ;;  %v2374_v24 = vor.u32 %v2373_v29, %v7858_v53  ;;  %v2377_v49 = vshll.u32 %v7850_v62, 16  ;;  %v2401_v40 = vshll.u32 %v7861_v26, 16  ;;  %v7897_v3 = vld [vmem:[%s6979_s26 + $0x88] sm:$0xf]  ;;  %v6851_v35 = vld [vmem:[%s6979_s26 + $0x18] sm:$0xff]  }
  0x9b   : > { %v2260_v43 = vsel %vm7010_vm2, %v7774_v1, %v7755_v12  ;;  %v2284_v50 = vsel %vm7010_vm2, %v7791_v6, %v7776_v13  ;;  %v2388_v20 = vor.u32 %v2387_v59, %v2384_v9  ;;  %v6857_v12 = vld [vmem:[%s9667_s1 + $0x1b0] sm:$0xff]   ;;  %v7904_v1 = vrot.slane %v2353_v37, 5  ;;  %v7928_v11 = vld [vmem:[%s9667_s1 + $0x1a8] sm:$0xff]  }
  0x9c   : > { %6430 = vmatmul.mubr.bf16.gmra.mxu1 %v9727_v51  ;;  %v2409_v29 = vshll.u32 %v5595_v19, 16  ;;  %v6856_v13 = vld [vmem:[%s9667_s1 + $0x170] sm:$0xff]   ;;  %v2298_v6 = vsel %vm7010_vm2, %v7834_v28, %v7767_v63  ;;  %v2308_v48 = vsel %vm7010_vm2, %v7839_v47, %v7824_v30  ;;  %v7918_v37 = vrot.slane %v2350_v55, 4 }
  0x9d   : > { %6497 = vmatprep.mubr.bf16.mxu1 %v6850_v52  ;;  %v2274_v52 = vsel %vm7010_vm2, %v7782_v58, %v7726_v60  ;;  %v2398_v60 = vor.u32 %v2397_v18, %v7874_v57  ;;  %v2406_v58 = vshrl.u32 %v5595_v19, 16  ;;  %v7920_v2 = vrot.slane %v2364_v14, 4  ;;  %v5598_v14 = vld [vmem:[%s6979_s26 + $0x90] sm:$0xf]  ;;  %v7951_v59 = vld [vmem:[%s6979_s26 + $0x94] sm:$0xf] }
  0x9e   : > { %v7930_v63 = vrot.slane %v2374_v24, 4  ;;  %v7932_v28 = vrot.slane %v2377_v49, 5  ;;  %v2415_v30 = vshll.u32 %v7897_v3, 16  ;;  %v2419_v47 = vshrl.u32 %v7897_v3, 16  ;;  %9728 = vst [vmem:[#allocation6_spill] sm:$0xff] %v7951_v59 }
  0x9f   : > { %v2332_v55 = vsel %vm7010_vm2, %v7866_v38, %v7842_v5  ;;  %v7945_v9 = vrot.slane %v2388_v20, 4  ;;  %v7947_v51 = vrot.slane %v2401_v40, 5  ;;  %v2411_v18 = vrot.slane %v2409_v29, 5  ;;  %v6860_v5 = vld [vmem:[%s9667_s1 + $0x168] sm:$0xff]  }
  0xa0   : > { %v2433_v38 = vshll.u32 %v5598_v14, 16  ;;  %v2439_v24 = vshll.u32 %v7951_v59, 16  ;;  %v2443_v49 = vshrl.u32 %v7951_v59, 16  ;;  %v5632_v40 = vcombine.low %v2250_v22, %v2260_v43 }
  0xa1   : > { %6546 = vmatmul.mubr.bf16.vlgmr.msra.gmra.mxu0 %v5630_v4  ;;  %v2322_v4 = vsel %vm7010_vm2, %v7856_v33, %v7801_v7  ;;  %v2425_v7 = vshll.u32 %v7923_v17, 16  ;;  %v2430_v33 = vshrl.u32 %v5598_v14, 16  ;;  %v5633_v20 = vcombine.low %v2274_v52, %v2284_v50 }
  0xa2   : > { %6626 = vmatpush3.bf16.msra.mxu0 %v7653_v15  ;;  %6549 = vmatprep.mubr.bf16.mxu0 %v5631_v54  ;;  %v7953_v15 = vrot.slane %v2398_v60, 4  ;;  %v2408_v54 = vrot.slane %v2406_v58, 4  ;;  %v7962_v19 = vrot.slane %v2415_v30, 5  ;;  %v6855_v60 = vld [vmem:[%s6979_s26 + $0x30] sm:$0xff]   ;;  %v6865_v58 = vld [vmem:[%s9667_s1 + $0x1a0] sm:$0xff]   ;;  %v2435_v14 = vrot.slane %v2433_v38, 5 }
  0xa3   : > { %6627 = vmatprep.subr.bf16.mxu0 %v6857_v12  ;;  %v2432_v29 = vrot.slane %v2430_v33, 4  ;;  %v2445_v22 = vrot.slane %v2443_v49, 4  ;;  %v7970_v43 = vcombine.low %v2298_v6, %v2308_v48  ;;  %v7973_v52 = vcombine.low %v2322_v4, %v2332_v55  ;;  %v5601_v30 = vld [vmem:[%s6979_s26 + $0x9c] sm:$0xf]  ;;  %v7995_v4 = vld [vmem:[%s6979_s26 + $0xa4] sm:$0x1] }
  0xa4   : > { %6498 = vmatmul.mubr.bf16.vlgmr.msra.gmra.mxu1 %v6851_v35  ;;  %v2421_v35 = vrot.slane %v2419_v47, 4  ;;  %v2412_v48 = vor.u32 %v2411_v18, %v2408_v54  ;;  %v7992_v47 = vld [vmem:[%s6979_s26 + $0xa0] sm:$0xf]  ;;  %9731 = vst [vmem:[#allocation9_spill] sm:$0xff] %v7995_v4  ;;  %v2454_v55 = vshrl.u32 %v5601_v30, 16  ;;  %v2457_v33 = vshll.u32 %v5601_v30, 16 }
  0xa5   : > { %6578 = vmatpush3.bf16.msra.mxu1 %v7648_v36  ;;  %6501 = vmatprep.mubr.bf16.mxu1 %v6854_v25  ;;  %v7968_v36 = vrot.slane %v2439_v24, 5  ;;  %v2356_v25 = vsel %vm7010_vm2, %v7918_v37, %v7904_v1  ;;  %9730 = vst [vmem:[#allocation8_spill] sm:$0xff] %v7992_v47  ;;  %v6858_v38 = vld [vmem:[%s6979_s26 + $0x3c] sm:$0xff]   ;;  %v2463_v37 = vshll.u32 %v7992_v47, 16  ;;  %v2467_v24 = vshrl.u32 %v7992_v47, 16 }
  0xa6   : > { %6579 = vmatprep.subr.bf16.mxu1 %v6856_v13  ;;  %6628 = vmatpush3.bf16.msra.mxu0 %v6857_v12  ;;  %v7984_v12 = vld [vmem:[%s6979_s26 + $0x98] sm:$0x1]  ;;  %v2422_v1 = vor.u32 %v2421_v35, %v7962_v19  ;;  %v6864_v54 = vld [vmem:[%s9667_s1 + $0x160] sm:$0xff]   ;;  %v2436_v18 = vor.u32 %v2435_v14, %v2432_v29  ;;  %v2456_v30 = vrot.slane %v2454_v55, 4  ;;  %v2459_v49 = vrot.slane %v2457_v33, 5 }
  0xa7   : > { %6629 = vmatprep.subr.bf16.mxu0 %v7928_v11  ;;  %9729 = vst [vmem:[#allocation7_spill] sm:$0xff] %v7984_v12  ;;  %v2449_v35 = vshll.u32 %v7984_v12, 16  ;;  %v2469_v6 = vrot.slane %v2467_v24, 4  ;;  %v2473_v50 = vshll.u32 %v7995_v4, 16  ;;  %v5604_v47 = vld [vmem:[%s6979_s26 + $0xa8] sm:$0xf] }
  0xa8   : > { %v6868_v29 = vld [vmem:[%s9667_s1 + $0x158] sm:$0xff]   ;;  %v8018_v14 = vrot.slane %v2412_v48, 4  ;;  %v2478_v55 = vshrl.u32 %v5604_v47, 16  ;;  %v2481_v33 = vshll.u32 %v5604_v47, 16  ;;  %v8031_v4 = vld [vmem:[%s6979_s26 + $0xb0] sm:$0x1] }
  0xa9   : > { %6550 = vmatmul.mubr.bf16.gmra.mxu0 %v5632_v40  ;;  %6580 = vmatpush3.bf16.msra.mxu1 %v6856_v13  ;;  %v6869_v13 = vld [vmem:[%s9667_s1 + $0x198] sm:$0xff]   ;;  %v2446_v40 = vor.u32 %v2445_v22, %v7968_v36  ;;  %v8020_v22 = vrot.slane %v2425_v7, 5  ;;  %v6859_v48 = vld [vmem:[%s6979_s26 + $0x48] sm:$0xff]   ;;  %v8034_v7 = vrot.slane %v2422_v1, 4  ;;  %v8036_v12 = vrot.slane %v2436_v18, 4 }
  0xaa   : > { %6553 = vmatprep.mubr.bf16.mxu0 %v5633_v20  ;;  %6581 = vmatprep.subr.bf16.mxu1 %v6860_v5  ;;  %v8011_v20 = vrot.slane %v2463_v37, 5  ;;  %v2460_v37 = vor.u32 %v2459_v49, %v2456_v30  ;;  %v8038_v59 = vrot.slane %v2449_v35, 5  ;;  %v6872_v49 = vld [vmem:[%s9667_s1 + $0x150] sm:$0xff]   ;;  %v8055_v18 = vrot.slane %v2481_v33, 5 }
  0xab   : > { %6630 = vmatpush3.bf16.msra.mxu0 %v7928_v11  ;;  %v8023_v11 = vld [vmem:[%s6979_s26 + $0xac] sm:$0xf]  ;;  %v2497_v35 = vshll.u32 %v8031_v4, 16 }
  0xac   : > { %6502 = vmatmul.mubr.bf16.gmra.mxu1 %v6855_v60  ;;  %6631 = vmatprep.subr.bf16.mxu0 %v6865_v58  ;;  %9732 = vst [vmem:[#allocation10_spill] sm:$0xff] %v8023_v11  ;;  %v2380_v60 = vsel %vm7010_vm2, %v7930_v63, %v7932_v28  ;;  %v2470_v24 = vor.u32 %v2469_v6, %v8011_v20  ;;  %v2487_v47 = vshll.u32 %v8023_v11, 16  ;;  %v6862_v63 = vld [vmem:[%s6979_s26 + $0x54] sm:$0xff]   ;;  %v8045_v28 = vrot.slane %v2446_v40, 4 }
  0xad   : > { %6505 = vmatprep.mubr.bf16.mxu1 %v6858_v38  ;;  %6582 = vmatpush3.bf16.msra.mxu1 %v6860_v5  ;;  %v6873_v5 = vld [vmem:[%s9667_s1 + $0x190] sm:$0xff]   ;;  %v8047_v6 = vrot.slane %v2473_v50, 5  ;;  %v8049_v38 = vrot.slane %v2478_v55, 4  ;;  %v2491_v1 = vshrl.u32 %v8023_v11, 16  ;;  %v8064_v40 = vrot.slane %v2460_v37, 4 }
  0xae   : > { %6583 = vmatprep.subr.bf16.mxu1 %v6864_v54  ;;  %v8066_v30 = vrot.slane %v2470_v24, 4  ;;  %v5607_v55 = vld [vmem:[%s6979_s26 + $0xb4] sm:$0xf]  ;;  %v8070_v11 = vld [vmem:[%s6979_s26 + $0xb8] sm:$0xf]  ;;  %v6876_v24 = vld [vmem:[%s9667_s1 + $0x148] sm:$0xff]  }
  0xaf   : > { %6632 = vmatpush3.bf16.msra.mxu0 %v6865_v58  ;;  %v9733_v58 = vsel %vm7010_vm2, %v7868_v46, %v7846_v21  ;;  %9734 = vst [vmem:[#allocation11_spill] sm:$0xff] %v8070_v11  ;;  %v2394_v21 = vsel %vm7010_vm2, %v7945_v9, %v7874_v57  ;;  %v8082_v46 = vrot.slane %v2487_v47, 5  ;;  %v5610_v37 = vld [vmem:[%s6979_s26 + $0xc0] sm:$0xf]  ;;  %v2404_v57 = vsel %vm7010_vm2, %v7953_v15, %v7947_v51  ;;  %v8109_v47 = vld [vmem:[%s6979_s26 + $0xc4] sm:$0xf] }
  0xb0   : > { %6633 = vmatprep.subr.bf16.mxu0 %v6869_v13  ;;  %v5636_v50 = vcombine.low %v9733_v58, %v2356_v25  ;;  %v2502_v25 = vshrl.u32 %v5607_v55, 16  ;;  %v2418_v9 = vsel %vm7010_vm2, %v8018_v14, %v7962_v19  ;;  %9737 = vst [vmem:[#allocation13_spill] sm:$0xff] %v8109_v47  ;;  %v8112_v51 = vld [vmem:[%s6979_s26 + $0xc8] sm:$0x1]  ;;  %v2535_v58 = vshll.u32 %v8109_v47, 16 }
  0xb1   : > { %6554 = vmatmul.mubr.bf16.gmra.mxu0 %v7970_v43  ;;  %6584 = vmatpush3.bf16.msra.mxu1 %v6864_v54  ;;  %v9735_v43 = vsel %vm7010_vm2, %v7920_v2, %v7858_v53  ;;  %v2493_v54 = vrot.slane %v2491_v1, 4  ;;  %v2505_v53 = vshll.u32 %v5607_v55, 16  ;;  %v2511_v2 = vshll.u32 %v8070_v11, 16 }
  0xb2   : > { %6557 = vmatprep.mubr.bf16.mxu0 %v7973_v52  ;;  %v5637_v33 = vcombine.low %v9735_v43, %v2380_v60  ;;  %6585 = vmatprep.subr.bf16.mxu1 %v6868_v29  ;;  %v6877_v52 = vld [vmem:[%s9667_s1 + $0x188] sm:$0xff]   ;;  %v2515_v60 = vshrl.u32 %v8070_v11, 16  ;;  %v2504_v15 = vrot.slane %v2502_v25, 4  ;;  %v9738_v55 = vrot.slane %v7517_v32, 5 }
  0xb3   : > { %6634 = vmatpush3.bf16.msra.mxu0 %v6869_v13  ;;  %v2428_v13 = vsel %vm7010_vm2, %v8034_v7, %v8020_v22  ;;  %v2507_v19 = vrot.slane %v2505_v53, 5  ;;  %v8114_v14 = vrot.slane %v2511_v2, 5  ;;  %v2526_v22 = vshrl.u32 %v5610_v37, 16  ;;  %v6863_v2 = vld [vmem:[%s6979_s26 + $0x60] sm:$0xff]  }
  0xb4   : > { %6506 = vmatmul.mubr.bf16.gmra.mxu1 %v6859_v48  ;;  %6635 = vmatprep.subr.bf16.mxu0 %v6873_v5  ;;  %v8106_v48 = vld [vmem:[%s6979_s26 + $0xbc] sm:$0x1]  ;;  %v2517_v1 = vrot.slane %v2515_v60, 4  ;;  %v2529_v7 = vshll.u32 %v5610_v37, 16  ;;  %v8119_v43 = vrot.slane %v9738_v55, 4  ;;  %v8124_v25 = vrot.slane %v2497_v35, 5 }
  0xb5   : > { %9736 = vst [vmem:[#allocation12_spill] sm:$0xff] %v8106_v48  ;;  %6509 = vmatprep.mubr.bf16.mxu1 %v6862_v63  ;;  %6586 = vmatpush3.bf16.msra.mxu1 %v6868_v29  ;;  %v2484_v63 = vor.u32 %v8055_v18, %v8049_v38  ;;  %v2494_v29 = vor.u32 %v2493_v54, %v8082_v46  ;;  %v2539_v53 = vshrl.u32 %v8109_v47, 16  ;;  %v2521_v60 = vshll.u32 %v8106_v48, 16  ;;  %v6866_v38 = vld [vmem:[%s6979_s26 + $0x6c] sm:$0xff]   ;;  %v8144_v48 = vld [vmem:[%s6979_s26 + $0x18] sm:$0xe] }
  0xb6   : > { %6587 = vmatprep.subr.bf16.mxu1 %v6872_v49  ;;  %v2528_v37 = vrot.slane %v2526_v22, 4  ;;  %v2531_v11 = vrot.slane %v2529_v7, 5  ;;  %v8129_v55 = vrot.slane %v2535_v58, 5  ;;  %v2508_v18 = vor.u32 %v2507_v19, %v2504_v15  ;;  %v6880_v22 = vld [vmem:[%s9667_s1 + $0x140] sm:$0xff]   ;;  %v8141_v58 = vld [vmem:[%s6979_s26 + $0xc] sm:$0xe] }
  0xb7   : > { %6636 = vmatpush3.bf16.msra.mxu0 %v6873_v5  ;;  %v6881_v5 = vld [vmem:[%s9667_s1 + $0x180] sm:$0xff]   ;;  %v2518_v35 = vor.u32 %v2517_v1, %v8114_v14  ;;  %v2541_v54 = vrot.slane %v2539_v53, 4  ;;  %v2545_v47 = vshll.u32 %v8112_v51, 16  ;;  %v5638_v15 = vcombine.low %v2394_v21, %v2404_v57 }
  0xb8   : > { %6637 = vmatprep.subr.bf16.mxu0 %v6877_v52  ;;  %v2532_v7 = vor.u32 %v2531_v11, %v2528_v37  ;;  %v5639_v19 = vcombine.low %v2418_v9, %v2428_v13  ;;  %v8152_v1 = vrot.slane %v2484_v63, 4  ;;  %v8154_v11 = vrot.slane %v2494_v29, 4  ;;  %v6867_v9 = vld [vmem:[%s6979_s26 + $0x78] sm:$0xff]   ;;  %v6870_v37 = vld [vmem:[%s6979_s26 + $0x84] sm:$0xff]  }
  0xb9   : > { %6558 = vmatmul.mubr.bf16.gmra.mxu0 %v5636_v50  ;;  %6588 = vmatpush3.bf16.msra.mxu1 %v6872_v49  ;;  %v8149_v49 = vld [vmem:[%s9667_s1 + $0x238] sm:$0xff]   ;;  %v2542_v50 = vor.u32 %v2541_v54, %v8129_v55  ;;  %v8163_v53 = vrot.slane %v2518_v35, 4  ;;  %v8165_v21 = vrot.slane %v2521_v60, 5  ;;  %v8171_v63 = vrot.slane %v2545_v47, 5  ;;  %v5656_v60 = vld [vmem:[%s6979_s26 + $0x30] sm:$0xe] }
  0xba   : > { %6561 = vmatprep.mubr.bf16.mxu0 %v5637_v33  ;;  %6589 = vmatprep.subr.bf16.mxu1 %v6876_v24  ;;  %v8159_v33 = vld [vmem:[%s9667_s1 + $0x1f8] sm:$0xff]   ;;  %v8169_v13 = vrot.slane %v2532_v7, 4  ;;  %v2940_v29 = vrot.slane %v7591_v42, 5  ;;  %v9739_v35 = vld [vmem:[#allocation2_spill] sm:$0xff]  ;;  %v5672_v47 = vrot.slane %v5656_v60, 9  ;;  %v9742_v60 = vld [vmem:[#allocation3_spill] sm:$0xff] }
  0xbb   : > { %6638 = vmatpush3.bf16.msra.mxu0 %v6877_v52  ;;  %v8161_v52 = vrot.slane %v2508_v18, 4  ;;  %v9740_v7 = vld [vmem:[#allocation5_spill] sm:$0xff]  ;;  %v2961_v18 = vrot.slane %v7674_v0, 5  ;;  %v2476_v0 = vsel %vm7010_vm2, %v8066_v30, %v8047_v6  ;;  %v2975_v30 = vrot.slane %v7765_v41, 5 }
  0xbc   : > { %6510 = vmatmul.mubr.bf16.gmra.mxu1 %v6863_v2  ;;  %6639 = vmatprep.subr.bf16.mxu0 %v6881_v5  ;;  %v2958_v57 = vrot.slane %v9740_v7, 5  ;;  %v9741_v2 = vld [vmem:[#allocation4_spill] sm:$0xff] }
  0xbd   : > { %6513 = vmatprep.mubr.bf16.mxu1 %v6866_v38  ;;  %6590 = vmatpush3.bf16.msra.mxu1 %v6876_v24  ;;  %v8176_v24 = vrot.slane %v2542_v50, 4  ;;  %v2944_v38 = vrot.slane %v7608_v61, 5  ;;  %v2442_v50 = vsel %vm7010_vm2, %v8036_v12, %v7968_v36  ;;  %v2965_v54 = vrot.slane %v9741_v2, 5  ;;  %v5657_v12 = vld [vmem:[%s6979_s26 + $0x3c] sm:$0xe] }
  0xbe   : > { %6591 = vmatprep.subr.bf16.mxu1 %v6880_v22  ;;  %v8198_v7 = vsel %vm7321_vm5, %v5672_v47, %v2958_v57  ;;  %v2960_v36 = vrot.slane %v2958_v57, 4  ;;  %v5673_v2 = vrot.slane %v5657_v12, 9  ;;  %v6871_v47 = vld [vmem:[%s6979_s26 + $0x90] sm:$0xff]   ;;  %v2982_v12 = vrot.slane %v7785_v34, 5 }
  0xbf   : > { %6640 = vmatpush3.bf16.msra.mxu0 %v6881_v5  ;;  %v2452_v5 = vsel %vm7010_vm2, %v8045_v28, %v8038_v59  ;;  %v2466_v59 = vsel %vm7010_vm2, %v8064_v40, %v8011_v20  ;;  %v2967_v28 = vrot.slane %v2965_v54, 4  ;;  %v2972_v20 = vrot.slane %v7724_v39, 5 }
  0xc0   : > { %6721 = vmatprep.subr.bf16.mxu0 %v8149_v49  ;;  %v8212_v57 = vsel %vm7321_vm5, %v2960_v36, %v2961_v18  ;;  %v5641_v18 = vcombine.low %v2466_v59, %v2476_v0  ;;  %v8227_v39 = vsel %vm7321_vm5, %v5673_v2, %v2965_v54  ;;  %v2490_v36 = vsel %vm7010_vm2, %v8152_v1, %v8082_v46  ;;  %v5659_v54 = vld [vmem:[%s6979_s26 + $0x54] sm:$0xe] }
  0xc1   : > { %6562 = vmatmul.mubr.bf16.gmra.mxu0 %v5638_v15  ;;  %6592 = vmatpush3.bf16.msra.mxu1 %v6880_v22  ;;  %v2954_v15 = vrot.slane %v9742_v60, 5  ;;  %v2968_v22 = vrot.slane %v7703_v45, 5  ;;  %v5704_v40 = vcombine.low %v8198_v7, %v8212_v57  ;;  %v5658_v45 = vld [vmem:[%s6979_s26 + $0x48] sm:$0xe]  ;;  %v2500_v46 = vsel %vm7010_vm2, %v8154_v11, %v8124_v25  ;;  %v6891_v7 = vld [vmem:[%s6979_s26 + $0x54] sm:$0xff]  }
  0xc2   : > { %6565 = vmatprep.mubr.bf16.mxu0 %v5639_v19  ;;  %6673 = vmatprep.subr.bf16.mxu1 %v8159_v33  ;;  %v5640_v19 = vcombine.low %v2442_v50, %v2452_v5  ;;  %v2974_v50 = vrot.slane %v2972_v20, 4  ;;  %v6874_v5 = vld [vmem:[%s6979_s26 + $0x9c] sm:$0xff]   ;;  %v2986_v2 = vrot.slane %v7789_v31, 5  ;;  %v2514_v34 = vsel %vm7010_vm2, %v8161_v52, %v8114_v14 }
  0xc3   : > { %v8219_v6 = vsel %vm7321_vm5, %v2967_v28, %v2968_v22  ;;  %v5675_v28 = vrot.slane %v5659_v54, 9  ;;  %v5660_v22 = vld [vmem:[%s6979_s26 + $0x60] sm:$0xe]  ;;  %v2989_v25 = vrot.slane %v7837_v16, 5  ;;  %v2524_v11 = vsel %vm7010_vm2, %v8163_v53, %v8165_v21 }
  0xc4   : > { %6514 = vmatmul.mubr.bf16.gmra.mxu1 %v6867_v9  ;;  %v2979_v9 = vrot.slane %v7759_v10, 5  ;;  %v5705_v41 = vcombine.low %v8227_v39, %v8219_v6  ;;  %v8242_v59 = vsel %vm7321_vm5, %v2974_v50, %v2975_v30  ;;  %v2993_v14 = vrot.slane %v7829_v8, 5  ;;  %v5886_v6 = vld [vmem:[%s6979_s26 + $0x24] sm:$0xe] }
  0xc5   : > { %6517 = vmatprep.mubr.bf16.mxu1 %v6870_v37  ;;  %v5674_v37 = vrot.slane %v5658_v45, 9  ;;  %v2988_v45 = vrot.slane %v2986_v2, 4  ;;  %v5642_v52 = vcombine.low %v2490_v36, %v2500_v46  ;;  %v2996_v8 = vrot.slane %v7850_v62, 5  ;;  %v5662_v36 = vld [vmem:[%s6979_s26 + $0x78] sm:$0xe] }
  0xc6   : > { %v2981_v0 = vrot.slane %v2979_v9, 4  ;;  %v8269_v31 = vsel %vm7321_vm5, %v5675_v28, %v2979_v9  ;;  %v2995_v9 = vrot.slane %v2993_v14, 4  ;;  %v3000_v54 = vrot.slane %v7854_v44, 5 }
  0xc7   : > { %v8238_v10 = vsel %vm7321_vm5, %v5674_v37, %v2972_v20  ;;  %v5676_v20 = vrot.slane %v5660_v22, 9  ;;  %v8281_v53 = vsel %vm7321_vm5, %v2988_v45, %v2989_v25  ;;  %v5643_v37 = vcombine.low %v2514_v34, %v2524_v11 }
  0xc8   : > { %v8297_v46 = vsel %vm7321_vm5, %v2995_v9, %v2996_v8  ;;  %v5678_v62 = vrot.slane %v5662_v36, 9  ;;  %v3007_v28 = vrot.slane %v7897_v3, 5  ;;  %v3002_v44 = vrot.slane %v3000_v54, 4  ;;  %v6882_v8 = vld [vmem:[%s6979_s26 + $0x18] sm:$0xff]   ;;  %v9747_v36 = vld [vmem:[#allocation8_spill] sm:$0xff] }
  0xc9   : > { %6566 = vmatmul.mubr.bf16.gmra.mxu0 %v5640_v19  ;;  %v8260_v19 = vsel %vm7321_vm5, %v2981_v0, %v2982_v12  ;;  %v8276_v16 = vsel %vm7321_vm5, %v5676_v20, %v2986_v2  ;;  %v3003_v0 = vrot.slane %v7861_v26, 5  ;;  %v3010_v26 = vrot.slane %v7923_v17, 5  ;;  %v5663_v20 = vld [vmem:[%s6979_s26 + $0x84] sm:$0xe] }
  0xca   : > { %6569 = vmatprep.mubr.bf16.mxu0 %v5641_v18  ;;  %v5661_v18 = vld [vmem:[%s6979_s26 + $0x6c] sm:$0xe]  ;;  %v2538_v2 = vsel %vm7010_vm2, %v8169_v13, %v8129_v55  ;;  %v8309_v34 = vsel %vm7321_vm5, %v5678_v62, %v3000_v54  ;;  %v2548_v3 = vsel %vm7010_vm2, %v8176_v24, %v8171_v63  ;;  %v5679_v25 = vrot.slane %v5663_v20, 9  ;;  %v9745_v63 = vld [vmem:[#allocation6_spill] sm:$0xff] }
  0xcb   : > { %v5677_v21 = vrot.slane %v5661_v18, 9  ;;  %v8318_v17 = vsel %vm7321_vm5, %v3002_v44, %v3003_v0  ;;  %v3009_v11 = vrot.slane %v3007_v28, 4  ;;  %v9743_v45 = vrot.slane %v7517_v32, 5  ;;  %v5664_v18 = vld [vmem:[%s6979_s26 + $0x90] sm:$0xe]  ;;  %v6894_v62 = vld [vmem:[%s6979_s26 + $0x60] sm:$0xff]  }
  0xcc   : > { %6518 = vmatmul.mubr.bf16.gmra.mxu1 %v6871_v47  ;;  %v6875_v47 = vld [vmem:[%s6979_s26 + $0xa8] sm:$0xff]   ;;  %v9744_v55 = vrot.slane %v8141_v58, 9  ;;  %v3014_v24 = vrot.slane %v9745_v63, 5  ;;  %v8335_v32 = vsel %vm7321_vm5, %v5679_v25, %v3007_v28  ;;  %v3021_v54 = vrot.slane %v9747_v36, 5 }
  0xcd   : > { %6521 = vmatprep.mubr.bf16.mxu1 %v6874_v5  ;;  %v6878_v5 = vld [vmem:[%s6979_s26 + $0xb4] sm:$0xff]   ;;  %v8293_v12 = vsel %vm7321_vm5, %v5677_v21, %v2993_v14  ;;  %v5655_v14 = vld [vmem:[%s6979_s26 + $0x24] sm:$0xe]  ;;  %v9746_v21 = vld [vmem:[#allocation7_spill] sm:$0xff]  ;;  %v8339_v58 = vsel %vm7321_vm5, %v3009_v11, %v3010_v26  ;;  %v5644_v0 = vcombine.low %v2538_v2, %v2548_v3  ;;  %v2941_v28 = vsel %vm7321_vm5, %v8119_v43, %v2940_v29 }
  0xce   : > { %v2938_v13 = vsel %vm7321_vm5, %v9744_v55, %v9743_v45  ;;  %v3017_v9 = vrot.slane %v9746_v21, 5  ;;  %v3016_v44 = vrot.slane %v3014_v24, 4  ;;  %v6879_v45 = vld [vmem:[%s6979_s26 + $0xc0] sm:$0xff]   ;;  %v2946_v26 = vrot.slane %v2944_v38, 4  ;;  %v5665_v2 = vld [vmem:[%s6979_s26 + $0x9c] sm:$0xe] }
  0xcf   : > { %v3023_v3 = vrot.slane %v3021_v54, 4  ;;  %v5681_v11 = vrot.slane %v5665_v2, 9  ;;  %v9749_v55 = vld [vmem:[#allocation10_spill] sm:$0xff]  ;;  %v5666_v63 = vld [vmem:[%s6979_s26 + $0xa8] sm:$0xe]  ;;  %v5701_v21 = vcombine.low %v2938_v13, %v2941_v28  ;;  %v9753_v28 = vrot.slane %v8144_v48, 9 }
  0xd0   : > { %v8360_v25 = vsel %vm7321_vm5, %v3016_v44, %v3017_v9  ;;  %v3028_v42 = vrot.slane %v9749_v55, 5  ;;  %v8483_v43 = vld [vmem:[%s6979_s26 + $0x34] sm:$0xf] }
  0xd1   : > { %6570 = vmatmul.mubr.bf16.gmra.mxu0 %v5642_v52  ;;  %v8373_v9 = vsel %vm7321_vm5, %v5681_v11, %v3021_v54  ;;  %v5667_v54 = vld [vmem:[%s6979_s26 + $0xb4] sm:$0xe]  ;;  %v3862_v39 = vshll.u32 %v8483_v43, 16 }
  0xd2   : > { %6573 = vmatprep.mubr.bf16.mxu0 %v5643_v37  ;;  %v5680_v37 = vrot.slane %v5664_v18, 9  ;;  %v5671_v18 = vrot.slane %v5655_v14, 9  ;;  %v3030_v36 = vrot.slane %v3028_v42, 4  ;;  %v9750_v14 = vrot.slane %v9739_v35, 5 }
  0xd3   : > { %v5683_v55 = vrot.slane %v5667_v54, 9 }
  0xd4   : > { %6522 = vmatmul.mubr.bf16.gmra.mxu1 %v6875_v47  ;;  %v9748_v47 = vld [vmem:[#allocation9_spill] sm:$0xff]  ;;  %v2953_v44 = vrot.slane %v9750_v14, 4  ;;  %v9755_v61 = vmov %v9750_v14  ;;  %v3045_v14 = vrot.slane %v8112_v51, 5  ;;  %v5803_v51 = vld [vmem:[%s6979_s26 + $0x30] sm:$0xf] }
  0xd5   : > { %6525 = vmatprep.mubr.bf16.mxu1 %v6878_v5  ;;  %v3024_v20 = vrot.slane %v9748_v47, 5  ;;  %v8355_v5 = vsel %vm7321_vm5, %v5680_v37, %v3014_v24  ;;  %v3031_v24 = vrot.slane %v8031_v4, 5  ;;  %v5682_v37 = vrot.slane %v5666_v63, 9 }
  0xd6   : > { %v9754_v63 = vrot.slane %v7622_v23, 5  ;;  %v2952_v48 = vsel %vm7321_vm5, %v5671_v18, %v9755_v61  ;;  %v2955_v23 = vsel %vm7321_vm5, %v2953_v44, %v2954_v15  ;;  %v8453_v61 = vld [vmem:[%s6979_s26 + $0x28] sm:$0xf] }
  0xd7   : > { %v8367_v29 = vsel %vm7321_vm5, %v3023_v3, %v3024_v20  ;;  %v9751_v20 = vld [vmem:[#allocation11_spill] sm:$0xff]  ;;  %v8382_v4 = vsel %vm7321_vm5, %v5682_v37, %v3028_v42  ;;  %v8386_v13 = vsel %vm7321_vm5, %v3030_v36, %v3031_v24  ;;  %v2945_v3 = vsel %vm7321_vm5, %v9753_v28, %v2944_v38  ;;  %v5668_v37 = vld [vmem:[%s6979_s26 + $0xc0] sm:$0xe]  ;;  %v9756_v38 = vld [vmem:[#allocation13_spill] sm:$0xff] }
  0xd8   : > { %v3035_v2 = vrot.slane %v9751_v20, 5  ;;  %v2948_v24 = vsel %vm7321_vm5, %v2946_v26, %v9754_v63  ;;  %v3042_v36 = vrot.slane %v9756_v38, 5  ;;  %v5684_v18 = vrot.slane %v5668_v37, 9  ;;  %v6889_v20 = vld [vmem:[%s9667_s1 + $0x230] sm:$0xff]   ;;  %v5800_v63 = vld [vmem:[%s6979_s26 + $0x24] sm:$0xf] }
  0xd9   : > { %6574 = vmatmul.mubr.bf16.gmra.mxu0 %v5644_v0  ;;  %v5702_v15 = vcombine.low %v2945_v3, %v2948_v24  ;;  %v5703_v54 = vcombine.low %v2952_v48, %v2955_v23  ;;  %v6888_v28 = vld [vmem:[%s9667_s1 + $0x1f0] sm:$0xff]   ;;  %v6887_v48 = vld [vmem:[%s6979_s26 + $0x3c] sm:$0xff]   ;;  %v3829_v37 = vshrl.u32 %v5800_v63, 16  ;;  %v6890_v38 = vld [vmem:[%s6979_s26 + $0x48] sm:$0xff]   ;;  %v3838_v23 = vshll.u32 %v8453_v61, 16 }
  0xda   : > { %6641 = vmatprep.mubr.bf16.mxu0 %v6882_v8  ;;  %v9752_v8 = vld [vmem:[#allocation12_spill] sm:$0xff]  ;;  %v3037_v42 = vrot.slane %v3035_v2, 4  ;;  %v8417_v26 = vsel %vm7321_vm5, %v5683_v55, %v3035_v2  ;;  %v3044_v60 = vrot.slane %v3042_v36, 4  ;;  %v8430_v44 = vsel %vm7321_vm5, %v5684_v18, %v3042_v36  ;;  %v5797_v2 = vld [vmem:[%s6979_s26 + $0x18] sm:$0xf]  ;;  %v6893_v55 = vld [vmem:[%s9667_s1 + $0x228] sm:$0xff]  }
  0xdb   : > { %v3038_v0 = vrot.slane %v9752_v8, 5  ;;  %v3808_v24 = vshll.u32 %v5797_v2, 16  ;;  %v6892_v36 = vld [vmem:[%s9667_s1 + $0x1e8] sm:$0xff]   ;;  %v5799_v18 = vld [vmem:[%s6979_s26 + $0x20] sm:$0x1]  ;;  %v3831_v11 = vrot.slane %v3829_v37, 4 }
  0xdc   : > { %6526 = vmatmul.mubr.bf16.gmra.mxu1 %v6879_v45  ;;  %v6883_v45 = vld [vmem:[%s6979_s26 + $0x24] sm:$0xff]   ;;  %v8435_v8 = vsel %vm7321_vm5, %v3044_v60, %v3045_v14  ;;  %v3832_v14 = vshll.u32 %v5800_v63, 16  ;;  %v8473_v63 = vld [vmem:[%s6979_s26 + $0x2c] sm:$0x1]  ;;  %v3853_v37 = vshrl.u32 %v5803_v51, 16 }
  0xdd   : > { %6593 = vmatprep.mubr.bf16.mxu1 %v5701_v21  ;;  %v6886_v21 = vld [vmem:[%s6979_s26 + $0x30] sm:$0xff]   ;;  %v8421_v35 = vsel %vm7321_vm5, %v3037_v42, %v3038_v0  ;;  %v8438_v0 = vld [vmem:[%s6979_s26 + $0x1c] sm:$0xf]  ;;  %v3805_v42 = vshrl.u32 %v5797_v2, 16 }
  0xde   : > { %v4576_v3 = vrot.slane %v8438_v0, 5  ;;  %v3834_v47 = vrot.slane %v3832_v14, 5 }
  0xdf   : > { %v3807_v60 = vrot.slane %v3805_v42, 4  ;;  %v6896_v42 = vld [vmem:[%s9667_s1 + $0x1e0] sm:$0xff]  }
  0xe1   : > { %6642 = vmatmul.mubr.bf16.vlgmr.msra.gmra.mxu0 %v6883_v45  ;;  %v3818_v45 = vshrl.u32 %v8438_v0, 16 }
  0xe2   : > { %6722 = vmatpush3.bf16.msra.mxu0 %v8149_v49  ;;  %6645 = vmatprep.mubr.bf16.mxu0 %v6886_v21  ;;  %v3814_v49 = vshll.u32 %v8438_v0, 16  ;;  %v3842_v21 = vshrl.u32 %v8453_v61, 16 }
  0xe3   : > { %6723 = vmatprep.subr.bf16.mxu0 %v6889_v20 }
  0xe4   : > { %6594 = vmatmul.mubr.bf16.vlgmr.msra.gmra.mxu1 %v5702_v15  ;;  %v5885_v15 = vld [vmem:[%s6979_s26 + $0x18] sm:$0xe]  ;;  %v8468_v2 = vrot.slane %v3814_v49, 5  ;;  %v3824_v49 = vshll.u32 %v5799_v18, 16  ;;  %v3844_v0 = vrot.slane %v3842_v21, 4 }
  0xe5   : > { %6674 = vmatpush3.bf16.msra.mxu1 %v8159_v33  ;;  %6597 = vmatprep.mubr.bf16.mxu1 %v5703_v54  ;;  %v6897_v33 = vld [vmem:[%s9667_s1 + $0x220] sm:$0xff]   ;;  %v3820_v54 = vrot.slane %v3818_v45, 4  ;;  %v8480_v45 = vrot.slane %v3838_v23, 5  ;;  %v6901_v23 = vld [vmem:[%s9667_s1 + $0x218] sm:$0xff]  }
  0xe6   : > { %6675 = vmatprep.subr.bf16.mxu1 %v6888_v28  ;;  %6724 = vmatpush3.bf16.msra.mxu0 %v6889_v20  ;;  %v3810_v20 = vrot.slane %v3808_v24, 5 }
  0xe7   : > { %6725 = vmatprep.subr.bf16.mxu0 %v6893_v55  ;;  %v3821_v21 = vor.u32 %v3820_v54, %v8468_v2  ;;  %v3845_v54 = vor.u32 %v3844_v0, %v8480_v45 }
  0xe9   : > { %6646 = vmatmul.mubr.bf16.gmra.mxu0 %v6887_v48  ;;  %6676 = vmatpush3.bf16.msra.mxu1 %v6888_v28  ;;  %v5901_v48 = vrot.slane %v5885_v15, 9  ;;  %v4579_v28 = vrot.slane %v5799_v18, 5  ;;  %v4578_v18 = vrot.slane %v4576_v3, 4  ;;  %v3848_v15 = vshll.u32 %v8473_v63, 16 }
  0xea   : > { %6649 = vmatprep.mubr.bf16.mxu0 %v6890_v38  ;;  %6677 = vmatprep.subr.bf16.mxu1 %v6892_v36  ;;  %v3856_v38 = vshll.u32 %v5803_v51, 16  ;;  %v4583_v51 = vrot.slane %v8453_v61, 5  ;;  %v3866_v61 = vshrl.u32 %v8483_v43, 16 }
  0xeb   : > { %6726 = vmatpush3.bf16.msra.mxu0 %v6893_v55  ;;  %v3811_v55 = vor.u32 %v3810_v20, %v3807_v60  ;;  %v6900_v60 = vld [vmem:[%s9667_s1 + $0x1d8] sm:$0xff]   ;;  %v8506_v20 = vrot.slane %v3824_v49, 5  ;;  %v6905_v49 = vld [vmem:[%s9667_s1 + $0x210] sm:$0xff]  }
  0xec   : > { %v8478_v24 = vpop.f32.mrf.mxu0  ;;  %6598 = vmatmul.mubr.bf16.gmra.mxu1 %v5704_v40  ;;  %6727 = vmatprep.subr.bf16.mxu0 %v6897_v33  ;;  %v8488_v14 = vpop.f32.mrf.mxu1  ;;  %v3835_v40 = vor.u32 %v3834_v47, %v3831_v11  ;;  %v3855_v47 = vrot.slane %v3853_v37, 4  ;;  %v3858_v11 = vrot.slane %v3856_v38, 5  ;;  %v8533_v37 = vld [vmem:[%s6979_s26 + $0x40] sm:$0xf]  ;;  %v4585_v50 = vrot.slane %v4583_v51, 4 }
  0xed   : > { %9757 = vst [vmem:[#allocation2_spill] sm:$0xff] %v8488_v14  ;;  %6601 = vmatprep.mubr.bf16.mxu1 %v5705_v41  ;;  %6678 = vmatpush3.bf16.msra.mxu1 %v6892_v36  ;;  %v8513_v41 = vsel %vm7321_vm5, %v5901_v48, %v4576_v3  ;;  %v5806_v36 = vld [vmem:[%s6979_s26 + $0x3c] sm:$0xf]  ;;  %v8522_v0 = vrot.slane %v3811_v55, 4  ;;  %v8528_v3 = vsel %vm7321_vm5, %v4578_v18, %v4579_v28  ;;  %v8530_v48 = vrot.slane %v3848_v15, 5  ;;  %v6904_v55 = vld [vmem:[%s9667_s1 + $0x1d0] sm:$0xff]  }
  0xee   : > { %v8499_v57 = vpop.f32.mrf.mxu0  ;;  %6679 = vmatprep.subr.bf16.mxu1 %v6896_v42  ;;  %v8517_v52 = vpop.f32.mrf.mxu1  ;;  %v8540_v22 = vrot.slane %v3835_v40, 4  ;;  %v4586_v28 = vrot.slane %v8473_v63, 5  ;;  %v3846_v18 = vrot.slane %v3845_v54, 4  ;;  %v8544_v15 = vld [vmem:[%s6979_s26 + $0x38] sm:$0x1]  ;;  %v3880_v30 = vshll.u32 %v5806_v36, 16 }
  0xef   : > { %6728 = vmatpush3.bf16.msra.mxu0 %v6897_v33  ;;  %9758 = vst [vmem:[#allocation5_spill] sm:$0xff] %v8517_v52  ;;  %v8524_v33 = vrot.slane %v3821_v21, 4  ;;  %v5902_v21 = vrot.slane %v5886_v6, 9  ;;  %v3859_v1 = vor.u32 %v3858_v11, %v3855_v47  ;;  %v8548_v52 = vrot.slane %v3866_v61, 4  ;;  %v5887_v40 = vld [vmem:[%s6979_s26 + $0x30] sm:$0xe] }
  0xf0   : > { %6729 = vmatprep.subr.bf16.mxu0 %v6901_v23  ;;  %v8535_v38 = vpop.f32.mrf.mxu0  ;;  %v3886_v6 = vshll.u32 %v8533_v37, 16  ;;  %v3890_v63 = vshrl.u32 %v8533_v37, 16  ;;  %v8556_v54 = vpop.f32.mrf.mxu1  ;;  %v9761_v11 = vcombine.low %v8269_v31, %v8260_v19  ;;  %v6895_v61 = vld [vmem:[%s6979_s26 + $0x6c] sm:$0xff]   ;;  %v8589_v19 = vsel %vm7321_vm5, %v4585_v50, %v4586_v28  ;;  %v8607_v28 = vld [vmem:[%s6979_s26 + $0x44] sm:$0x1] }
  0xf1   : > { %6650 = vmatmul.mubr.bf16.gmra.mxu0 %v6891_v7  ;;  %6680 = vmatpush3.bf16.msra.mxu1 %v6896_v42  ;;  %v8546_v7 = vrot.slane %v3862_v39, 5  ;;  %v3877_v42 = vshrl.u32 %v5806_v36, 16  ;;  %9760 = vst [vmem:[#allocation4_spill] sm:$0xff] %v8556_v54  ;;  %v3817_v39 = vsel %vm7010_vm2, %v8522_v0, %v8468_v2  ;;  %v3827_v47 = vsel %vm7010_vm2, %v8524_v33, %v8506_v20  ;;  %v6898_v36 = vld [vmem:[%s6979_s26 + $0x78] sm:$0xff]   ;;  %v8600_v33 = vld [vmem:[%s6979_s26 + $0x4c] sm:$0xf] }
  0xf2   : > { %6653 = vmatprep.mubr.bf16.mxu0 %v6894_v62  ;;  %6681 = vmatprep.subr.bf16.mxu1 %v6900_v60  ;;  %v9759_v62 = vcombine.low %v8238_v10, %v8242_v59  ;;  %v4590_v59 = vrot.slane %v8483_v43, 5  ;;  %v3841_v2 = vsel %vm7010_vm2, %v8540_v22, %v8480_v45  ;;  %v8585_v20 = vsel %vm7321_vm5, %v5902_v21, %v4583_v51  ;;  %v5809_v43 = vld [vmem:[%s6979_s26 + $0x48] sm:$0xf]  ;;  %v8611_v54 = vpop.f32.mrf.mxu1  ;;  %v5888_v14 = vld [vmem:[%s6979_s26 + $0x3c] sm:$0xe] }
  0xf3   : > { %6730 = vmatpush3.bf16.msra.mxu0 %v6901_v23  ;;  %v6909_v23 = vld [vmem:[%s9667_s1 + $0x208] sm:$0xff]   ;;  %v3872_v31 = vshll.u32 %v8544_v15, 16  ;;  %v3851_v22 = vsel %vm7010_vm2, %v3846_v18, %v8530_v48  ;;  %v5903_v45 = vrot.slane %v5887_v40, 9  ;;  %v3879_v0 = vrot.slane %v3877_v42, 4  ;;  %9763 = vst [vmem:[#allocation6_spill] sm:$0xff] %v8611_v54  ;;  %v6912_v42 = vld [vmem:[%s9667_s1 + $0x1c0] sm:$0xff]  }
  0xf4   : > { %6602 = vmatmul.mubr.bf16.gmra.mxu1 %v9759_v62  ;;  %6731 = vmatprep.subr.bf16.mxu0 %v6905_v49  ;;  %v8577_v62 = vpop.f32.mrf.mxu0  ;;  %v3882_v51 = vrot.slane %v3880_v30, 5  ;;  %v8602_v50 = vrot.slane %v3859_v1, 4  ;;  %v3869_v21 = vor.u32 %v8548_v52, %v8546_v7  ;;  %v3892_v10 = vrot.slane %v3890_v63, 4  ;;  %v6913_v30 = vld [vmem:[%s9667_s1 + $0x200] sm:$0xff]  }
  0xf5   : > { %6605 = vmatprep.mubr.bf16.mxu1 %v9761_v11  ;;  %6682 = vmatpush3.bf16.msra.mxu1 %v6900_v60  ;;  %9762 = vst [vmem:[#allocation3_spill] sm:$0xff] %v8577_v62  ;;  %v6908_v60 = vld [vmem:[%s9667_s1 + $0x1c8] sm:$0xff]   ;;  %v8609_v11 = vrot.slane %v3886_v6, 5  ;;  %v4592_v48 = vrot.slane %v4590_v59, 4  ;;  %v3901_v1 = vshrl.u32 %v5809_v43, 16  ;;  %v3904_v18 = vshll.u32 %v5809_v43, 16 }
  0xf6   : > { %6683 = vmatprep.subr.bf16.mxu1 %v6904_v55  ;;  %v8622_v40 = vcombine.low %v3817_v39, %v3827_v47  ;;  %v3914_v63 = vshrl.u32 %v8600_v33, 16  ;;  %v8630_v43 = vrot.slane %v3872_v31, 5  ;;  %v3896_v54 = vshll.u32 %v8607_v28, 16  ;;  %v5812_v39 = vld [vmem:[%s6979_s26 + $0x54] sm:$0xf]  ;;  %v6899_v6 = vld [vmem:[%s6979_s26 + $0x84] sm:$0xff]  }
  0xf7   : > { %6732 = vmatpush3.bf16.msra.mxu0 %v6905_v49  ;;  %v4593_v49 = vrot.slane %v8544_v15, 5  ;;  %v8617_v52 = vpop.f32.mrf.mxu0  ;;  %v3910_v15 = vshll.u32 %v8600_v33, 16  ;;  %v4597_v31 = vrot.slane %v8533_v37, 5  ;;  %v9767_v37 = vcombine.low %v8293_v12, %v8297_v46  ;;  %v6902_v47 = vld [vmem:[%s6979_s26 + $0x90] sm:$0xff]  }
  0xf8   : > { %6733 = vmatprep.subr.bf16.mxu0 %v6909_v23  ;;  %9764 = vst [vmem:[#allocation7_spill] sm:$0xff] %v8617_v52 }
  0xf9   : > { %6654 = vmatmul.mubr.bf16.gmra.mxu0 %v6895_v61  ;;  %6684 = vmatpush3.bf16.msra.mxu1 %v6904_v55  ;;  %v8628_v61 = vcombine.low %v3841_v2, %v3851_v22  ;;  %v3883_v55 = vor.u32 %v3882_v51, %v3879_v0  ;;  %v3893_v2 = vor.u32 %v3892_v10, %v8609_v11  ;;  %v8646_v22 = vld [vmem:[%s6979_s26 + $0x58] sm:$0xf]  ;;  %v8653_v51 = vrot.slane %v3869_v21, 4 }
  0xfa   : > { %6657 = vmatprep.mubr.bf16.mxu0 %v6898_v36  ;;  %6685 = vmatprep.subr.bf16.mxu1 %v6908_v60  ;;  %v8641_v36 = vsel %vm7321_vm5, %v5903_v45, %v4590_v59  ;;  %v9765_v0 = vcombine.low %v8276_v16, %v8281_v53  ;;  %v8657_v59 = vsel %vm7321_vm5, %v4592_v48, %v4593_v49  ;;  %v3903_v45 = vrot.slane %v3901_v1, 4  ;;  %v8664_v16 = vpop.f32.mrf.mxu0  ;;  %v5811_v1 = vld [vmem:[%s6979_s26 + $0x50] sm:$0x1] }
  0xfb   : > { %6734 = vmatpush3.bf16.msra.mxu0 %v6909_v23  ;;  %v8651_v23 = vpop.f32.mrf.mxu1  ;;  %v3906_v10 = vrot.slane %v3904_v18, 5  ;;  %9768 = vst [vmem:[#allocation9_spill] sm:$0xff] %v8664_v16  ;;  %v5904_v53 = vrot.slane %v5888_v14, 9  ;;  %v3916_v21 = vrot.slane %v3914_v63, 4  ;;  %v3884_v48 = vrot.slane %v3883_v55, 4 }
  0xfc   : > { %6606 = vmatmul.mubr.bf16.gmra.mxu1 %v9765_v0  ;;  %9766 = vst [vmem:[#allocation8_spill] sm:$0xff] %v8651_v23  ;;  %6735 = vmatprep.subr.bf16.mxu0 %v6913_v30  ;;  %v8666_v0 = vrot.slane %v3910_v15, 5  ;;  %v3925_v23 = vshrl.u32 %v5812_v39, 16  ;;  %v3898_v49 = vrot.slane %v3896_v54, 5  ;;  %v3928_v18 = vshll.u32 %v5812_v39, 16  ;;  %v8682_v39 = vpop.f32.mrf.mxu0 }
  0xfd   : > { %6609 = vmatprep.mubr.bf16.mxu1 %v9767_v37  ;;  %6686 = vmatpush3.bf16.msra.mxu1 %v6908_v60  ;;  %v3934_v52 = vshll.u32 %v8646_v22, 16  ;;  %v3894_v12 = vrot.slane %v3893_v2, 4  ;;  %v4599_v46 = vrot.slane %v4597_v31, 4  ;;  %v4600_v37 = vrot.slane %v8607_v28, 5  ;;  %v8672_v60 = vpop.f32.mrf.mxu1  ;;  %v5815_v55 = vld [vmem:[%s6979_s26 + $0x60] sm:$0xf] }
  0xfe   : > { %6687 = vmatprep.subr.bf16.mxu1 %v6912_v42  ;;  %v3938_v14 = vshrl.u32 %v8646_v22, 16  ;;  %9769 = vst [vmem:[#allocation10_spill] sm:$0xff] %v8672_v60  ;;  %v3875_v15 = vsel %vm7010_vm2, %v8653_v51, %v8630_v43  ;;  %v3907_v63 = vor.u32 %v3906_v10, %v3903_v45  ;;  %v3917_v28 = vor.u32 %v3916_v21, %v8666_v0  ;;  %v5889_v60 = vld [vmem:[%s6979_s26 + $0x48] sm:$0xe] }
  0xff   : > { %6736 = vmatpush3.bf16.msra.mxu0 %v6913_v30  ;;  %v4604_v30 = vrot.slane %v8600_v33, 5  ;;  %v3920_v2 = vshll.u32 %v5811_v1, 16  ;;  %v3927_v16 = vrot.slane %v3925_v23, 4  ;;  %v3930_v62 = vrot.slane %v3928_v18, 5  ;;  %v8707_v10 = vpop.f32.mrf.mxu1 }
 0x100   : > { %v3889_v43 = vsel %vm7010_vm2, %v3884_v48, %v8609_v11  ;;  %v8691_v33 = vsel %vm7321_vm5, %v5904_v53, %v4597_v31  ;;  %v3899_v51 = vsel %vm7010_vm2, %v3894_v12, %v3898_v49  ;;  %v8699_v23 = vsel %vm7321_vm5, %v4599_v46, %v4600_v37  ;;  %9771 = vst [vmem:[#allocation11_spill] sm:$0xff] %v8707_v10  ;;  %v8710_v49 = vld [vmem:[%s6979_s26 + $0x64] sm:$0xf]  ;;  %v6903_v12 = vld [vmem:[%s6979_s26 + $0x9c] sm:$0xff]   ;;  %v8716_v46 = vpop.f32.mrf.mxu0 }
 0x101   : > { %6658 = vmatmul.mubr.bf16.gmra.mxu0 %v6899_v6  ;;  %6688 = vmatpush3.bf16.msra.mxu1 %v6912_v42  ;;  %v8693_v6 = vrot.slane %v3934_v52, 5  ;;  %v3940_v42 = vrot.slane %v3938_v14, 4  ;;  %v3949_v45 = vshrl.u32 %v5815_v55, 16  ;;  %v3952_v11 = vshll.u32 %v5815_v55, 16  ;;  %v6906_v55 = vld [vmem:[%s6979_s26 + $0xa8] sm:$0xff]  }
 0x102   : > { %6661 = vmatprep.mubr.bf16.mxu0 %v6902_v47  ;;  %v8702_v47 = vld [vmem:[%s6979_s26 + $0x5c] sm:$0x1]  ;;  %v9770_v31 = vcombine.low %v8309_v34, %v8318_v17  ;;  %v3908_v52 = vrot.slane %v3907_v63, 4  ;;  %v5905_v53 = vrot.slane %v5889_v60, 9  ;;  %v4606_v21 = vrot.slane %v4604_v30, 4 }
 0x103   : > { %v4607_v48 = vrot.slane %v5811_v1, 5  ;;  %v9772_v18 = vcombine.low %v8335_v32, %v8339_v58  ;;  %v3918_v37 = vrot.slane %v3917_v28, 4  ;;  %v3922_v14 = vrot.slane %v3920_v2, 5  ;;  %v5890_v63 = vld [vmem:[%s6979_s26 + $0x54] sm:$0xe]  ;;  %v8734_v28 = vpop.f32.mrf.mxu1 }
 0x104   : > { %6610 = vmatmul.mubr.bf16.gmra.mxu1 %v9770_v31  ;;  %v3931_v34 = vor.u32 %v3930_v62, %v3927_v16  ;;  %v4611_v17 = vrot.slane %v8646_v22, 5  ;;  %v3941_v60 = vor.u32 %v3940_v42, %v8693_v6  ;;  %v3944_v1 = vshll.u32 %v8702_v47, 16  ;;  %9774 = vst [vmem:[#allocation12_spill] sm:$0xff] %v8734_v28  ;;  %v5891_v62 = vld [vmem:[%s6979_s26 + $0x60] sm:$0xe] }
 0x105   : > { %6613 = vmatprep.mubr.bf16.mxu1 %v9772_v18  ;;  %v3951_v31 = vrot.slane %v3949_v45, 4  ;;  %v3954_v54 = vrot.slane %v3952_v11, 5  ;;  %v9773_v32 = vsel %vm7010_vm2, %v8602_v50, %v8546_v7  ;;  %v3958_v22 = vshll.u32 %v8710_v49, 16 }
 0x106   : > { %v8728_v58 = vcombine.low %v9773_v32, %v3875_v15  ;;  %v3962_v16 = vshrl.u32 %v8710_v49, 16  ;;  %v8736_v2 = vcombine.low %v3889_v43, %v3899_v51  ;;  %v3913_v42 = vsel %vm7010_vm2, %v3908_v52, %v8666_v0  ;;  %v5818_v15 = vld [vmem:[%s6979_s26 + $0x6c] sm:$0xf]  ;;  %v8754_v32 = vld [vmem:[%s6979_s26 + $0x70] sm:$0xf] }
 0x107   : > { %v8743_v7 = vsel %vm7321_vm5, %v5905_v53, %v4604_v30  ;;  %v8747_v50 = vsel %vm7321_vm5, %v4606_v21, %v4607_v48  ;;  %v8750_v45 = vpop.f32.mrf.mxu0  ;;  %v3932_v43 = vrot.slane %v3931_v34, 4  ;;  %v5906_v51 = vrot.slane %v5890_v63, 9  ;;  %v5817_v53 = vld [vmem:[%s6979_s26 + $0x68] sm:$0x1] }
 0x108   : > { %9775 = vst [vmem:[#allocation13_spill] sm:$0xff] %v8750_v45  ;;  %v4613_v11 = vrot.slane %v4611_v17, 4  ;;  %v4614_v18 = vrot.slane %v8702_v47, 5  ;;  %v3923_v0 = vsel %vm7010_vm2, %v3918_v37, %v3922_v14  ;;  %v3942_v30 = vrot.slane %v3941_v60, 4  ;;  %v5893_v45 = vld [vmem:[%s6979_s26 + $0x78] sm:$0xe] }
 0x109   : > { %6662 = vmatmul.mubr.bf16.gmra.mxu0 %v6903_v12  ;;  %v3946_v52 = vrot.slane %v3944_v1, 5  ;;  %v3955_v21 = vor.u32 %v3954_v54, %v3951_v31  ;;  %v8759_v48 = vrot.slane %v3958_v22, 5  ;;  %v3964_v12 = vrot.slane %v3962_v16, 4  ;;  %v6907_v31 = vld [vmem:[%s6979_s26 + $0xb4] sm:$0xff]  }
 0x10a   : > { %6665 = vmatprep.mubr.bf16.mxu0 %v6906_v55  ;;  %v3973_v34 = vshrl.u32 %v5818_v15, 16  ;;  %v3976_v63 = vshll.u32 %v5818_v15, 16  ;;  %v9776_v47 = vcombine.low %v8355_v5, %v8360_v25  ;;  %v4618_v14 = vrot.slane %v8710_v49, 5  ;;  %v8776_v5 = vpop.f32.mrf.mxu0 }
 0x10b   : > { %v3982_v54 = vshll.u32 %v8754_v32, 16  ;;  %v3986_v60 = vshrl.u32 %v8754_v32, 16  ;;  %v9778_v1 = vcombine.low %v8373_v9, %v8367_v29  ;;  %9779 = vst [vmem:[#allocation15_spill] sm:$0xff] %v8776_v5  ;;  %v8778_v25 = vcombine.low %v3913_v42, %v3923_v0  ;;  %v5821_v29 = vld [vmem:[%s6979_s26 + $0x78] sm:$0xf]  ;;  %v6910_v9 = vld [vmem:[%s6979_s26 + $0xc0] sm:$0xff]  }
 0x10c   : > { %6614 = vmatmul.mubr.bf16.gmra.mxu1 %v9776_v47  ;;  %v8765_v55 = vpop.f32.mrf.mxu1  ;;  %v3937_v22 = vsel %vm7010_vm2, %v3932_v43, %v8693_v6  ;;  %v8785_v49 = vsel %vm7321_vm5, %v5906_v51, %v4611_v17  ;;  %v8789_v16 = vsel %vm7321_vm5, %v4613_v11, %v4614_v18  ;;  %v3947_v15 = vsel %vm7010_vm2, %v3942_v30, %v3946_v52  ;;  %v8802_v43 = vld [vmem:[%s6979_s26 + $0x74] sm:$0x1]  ;;  %v8859_v5 = vld [vmem:[%s6979_s26 + $0x8c] sm:$0x1] }
 0x10d   : > { %9777 = vst [vmem:[#allocation14_spill] sm:$0xff] %v8765_v55  ;;  %6617 = vmatprep.mubr.bf16.mxu1 %v9778_v1  ;;  %v8795_v47 = vrot.slane %v3955_v21, 4  ;;  %v3968_v42 = vshll.u32 %v5817_v53, 16  ;;  %v5907_v0 = vrot.slane %v5891_v62, 9  ;;  %v8798_v1 = vld [vmem:[%s6979_s26 + $0x7c] sm:$0xf]  ;;  %v3965_v6 = vor.u32 %v3964_v12, %v8759_v48  ;;  %v8808_v21 = vpop.f32.mrf.mxu0 }
 0x10e   : > { %v4621_v17 = vrot.slane %v5817_v53, 5  ;;  %v3975_v51 = vrot.slane %v3973_v34, 4  ;;  %v3978_v11 = vrot.slane %v3976_v63, 5  ;;  %v8804_v18 = vpop.f32.mrf.mxu1  ;;  %v4620_v37 = vrot.slane %v4618_v14, 4  ;;  %9781 = vst [vmem:[#allocation17_spill] sm:$0xff] %v8808_v21 }
 0x10f   : > { %9780 = vst [vmem:[#allocation16_spill] sm:$0xff] %v8804_v18  ;;  %v8806_v55 = vrot.slane %v3982_v54, 5  ;;  %v3988_v30 = vrot.slane %v3986_v60, 4  ;;  %v3997_v52 = vshrl.u32 %v5821_v29, 16  ;;  %v5892_v53 = vld [vmem:[%s6979_s26 + $0x6c] sm:$0xe]  ;;  %v8815_v18 = vcombine.low %v3937_v22, %v3947_v15 }
 0x110   : > { %v4000_v12 = vshll.u32 %v5821_v29, 16  ;;  %v4006_v34 = vshll.u32 %v8798_v1, 16  ;;  %v4010_v63 = vshrl.u32 %v8798_v1, 16  ;;  %v8817_v54 = vrot.slane %v3968_v42, 5  ;;  %v5824_v62 = vld [vmem:[%s6979_s26 + $0x84] sm:$0xf]  ;;  %v8838_v42 = vpop.f32.mrf.mxu1 }
 0x111   : > { %6666 = vmatmul.mubr.bf16.gmra.mxu0 %v6907_v31  ;;  %9782 = vst [vmem:[#allocation18_spill] sm:$0xff] %v8815_v18  ;;  %v8821_v60 = vsel %vm7321_vm5, %v5907_v0, %v4618_v14  ;;  %v3992_v31 = vshll.u32 %v8802_v43, 16  ;;  %v8829_v28 = vrot.slane %v3965_v6, 4  ;;  %v4625_v22 = vrot.slane %v8754_v32, 5  ;;  %v8833_v15 = vld [vmem:[%s6979_s26 + $0x88] sm:$0xf] }
 0x112   : > { %6669 = vmatprep.mubr.bf16.mxu0 %v6910_v9  ;;  %v3979_v9 = vor.u32 %v3978_v11, %v3975_v51  ;;  %v9783_v14 = vcombine.low %v8382_v4, %v8386_v13  ;;  %9784 = vst [vmem:[#allocation19_spill] sm:$0xff] %v8838_v42  ;;  %v6911_v0 = vld [vmem:[%s6979_s26 + $0xcc] sm:$0xff]   ;;  %v8843_v10 = vsel %vm7321_vm5, %v4620_v37, %v4621_v17  ;;  %v5908_v6 = vrot.slane %v5892_v53, 9  ;;  %v8846_v11 = vpop.f32.mrf.mxu0  ;;  %v8852_v4 = vld [vmem:[%s6979_s26 + $0x80] sm:$0x1] }
 0x113   : > { %v3989_v29 = vor.u32 %v3988_v30, %v8806_v55  ;;  %v3999_v51 = vrot.slane %v3997_v52, 4  ;;  %9785 = vst [vmem:[#allocation20_spill] sm:$0xff] %v8846_v11  ;;  %v9786_v32 = vcombine.low %v8417_v26, %v8421_v35  ;;  %v4002_v13 = vrot.slane %v4000_v12, 5 }
 0x114   : > { %6618 = vmatmul.mubr.bf16.gmra.mxu1 %v9783_v14  ;;  %v8854_v14 = vrot.slane %v4006_v34, 5  ;;  %v4012_v42 = vrot.slane %v4010_v63, 4  ;;  %v4021_v21 = vshrl.u32 %v5824_v62, 16  ;;  %v3994_v37 = vrot.slane %v3992_v31, 5 }
 0x115   : > { %6621 = vmatprep.mubr.bf16.mxu1 %v9786_v32  ;;  %v4628_v17 = vrot.slane %v8802_v43, 5  ;;  %v4024_v30 = vshll.u32 %v5824_v62, 16  ;;  %v4030_v52 = vshll.u32 %v8833_v15, 16  ;;  %v3980_v53 = vrot.slane %v3979_v9, 4  ;;  %v8862_v32 = vpop.f32.mrf.mxu1 }
 0x116   : > { %v4627_v11 = vrot.slane %v4625_v22, 4  ;;  %v4023_v26 = vrot.slane %v4021_v21, 4  ;;  %v4034_v35 = vshrl.u32 %v8833_v15, 16  ;;  %v3990_v12 = vrot.slane %v3989_v29, 4 }
 0x117   : > { %v4016_v34 = vshll.u32 %v8852_v4, 16  ;;  %v4026_v63 = vrot.slane %v4024_v30, 5  ;;  %v8865_v31 = vrot.slane %v4030_v52, 5  ;;  %v4003_v62 = vor.u32 %v4002_v13, %v3999_v51  ;;  %v5894_v52 = vld [vmem:[%s6979_s26 + $0x84] sm:$0xe] }
 0x118   : > { %v8867_v43 = vpop.f32.mrf.mxu0  ;;  %v4013_v9 = vor.u32 %v4012_v42, %v8854_v14  ;;  %v4632_v21 = vrot.slane %v8798_v1, 5  ;;  %v4036_v18 = vrot.slane %v4034_v35, 4  ;;  %v9787_v29 = vcombine.low %v8513_v41, %v8528_v3 }
 0x119   : > { %6670 = vmatmul.mubr.bf16.gmra.mxu0 %v6911_v0  ;;  %v3971_v30 = vsel %vm7010_vm2, %v8829_v28, %v8817_v54  ;;  %v8883_v51 = vsel %vm7321_vm5, %v5908_v6, %v4625_v22  ;;  %v4040_v42 = vshll.u32 %v8859_v5, 16  ;;  %v3985_v41 = vsel %vm7010_vm2, %v3980_v53, %v8806_v55  ;;  %v5827_v54 = vld [vmem:[%s6979_s26 + $0x90] sm:$0xf] }
 0x11a   : > { %6737 = vmatprep.mubr.bf16.mxu0 %v9787_v29  ;;  %v8886_v1 = vpop.f32.mrf.mxu0  ;;  %v4027_v3 = vor.u32 %v4026_v63, %v4023_v26  ;;  %v4037_v13 = vor.u32 %v4036_v18, %v8865_v31  ;;  %v4639_v28 = vrot.slane %v8833_v15, 5  ;;  %v9789_v22 = vcombine.low %v8430_v44, %v8435_v8 }
 0x11b   : > { %v3995_v6 = vsel %vm7010_vm2, %v3990_v12, %v3994_v37  ;;  %v8904_v55 = vsel %vm7321_vm5, %v4627_v11, %v4628_v17  ;;  %v4018_v53 = vrot.slane %v4016_v34, 5  ;;  %v5909_v18 = vrot.slane %v5893_v45, 9  ;;  %v8913_v12 = vld [vmem:[%s6979_s26 + $0x94] sm:$0xf] }
 0x11c   : > { %v8895_v35 = vpop.f32.mrf.mxu1  ;;  %6622 = vmatmul.mubr.bf16.gmra.mxu1 %v9789_v22  ;;  %v8906_v26 = vpop.f32.mrf.mxu0  ;;  %v4004_v15 = vrot.slane %v4003_v62, 4  ;;  %v4014_v63 = vrot.slane %v4013_v9, 4  ;;  %v4634_v29 = vrot.slane %v4632_v21, 4  ;;  %v4635_v0 = vrot.slane %v8852_v4, 5 }
 0x11d   : > { %9788 = vst [vmem:[#allocation21_spill] sm:$0xff] %v8895_v35  ;;  %6689 = vmatprep.mubr.bf16.mxu1 %v8622_v40  ;;  %v4042_v8 = vrot.slane %v4040_v42, 5  ;;  %v5910_v37 = vrot.slane %v5894_v52, 9  ;;  %v4045_v11 = vshrl.u32 %v5827_v54, 16  ;;  %v4048_v17 = vshll.u32 %v5827_v54, 16 }
 0x11e   : > { %v8910_v44 = vpop.f32.mrf.mxu1  ;;  %v8915_v34 = vpop.f32.mrf.mxu0  ;;  %v4028_v45 = vrot.slane %v4027_v3, 4  ;;  %v4038_v22 = vrot.slane %v4037_v13, 4  ;;  %v4641_v40 = vrot.slane %v4639_v28, 4  ;;  %v4642_v62 = vrot.slane %v8859_v5, 5  ;;  %v8936_v54 = vld [vmem:[%s6979_s26 + $0x98] sm:$0x1] }
 0x11f   : > { %9790 = vst [vmem:[#allocation22_spill] sm:$0xff] %v8910_v44  ;;  %v9792_v4 = vsel %vm7010_vm2, %v8795_v47, %v8759_v48  ;;  %v8927_v52 = vcombine.low %v3985_v41, %v3995_v6  ;;  %v8933_v13 = vsel %vm7321_vm5, %v5909_v18, %v4632_v21  ;;  %v4009_v48 = vsel %vm7010_vm2, %v4004_v15, %v8854_v14  ;;  %v5830_v41 = vld [vmem:[%s6979_s26 + $0x9c] sm:$0xf]  ;;  %v8953_v6 = vld [vmem:[%s6979_s26 + $0xa0] sm:$0xf] }
 0x120   : > { %v8918_v9 = vpop.f32.mrf.mxu1  ;;  %v8925_v42 = vcombine.low %v9792_v4, %v3971_v30  ;;  %v6451_v5 = vpop.f32.mrf.mxu0  ;;  %v4019_v47 = vsel %vm7010_vm2, %v4014_v63, %v4018_v53  ;;  %v8948_v30 = vsel %vm7321_vm5, %v4634_v29, %v4635_v0  ;;  %v4054_v21 = vshll.u32 %v8913_v12, 16  ;;  %v9040_v35 = vld [vmem:[%s6979_s26 + $0xb0] sm:$0x1] }
 0x121   : > { %9791 = vst [vmem:[#allocation23_spill] sm:$0xff] %v8918_v9  ;;  %v9793_v9 = vcombine.low %v8585_v20, %v8589_v19  ;;  %v9795_v20 = vcombine.low %v8641_v36, %v8657_v59  ;;  %v8962_v19 = vsel %vm7321_vm5, %v5910_v37, %v4639_v28  ;;  %v4047_v14 = vrot.slane %v4045_v11, 4  ;;  %v8977_v37 = vld [vmem:[%s6979_s26 + $0x90] sm:$0xe] }
 0x122   : > { %v8955_v18 = vpop.f32.mrf.mxu1  ;;  %v4050_v53 = vrot.slane %v4048_v17, 5  ;;  %v4058_v0 = vshrl.u32 %v8913_v12, 16  ;;  %v1571_v15 = vpop.f32.mrf.mxu0  ;;  %v4033_v63 = vsel %vm7010_vm2, %v4028_v45, %v8865_v31  ;;  %v4043_v29 = vsel %vm7010_vm2, %v4038_v22, %v4042_v8 }
 0x123   : > { %6738 = vmatmul.mubr.bf16.vlgmr.msra.gmra.mxu0 %v9793_v9  ;;  %9794 = vst [vmem:[#allocation24_spill] sm:$0xff] %v8955_v18  ;;  %v8972_v36 = vsel %vm7321_vm5, %v4641_v40, %v4642_v62  ;;  %v4064_v59 = vshll.u32 %v8936_v54, 16  ;;  %v4069_v11 = vshrl.u32 %v5830_v41, 16  ;;  %v4072_v17 = vshll.u32 %v5830_v41, 16 }
 0x124   : > { %6741 = vmatprep.mubr.bf16.mxu0 %v9795_v20  ;;  %v6403_v28 = vpop.f32.mrf.mxu1  ;;  %6690 = vmatmul.mubr.bf16.vlgmr.msra.gmra.mxu1 %v8628_v61  ;;  %v4078_v9 = vshll.u32 %v8953_v6, 16  ;;  %v4082_v31 = vshrl.u32 %v8953_v6, 16  ;;  %v6452_v45 = vpop.f32.mrf.mxu0  ;;  %v8983_v22 = vcombine.low %v4009_v48, %v4019_v47  ;;  %v8987_v40 = vrot.slane %v4054_v21, 5  ;;  %v9001_v61 = vld [vmem:[%s6979_s26 + $0xa4] sm:$0x1] }
 0x125   : > { %v1127_v8 = vadd.f32 %v6403_v28, %v8478_v24  ;;  %6693 = vmatprep.mubr.bf16.mxu1 %v8728_v58  ;;  %v8989_v4 = vcombine.low %v4033_v63, %v4043_v29  ;;  %v4051_v20 = vor.u32 %v4050_v53, %v4047_v14  ;;  %v4060_v24 = vrot.slane %v4058_v0, 4  ;;  %v5833_v28 = vld [vmem:[%s6979_s26 + $0xa8] sm:$0xf]  ;;  %v9006_v14 = vld [vmem:[%s6979_s26 + $0xac] sm:$0xf] }
 0x126   : > { %v1118_v62 = vpop.f32.mrf.mxu1  ;;  %v1574_v48 = vpop.f32.mrf.mxu0  ;;  %v8997_v47 = vrot.slane %v4064_v59, 5  ;;  %v5911_v21 = vrot.slane %v8977_v37, 9  ;;  %v4071_v29 = vrot.slane %v4069_v11, 4  ;;  %v4074_v18 = vrot.slane %v4072_v17, 5 }
 0x127   : > { %v8994_v3 = vadd.f32 %v6451_v5, %v1127_v8  ;;  %v1119_v58 = vadd.f32 %v1118_v62, %v8499_v57  ;;  %v9003_v44 = vrot.slane %v4078_v9, 5  ;;  %v4084_v41 = vrot.slane %v4082_v31, 4  ;;  %v9801_v62 = vld [vmem:[#allocation3_spill] sm:$0xff] }
 0x128   : > { %v6404_v63 = vpop.f32.mrf.mxu1  ;;  %v6455_v5 = vpop.f32.mrf.mxu0  ;;  %v9798_v0 = vcombine.low %v8691_v33, %v8699_v23  ;;  %v4093_v59 = vshrl.u32 %v5833_v28, 16  ;;  %v4096_v37 = vshll.u32 %v5833_v28, 16  ;;  %v9799_v11 = vcombine.low %v8743_v7, %v8747_v50 }
 0x129   : > { %9796 = vst [vmem:[#allocation25_spill] sm:$0xff] %v8994_v3  ;;  %v9008_v53 = vadd.f32 %v1571_v15, %v1119_v58  ;;  %v1130_v57 = vadd.f32 %v6404_v63, %v8535_v38  ;;  %v9017_v17 = vrot.slane %v4051_v20, 4  ;;  %v4061_v15 = vor.u32 %v4060_v24, %v8987_v40  ;;  %v5896_v58 = vld [vmem:[%s6979_s26 + $0x9c] sm:$0xe] }
 0x12a   : > { %v1121_v8 = vpop.f32.mrf.mxu1  ;;  %v4646_v9 = vrot.slane %v8913_v12, 5  ;;  %v4088_v38 = vshll.u32 %v9001_v61, 16  ;;  %v1587_v23 = vpop.f32.mrf.mxu0  ;;  %v4649_v28 = vrot.slane %v8936_v54, 5  ;;  %v4102_v63 = vshll.u32 %v9006_v14, 16 }
 0x12b   : > { %9797 = vst [vmem:[#allocation26_spill] sm:$0xff] %v9008_v53  ;;  %6742 = vmatmul.mubr.bf16.gmra.mxu0 %v9798_v0  ;;  %v9022_v31 = vadd.f32 %v6452_v45, %v1130_v57  ;;  %v1122_v33 = vadd.f32 %v1121_v8, %v9801_v62  ;;  %v4075_v50 = vor.u32 %v4074_v18, %v4071_v29  ;;  %v4653_v12 = vrot.slane %v8953_v6, 5  ;;  %v9802_v57 = vld [vmem:[#allocation7_spill] sm:$0xff]  ;;  %v9803_v6 = vld [vmem:[#allocation9_spill] sm:$0xff] }
 0x12c   : > { %6745 = vmatprep.mubr.bf16.mxu0 %v9799_v11  ;;  %v6407_v7 = vpop.f32.mrf.mxu1  ;;  %6694 = vmatmul.mubr.bf16.gmra.mxu1 %v8736_v2  ;;  %v4085_v20 = vor.u32 %v4084_v41, %v9003_v44  ;;  %v4106_v45 = vshrl.u32 %v9006_v14, 16  ;;  %v6456_v8 = vpop.f32.mrf.mxu0  ;;  %v4095_v54 = vrot.slane %v4093_v59, 4  ;;  %v4098_v11 = vrot.slane %v4096_v37, 5 }
 0x12d   : > { %9800 = vst [vmem:[#allocation27_spill] sm:$0xff] %v9022_v31  ;;  %v9032_v24 = vadd.f32 %v1574_v48, %v1122_v33  ;;  %v1143_v0 = vadd.f32 %v6407_v7, %v9802_v57  ;;  %6697 = vmatprep.mubr.bf16.mxu1 %v8778_v25  ;;  %v4062_v31 = vrot.slane %v4061_v15, 4  ;;  %v4648_v2 = vrot.slane %v4646_v9, 4 }
 0x12e   : > { %v1134_v62 = vpop.f32.mrf.mxu1  ;;  %v4090_v18 = vrot.slane %v4088_v38, 5  ;;  %v5912_v29 = vrot.slane %v5896_v58, 9  ;;  %v1590_v3 = vpop.f32.mrf.mxu0  ;;  %v9042_v48 = vrot.slane %v4102_v63, 5  ;;  %v4108_v33 = vrot.slane %v4106_v45, 4 }
 0x12f   : > { %v9036_v41 = vadd.f32 %v6455_v5, %v1143_v0  ;;  %v1135_v53 = vadd.f32 %v1134_v62, %v9803_v6  ;;  %v4076_v57 = vrot.slane %v4075_v50, 4  ;;  %v4086_v25 = vrot.slane %v4085_v20, 4 }
 0x130   : > { %v6408_v7 = vpop.f32.mrf.mxu1  ;;  %v4655_v59 = vrot.slane %v4653_v12, 4  ;;  %v4656_v37 = vrot.slane %v9001_v61, 5  ;;  %v6459_v38 = vpop.f32.mrf.mxu0  ;;  %v9804_v58 = vcombine.low %v8785_v49, %v8789_v16  ;;  %v9053_v63 = vsel %vm7321_vm5, %v5911_v21, %v4646_v9  ;;  %v5897_v21 = vld [vmem:[%s6979_s26 + $0xa8] sm:$0xe] }
 0x131   : > { %v9045_v15 = vadd.f32 %v1587_v23, %v1135_v53  ;;  %v1146_v5 = vadd.f32 %v6408_v7, %v8682_v39  ;;  %v4099_v50 = vor.u32 %v4098_v11, %v4095_v54  ;;  %v9805_v20 = vcombine.low %v8821_v60, %v8843_v10 }
 0x132   : > { %v1137_v45 = vpop.f32.mrf.mxu1  ;;  %v4057_v39 = vsel %vm7010_vm2, %v9017_v17, %v8987_v40  ;;  %v4067_v49 = vsel %vm7010_vm2, %v4062_v31, %v8997_v47  ;;  %v9067_v16 = vsel %vm7321_vm5, %v4648_v2, %v4649_v28  ;;  %v4112_v61 = vshll.u32 %v9040_v35, 16  ;;  %v1603_v60 = vpop.f32.mrf.mxu0  ;;  %v5836_v17 = vld [vmem:[%s6979_s26 + $0xb4] sm:$0xf]  ;;  %v9806_v47 = vld [vmem:[#allocation18_spill] sm:$0xff]  ;;  %v9096_v2 = vld [vmem:[%s6979_s26 + $0xb8] sm:$0xf] }
 0x133   : > { %6746 = vmatmul.mubr.bf16.gmra.mxu0 %v9804_v58  ;;  %v9071_v53 = vadd.f32 %v6456_v8, %v1146_v5  ;;  %v1138_v10 = vadd.f32 %v1137_v45, %v8716_v46  ;;  %v4109_v9 = vor.u32 %v4108_v33, %v9042_v48  ;;  %v4660_v40 = vrot.slane %v9006_v14, 5  ;;  %v9807_v8 = vld [vmem:[#allocation13_spill] sm:$0xff] }
 0x134   : > { %6749 = vmatprep.mubr.bf16.mxu0 %v9805_v20  ;;  %v6411_v23 = vpop.f32.mrf.mxu1  ;;  %6698 = vmatmul.mubr.bf16.gmra.mxu1 %v9806_v47  ;;  %v4081_v31 = vsel %vm7010_vm2, %v4076_v57, %v9003_v44  ;;  %v4091_v28 = vsel %vm7010_vm2, %v4086_v25, %v4090_v18  ;;  %v9085_v46 = vsel %vm7321_vm5, %v5912_v29, %v4653_v12  ;;  %v6460_v11 = vpop.f32.mrf.mxu0  ;;  %v4100_v62 = vrot.slane %v4099_v50, 4  ;;  %v9808_v57 = vld [vmem:[#allocation15_spill] sm:$0xff]  ;;  %v9812_v47 = vld [vmem:[#allocation20_spill] sm:$0xff] }
 0x135   : > { %v9089_v0 = vsel %vm7321_vm5, %v4655_v59, %v4656_v37  ;;  %v9091_v14 = vadd.f32 %v1590_v3, %v1138_v10  ;;  %v1159_v54 = vadd.f32 %v6411_v23, %v9807_v8  ;;  %6701 = vmatprep.mubr.bf16.mxu1 %v8925_v42  ;;  %v5913_v44 = vrot.slane %v5897_v21, 9 }
 0x136   : > { %v1150_v18 = vpop.f32.mrf.mxu1  ;;  %v4114_v6 = vrot.slane %v4112_v61, 5  ;;  %v4663_v12 = vrot.slane %v9040_v35, 5  ;;  %v4117_v29 = vshrl.u32 %v5836_v17, 16  ;;  %v4120_v33 = vshll.u32 %v5836_v17, 16  ;;  %v1606_v25 = vpop.f32.mrf.mxu0 }
 0x137   : > { %v9099_v7 = vadd.f32 %v6459_v38, %v1159_v54  ;;  %v1151_v3 = vadd.f32 %v1150_v18, %v9808_v57  ;;  %v4110_v59 = vrot.slane %v4109_v9, 4  ;;  %v4662_v37 = vrot.slane %v4660_v40, 4  ;;  %v9809_v38 = vld [vmem:[#allocation17_spill] sm:$0xff] }
 0x138   : > { %v6412_v42 = vpop.f32.mrf.mxu1  ;;  %v9102_v5 = vcombine.low %v4057_v39, %v4067_v49  ;;  %v5943_v58 = vcombine.low %v9053_v63, %v9067_v16  ;;  %v9106_v50 = vcombine.low %v4081_v31, %v4091_v28  ;;  %v4126_v35 = vshll.u32 %v9096_v2, 16  ;;  %v6463_v61 = vpop.f32.mrf.mxu0  ;;  %v5839_v49 = vld [vmem:[%s6979_s26 + $0xc0] sm:$0xf]  ;;  %v9120_v16 = vld [vmem:[%s6979_s26 + $0xc4] sm:$0xf] }
 0x139   : > { %v9109_v45 = vadd.f32 %v1603_v60, %v1151_v3  ;;  %v1162_v20 = vadd.f32 %v6412_v42, %v9809_v38  ;;  %v9810_v21 = vcombine.low %v8883_v51, %v8904_v55  ;;  %v5944_v39 = vcombine.low %v9085_v46, %v9089_v0  ;;  %v9817_v46 = vld [vmem:[#allocation6_spill] sm:$0xff] }
 0x13a   : > { %v4130_v63 = vshrl.u32 %v9096_v2, 16  ;;  %v1153_v10 = vpop.f32.mrf.mxu1  ;;  %v9811_v60 = vcombine.low %v8933_v13, %v8948_v30  ;;  %v4105_v51 = vsel %vm7010_vm2, %v4100_v62, %v9042_v48  ;;  %v9130_v55 = vsel %vm7321_vm5, %v5913_v44, %v4660_v40  ;;  %v1619_v28 = vpop.f32.mrf.mxu0  ;;  %v9142_v30 = vld [vmem:[%s6979_s26 + $0xbc] sm:$0x1]  ;;  %v5898_v48 = vld [vmem:[%s6979_s26 + $0xb4] sm:$0xe] }
 0x13b   : > { %6750 = vmatmul.mubr.bf16.gmra.mxu0 %v9810_v21  ;;  %v4119_v9 = vrot.slane %v4117_v29, 4  ;;  %v4122_v17 = vrot.slane %v4120_v33, 5  ;;  %v9132_v23 = vadd.f32 %v6460_v11, %v1162_v20  ;;  %v1154_v31 = vadd.f32 %v1153_v10, %v9812_v47  ;;  %v9164_v20 = vld [vmem:[%s6979_s26 + $0xc8] sm:$0x1] }
 0x13c   : > { %6753 = vmatprep.mubr.bf16.mxu0 %v9811_v60  ;;  %v4115_v8 = vsel %vm7010_vm2, %v4110_v59, %v4114_v6  ;;  %v9139_v13 = vsel %vm7321_vm5, %v4662_v37, %v4663_v12  ;;  %v6415_v54 = vpop.f32.mrf.mxu1  ;;  %6702 = vmatmul.mubr.bf16.gmra.mxu1 %v8927_v52  ;;  %v9146_v40 = vrot.slane %v4126_v35, 5  ;;  %v4141_v11 = vshrl.u32 %v5839_v49, 16  ;;  %v6464_v29 = vpop.f32.mrf.mxu0 }
 0x13d   : > { %v4144_v62 = vshll.u32 %v5839_v49, 16  ;;  %v4150_v44 = vshll.u32 %v9120_v16, 16  ;;  %v9149_v18 = vadd.f32 %v1606_v25, %v1154_v31  ;;  %v1175_v6 = vadd.f32 %v6415_v54, %v8867_v43  ;;  %6705 = vmatprep.mubr.bf16.mxu1 %v8983_v22 }
 0x13e   : > { %v4132_v12 = vrot.slane %v4130_v63, 4  ;;  %v4154_v33 = vshrl.u32 %v9120_v16, 16  ;;  %v1166_v57 = vpop.f32.mrf.mxu1  ;;  %v4123_v3 = vor.u32 %v4122_v17, %v4119_v9  ;;  %v4136_v52 = vshll.u32 %v9142_v30, 16  ;;  %v1622_v43 = vpop.f32.mrf.mxu0  ;;  %v5842_v9 = vld [vmem:[%s6979_s26 + $0xcc] sm:$0xf] }
 0x13f   : > { %v5914_v59 = vrot.slane %v5898_v48, 9  ;;  %v4667_v37 = vrot.slane %v9096_v2, 5  ;;  %v9156_v42 = vadd.f32 %v6463_v61, %v1175_v6  ;;  %v1167_v25 = vadd.f32 %v1166_v57, %v8886_v1  ;;  %v5899_v48 = vld [vmem:[%s6979_s26 + $0xc0] sm:$0xe] }
 0x140   : > { %v9159_v35 = vcombine.low %v4105_v51, %v4115_v8  ;;  %v5945_v22 = vcombine.low %v9130_v55, %v9139_v13  ;;  %v6416_v38 = vpop.f32.mrf.mxu1  ;;  %v4143_v21 = vrot.slane %v4141_v11, 4  ;;  %v4146_v63 = vrot.slane %v4144_v62, 5  ;;  %v6467_v10 = vpop.f32.mrf.mxu0  ;;  %v9186_v8 = vld [vmem:[%s6979_s26 + $0xd0] sm:$0xf] }
 0x141   : > { %v9166_v49 = vrot.slane %v4150_v44, 5  ;;  %v4156_v2 = vrot.slane %v4154_v33, 4  ;;  %v9168_v61 = vadd.f32 %v1619_v28, %v1167_v25  ;;  %v1178_v1 = vadd.f32 %v6416_v38, %v8906_v26 }
 0x142   : > { %v9813_v60 = vcombine.low %v8962_v19, %v8972_v36  ;;  %v4133_v51 = vor.u32 %v4132_v12, %v9146_v40  ;;  %v4670_v55 = vrot.slane %v9142_v30, 5  ;;  %v1169_v17 = vpop.f32.mrf.mxu1  ;;  %v9177_v47 = vrot.slane %v4123_v3, 4  ;;  %v1635_v13 = vpop.f32.mrf.mxu0 }
 0x143   : > { %v9179_v31 = vrot.slane %v4136_v52, 5  ;;  %v9183_v26 = vsel %vm7321_vm5, %v5914_v59, %v4667_v37  ;;  %v4669_v28 = vrot.slane %v4667_v37, 4  ;;  %v9188_v19 = vadd.f32 %v6464_v29, %v1178_v1  ;;  %v9814_v29 = vld [vmem:[#allocation2_spill] sm:$0xff] }
 0x144   : > { %6754 = vmatmul.mubr.bf16.gmra.mxu0 %v9813_v60  ;;  %v1170_v36 = vadd.f32 %v1169_v17, %v8915_v34  ;;  %v4160_v30 = vshll.u32 %v9164_v20, 16  ;;  %v6419_v54 = vpop.f32.mrf.mxu1  ;;  %6706 = vmatmul.mubr.bf16.gmra.mxu1 %v8989_v4  ;;  %v4147_v11 = vor.u32 %v4146_v63, %v4143_v21  ;;  %v4157_v62 = vor.u32 %v4156_v2, %v9166_v49  ;;  %v6468_v57 = vpop.f32.mrf.mxu0 }
 0x145   : > { %6757 = vmatprep.mubr.bf16.mxu0 %v5943_v58  ;;  %v4674_v58 = vrot.slane %v9120_v16, 5  ;;  %v4165_v44 = vshrl.u32 %v5842_v9, 16  ;;  %v4168_v6 = vshll.u32 %v5842_v9, 16  ;;  %v1191_v33 = vadd.f32 %v6419_v54, %v9814_v29  ;;  %6709 = vmatprep.mubr.bf16.mxu1 %v9102_v5 }
 0x146   : > { %v9196_v12 = vadd.f32 %v1622_v43, %v1170_v36  ;;  %v4174_v34 = vshll.u32 %v9186_v8, 16  ;;  %v4178_v3 = vshrl.u32 %v9186_v8, 16  ;;  %v1182_v16 = vpop.f32.mrf.mxu1  ;;  %v4134_v52 = vrot.slane %v4133_v51, 4  ;;  %v9815_v43 = vld [vmem:[#allocation5_spill] sm:$0xff]  ;;  %v1638_v21 = vpop.f32.mrf.mxu0  ;;  %v9816_v36 = vld [vmem:[#allocation4_spill] sm:$0xff] }
 0x147   : > { %v4671_v4 = vsel %vm7321_vm5, %v4669_v28, %v4670_v55  ;;  %v5915_v59 = vrot.slane %v5899_v48, 9  ;;  %v4677_v37 = vrot.slane %v9164_v20, 5  ;;  %v9205_v25 = vadd.f32 %v6467_v10, %v1191_v33  ;;  %v5844_v20 = vld [vmem:[%s6979_s26 + $0xd4] sm:$0x1] }
 0x148   : > { %v1183_v38 = vadd.f32 %v1182_v16, %v9815_v43  ;;  %v4162_v63 = vrot.slane %v4160_v30, 5  ;;  %v4676_v5 = vrot.slane %v4674_v58, 4  ;;  %v6420_v2 = vpop.f32.mrf.mxu1  ;;  %v4148_v1 = vrot.slane %v4147_v11, 4 }
 0x149   : > { %v4158_v60 = vrot.slane %v4157_v62, 4  ;;  %v4167_v9 = vrot.slane %v4165_v44, 4  ;;  %v4170_v17 = vrot.slane %v4168_v6, 5  ;;  %v1194_v55 = vadd.f32 %v6420_v2, %v9816_v36  ;;  %v6471_v28 = vpop.f32.mrf.mxu0  ;;  %v5900_v6 = vld [vmem:[%s6979_s26 + $0xcc] sm:$0xe] }
 0x14a   : > { %v9208_v51 = vadd.f32 %v1635_v13, %v1183_v38  ;;  %v9215_v10 = vrot.slane %v4174_v34, 5  ;;  %v4180_v30 = vrot.slane %v4178_v3, 4  ;;  %v1185_v48 = vpop.f32.mrf.mxu1  ;;  %v4129_v13 = vsel %vm7010_vm2, %v9177_v47, %v9146_v40 }
 0x14b   : > { %v4139_v54 = vsel %vm7010_vm2, %v4134_v52, %v9179_v31  ;;  %v4681_v11 = vrot.slane %v9186_v8, 5  ;;  %v9225_v62 = vadd.f32 %v6468_v57, %v1194_v55  ;;  %v1186_v0 = vadd.f32 %v1185_v48, %v9817_v46  ;;  %v9818_v57 = vld [vmem:[#allocation8_spill] sm:$0xff] }
 0x14c   : > { %6758 = vmatmul.mubr.bf16.gmra.mxu0 %v5944_v39  ;;  %v1651_v39 = vpop.f32.mrf.mxu0  ;;  %v4675_v44 = vsel %vm7321_vm5, %v5915_v59, %v4674_v58  ;;  %v6423_v29 = vpop.f32.mrf.mxu1  ;;  %6710 = vmatmul.mubr.bf16.gmra.mxu1 %v9106_v50  ;;  %v5946_v40 = vcombine.low %v9183_v26, %v4671_v4  ;;  %v4153_v47 = vsel %vm7010_vm2, %v4148_v1, %v9166_v49  ;;  %v4184_v8 = vshll.u32 %v5844_v20, 16  ;;  %v9821_v48 = vld [vmem:[#allocation12_spill] sm:$0xff] }
 0x14d   : > { %6761 = vmatprep.mubr.bf16.mxu0 %v5945_v22  ;;  %v4678_v22 = vsel %vm7321_vm5, %v4676_v5, %v4677_v37  ;;  %v4171_v31 = vor.u32 %v4170_v17, %v4167_v9  ;;  %v9238_v33 = vadd.f32 %v1638_v21, %v1186_v0  ;;  %v1207_v34 = vadd.f32 %v6423_v29, %v9818_v57  ;;  %v9819_v37 = vld [vmem:[#allocation10_spill] sm:$0xff]  ;;  %v9820_v9 = vld [vmem:[#allocation11_spill] sm:$0xff] }
 0x14e   : > { %v6472_v58 = vpop.f32.mrf.mxu0  ;;  %6713 = vmatprep.mubr.bf16.mxu1 %v9159_v35  ;;  %v4163_v3 = vsel %vm7010_vm2, %v4158_v60, %v4162_v63  ;;  %v4181_v50 = vor.u32 %v4180_v30, %v9215_v10  ;;  %v1198_v16 = vpop.f32.mrf.mxu1  ;;  %v5947_v26 = vcombine.low %v4675_v44, %v4678_v22  ;;  %v5916_v52 = vrot.slane %v5900_v6, 9  ;;  %v9822_v44 = vld [vmem:[#allocation14_spill] sm:$0xff] }
 0x14f   : > { %v4683_v4 = vrot.slane %v4681_v11, 4  ;;  %v4684_v59 = vrot.slane %v5844_v20, 5  ;;  %v9245_v49 = vadd.f32 %v6471_v28, %v1207_v34  ;;  %v1199_v43 = vadd.f32 %v1198_v16, %v9819_v37  ;;  %v9825_v37 = vld [vmem:[#allocation21_spill] sm:$0xff] }
 0x150   : > { %v1654_v38 = vpop.f32.mrf.mxu0  ;;  %v6424_v21 = vpop.f32.mrf.mxu1  ;;  %v5874_v5 = vcombine.low %v4129_v13, %v4139_v54  ;;  %v5875_v2 = vcombine.low %v4153_v47, %v4163_v3  ;;  %v4172_v1 = vrot.slane %v4171_v31, 4  ;;  %v4182_v17 = vrot.slane %v4181_v50, 4  ;;  %v9823_v47 = vld [vmem:[#allocation16_spill] sm:$0xff] }
 0x151   : > { %v9248_v35 = vadd.f32 %v1651_v39, %v1199_v43  ;;  %v1210_v63 = vadd.f32 %v6424_v21, %v9820_v9  ;;  %v4186_v36 = vrot.slane %v4184_v8, 5  ;;  %v4682_v28 = vsel %vm7321_vm5, %v5916_v52, %v4681_v11 }
 0x152   : > { %v6475_v60 = vpop.f32.mrf.mxu0  ;;  %v1201_v55 = vpop.f32.mrf.mxu1  ;;  %v4685_v20 = vsel %vm7321_vm5, %v4683_v4, %v4684_v59  ;;  %v4177_v0 = vsel %vm7010_vm2, %v4172_v1, %v9215_v10  ;;  %v9824_v10 = vld [vmem:[#allocation19_spill] sm:$0xff] }
 0x153   : > { %v9255_v30 = vadd.f32 %v6472_v58, %v1210_v63  ;;  %v1202_v13 = vadd.f32 %v1201_v55, %v9821_v48  ;;  %v4187_v56 = vsel %vm7010_vm2, %v4182_v17, %v4186_v36  ;;  %v5948_v11 = vcombine.low %v4682_v28, %v4685_v20  ;;  %v9827_v17 = vld [vmem:[#allocation23_spill] sm:$0xff]  ;;  %v9828_v20 = vld [vmem:[#allocation24_spill] sm:$0xff] }
 0x154   : > { %6762 = vmatmul.mubr.bf16.gmra.mxu0 %v5946_v40  ;;  %v1667_v54 = vpop.f32.mrf.mxu0  ;;  %v6427_v46 = vpop.f32.mrf.mxu1  ;;  %6714 = vmatmul.mubr.bf16.gmra.mxu1 %v5874_v5  ;;  %v5876_v34 = vcombine.low %v4177_v0, %v4187_v56  ;;  %v9829_v0 = vld [vmem:[#allocation25_spill] sm:$0xff] }
 0x155   : > { %6765 = vmatprep.mubr.bf16.mxu0 %v5947_v26  ;;  %v9261_v39 = vadd.f32 %v1654_v38, %v1202_v13  ;;  %v1223_v22 = vadd.f32 %v6427_v46, %v9822_v44  ;;  %6717 = vmatprep.mubr.bf16.mxu1 %v5875_v2  ;;  %v9826_v2 = vld [vmem:[#allocation22_spill] sm:$0xff] }
 0x156   : > { %v6476_v6 = vpop.f32.mrf.mxu0  ;;  %v1214_v29 = vpop.f32.mrf.mxu1 }
 0x157   : > { %v9266_v40 = vadd.f32 %v6475_v60, %v1223_v22  ;;  %v1215_v31 = vadd.f32 %v1214_v29, %v9823_v47 }
 0x158   : > { %v1670_v8 = vpop.f32.mrf.mxu0  ;;  %v6428_v57 = vpop.f32.mrf.mxu1 }
 0x159   : > { %v9269_v58 = vadd.f32 %v1667_v54, %v1215_v31  ;;  %v1226_v3 = vadd.f32 %v6428_v57, %v9824_v10  ;;  %v9831_v57 = vld [vmem:[#allocation27_spill] sm:$0xff] }
 0x15a   : > { %v6479_v50 = vpop.f32.mrf.mxu0  ;;  %v1217_v16 = vpop.f32.mrf.mxu1 }
 0x15b   : > { %v9272_v26 = vadd.f32 %v6476_v6, %v1226_v3  ;;  %v1218_v27 = vadd.f32 %v1217_v16, %v8862_v32 }
 0x15c   : > { %6766 = vmatmul.mubr.bf16.gmra.mxu0 %v5948_v11  ;;  %v1683_v52 = vpop.f32.mrf.mxu0  ;;  %v6431_v4 = vpop.f32.mrf.mxu1  ;;  %6718 = vmatmul.mubr.bf16.gmra.mxu1 %v5876_v34  ;;  %v9830_v11 = vld [vmem:[#allocation26_spill] sm:$0xff] }
 0x15d   : > { %v9275_v59 = vadd.f32 %v1670_v8, %v1218_v27  ;;  %v1239_v43 = vadd.f32 %v6431_v4, %v9825_v37 }
 0x15e   : > { %v6480_v38 = vpop.f32.mrf.mxu0  ;;  %v1230_v21 = vpop.f32.mrf.mxu1 }
 0x15f   : > { %v9278_v5 = vadd.f32 %v6479_v50, %v1239_v43  ;;  %v1231_v1 = vadd.f32 %v1230_v21, %v9826_v2 }
 0x160   : > { %v1686_v9 = vpop.f32.mrf.mxu0  ;;  %v6432_v63 = vpop.f32.mrf.mxu1 }
 0x161   : > { %v9281_v60 = vadd.f32 %v1683_v52, %v1231_v1  ;;  %v1242_v36 = vadd.f32 %v6432_v63, %v9827_v17 }
 0x162   : > { %v6547_v32 = vpop.f32.mrf.mxu0  ;;  %v1233_v55 = vpop.f32.mrf.mxu1 }
 0x163   : > { %v9284_v28 = vadd.f32 %v6480_v38, %v1242_v36  ;;  %v1234_v48 = vadd.f32 %v1233_v55, %v9828_v20 }
 0x164   : > { %v2712_v13 = vpop.f32.mrf.mxu0  ;;  %v6499_v54 = vpop.f32.mrf.mxu1 }
 0x165   : > { %v9287_v46 = vadd.f32 %v1686_v9, %v1234_v48  ;;  %v2087_v44 = vadd.f32 %v6499_v54, %v9829_v0 }
 0x166   : > { %v6548_v22 = vpop.f32.mrf.mxu0  ;;  %v1958_v6 = vpop.f32.mrf.mxu1 }
 0x167   : > { %v9290_v56 = vadd.f32 %v6547_v32, %v2087_v44  ;;  %v2085_v29 = vadd.f32 %v1958_v6, %v9830_v11 }
 0x168   : > { %v2715_v47 = vpop.f32.mrf.mxu0  ;;  %v6500_v31 = vpop.f32.mrf.mxu1 }
 0x169   : > { %v9293_v8 = vadd.f32 %v2712_v13, %v2085_v29  ;;  %v2088_v34 = vadd.f32 %v6500_v31, %v9831_v57 }
 0x16a   : > { %v6551_v10 = vpop.f32.mrf.mxu0  ;;  %v1961_v3 = vpop.f32.mrf.mxu1 }
 0x16b   : > { %v9296_v50 = vadd.f32 %v6548_v22, %v2088_v34  ;;  %v2086_v16 = vadd.f32 %v1961_v3, %v9032_v24 }
 0x16c   : > { %v2728_v27 = vpop.f32.mrf.mxu0  ;;  %v6503_v52 = vpop.f32.mrf.mxu1 }
 0x16d   : > { %v9299_v4 = vadd.f32 %v2715_v47, %v2086_v16  ;;  %v2091_v37 = vadd.f32 %v6503_v52, %v9036_v41 }
 0x16e   : > { %v6552_v43 = vpop.f32.mrf.mxu0  ;;  %v1974_v38 = vpop.f32.mrf.mxu1 }
 0x16f   : > { %v9302_v21 = vadd.f32 %v6551_v10, %v2091_v37  ;;  %v2089_v2 = vadd.f32 %v1974_v38, %v9045_v15 }
 0x170   : > { %v2731_v1 = vpop.f32.mrf.mxu0  ;;  %v6504_v9 = vpop.f32.mrf.mxu1 }
 0x171   : > { %v9305_v63 = vadd.f32 %v2728_v27, %v2089_v2  ;;  %v2092_v17 = vadd.f32 %v6504_v9, %v9071_v53 }
 0x172   : > { %v6555_v36 = vpop.f32.mrf.mxu0  ;;  %v1977_v24 = vpop.f32.mrf.mxu1 }
 0x173   : > { %v9308_v32 = vadd.f32 %v6552_v43, %v2092_v17  ;;  %v2090_v55 = vadd.f32 %v1977_v24, %v9091_v14 }
 0x174   : > { %v2744_v20 = vpop.f32.mrf.mxu0  ;;  %v6507_v41 = vpop.f32.mrf.mxu1 }
 0x175   : > { %v9311_v48 = vadd.f32 %v2731_v1, %v2090_v55  ;;  %v2095_v13 = vadd.f32 %v6507_v41, %v9099_v7 }
 0x176   : > { %v6556_v54 = vpop.f32.mrf.mxu0  ;;  %v1990_v15 = vpop.f32.mrf.mxu1 }
 0x177   : > { %v9314_v0 = vadd.f32 %v6555_v36, %v2095_v13  ;;  %v2093_v44 = vadd.f32 %v1990_v15, %v9109_v45 }
 0x178   : > { %v2747_v22 = vpop.f32.mrf.mxu0  ;;  %v6508_v53 = vpop.f32.mrf.mxu1 }
 0x179   : > { %v9317_v6 = vadd.f32 %v2744_v20, %v2093_v44  ;;  %v2096_v11 = vadd.f32 %v6508_v53, %v9132_v23 }
 0x17a   : > { %v6559_v29 = vpop.f32.mrf.mxu0  ;;  %v1993_v14 = vpop.f32.mrf.mxu1 }
 0x17b   : > { %v9320_v47 = vadd.f32 %v6556_v54, %v2096_v11  ;;  %v2094_v31 = vadd.f32 %v1993_v14, %v9149_v18 }
 0x17c   : > { %v2760_v57 = vpop.f32.mrf.mxu0  ;;  %v6511_v7 = vpop.f32.mrf.mxu1 }
 0x17d   : > { %v9323_v34 = vadd.f32 %v2747_v22, %v2094_v31  ;;  %v2099_v10 = vadd.f32 %v6511_v7, %v9156_v42 }
 0x17e   : > { %v6560_v3 = vpop.f32.mrf.mxu0  ;;  %v2006_v45 = vpop.f32.mrf.mxu1 }
 0x17f   : > { %v9326_v16 = vadd.f32 %v6559_v29, %v2099_v10  ;;  %v2097_v27 = vadd.f32 %v2006_v45, %v9168_v61 }
 0x180   : > { %v2763_v52 = vpop.f32.mrf.mxu0  ;;  %v6512_v23 = vpop.f32.mrf.mxu1 }
 0x181   : > { %v9329_v37 = vadd.f32 %v2760_v57, %v2097_v27  ;;  %v2100_v43 = vadd.f32 %v6512_v23, %v9188_v19 }
 0x182   : > { %v6563_v38 = vpop.f32.mrf.mxu0  ;;  %v2009_v18 = vpop.f32.mrf.mxu1 }
 0x183   : > { %v9332_v2 = vadd.f32 %v6560_v3, %v2100_v43  ;;  %v2098_v1 = vadd.f32 %v2009_v18, %v9196_v12 }
 0x184   : > { %v2776_v9 = vpop.f32.mrf.mxu0  ;;  %v6515_v42 = vpop.f32.mrf.mxu1 }
 0x185   : > { %v9335_v17 = vadd.f32 %v2763_v52, %v2098_v1  ;;  %v2103_v36 = vadd.f32 %v6515_v42, %v9205_v25 }
 0x186   : > { %v6564_v24 = vpop.f32.mrf.mxu0  ;;  %v2022_v61 = vpop.f32.mrf.mxu1 }
 0x187   : > { %v9338_v55 = vadd.f32 %v6563_v38, %v2103_v36  ;;  %v2101_v20 = vadd.f32 %v2022_v61, %v9208_v51 }
 0x188   : > { %v2779_v41 = vpop.f32.mrf.mxu0  ;;  %v6516_v19 = vpop.f32.mrf.mxu1 }
 0x189   : > { %v9341_v13 = vadd.f32 %v2776_v9, %v2101_v20  ;;  %v2104_v54 = vadd.f32 %v6516_v19, %v9225_v62 }
 0x18a   : > { %v6567_v15 = vpop.f32.mrf.mxu0  ;;  %v2025_v12 = vpop.f32.mrf.mxu1 }
 0x18b   : > { %v9344_v44 = vadd.f32 %v6564_v24, %v2104_v54  ;;  %v2102_v22 = vadd.f32 %v2025_v12, %v9238_v33 }
 0x18c   : > { %v2792_v53 = vpop.f32.mrf.mxu0  ;;  %v6519_v25 = vpop.f32.mrf.mxu1 }
 0x18d   : > { %v9347_v11 = vadd.f32 %v2779_v41, %v2102_v22  ;;  %v2107_v29 = vadd.f32 %v6519_v25, %v9245_v49 }
 0x18e   : > { %v6568_v14 = vpop.f32.mrf.mxu0  ;;  %v2038_v51 = vpop.f32.mrf.mxu1 }
 0x18f   : > { %v9350_v31 = vadd.f32 %v6567_v15, %v2107_v29  ;;  %v2105_v57 = vadd.f32 %v2038_v51, %v9248_v35 }
 0x190   : > { %v2795_v7 = vpop.f32.mrf.mxu0  ;;  %v6520_v62 = vpop.f32.mrf.mxu1 }
 0x191   : > { %v9353_v10 = vadd.f32 %v2792_v53, %v2105_v57  ;;  %v2108_v3 = vadd.f32 %v6520_v62, %v9255_v30 }
 0x192   : > { %v6571_v45 = vpop.f32.mrf.mxu0  ;;  %v2041_v33 = vpop.f32.mrf.mxu1 }
 0x193   : > { %v9356_v27 = vadd.f32 %v6568_v14, %v2108_v3  ;;  %v2106_v52 = vadd.f32 %v2041_v33, %v9261_v39 }
 0x194   : > { %v2808_v23 = vpop.f32.mrf.mxu0  ;;  %v6523_v49 = vpop.f32.mrf.mxu1 }
 0x195   : > { %v9359_v43 = vadd.f32 %v2795_v7, %v2106_v52  ;;  %v2111_v38 = vadd.f32 %v6523_v49, %v9266_v40 }
 0x196   : > { %v6572_v18 = vpop.f32.mrf.mxu0  ;;  %v2054_v35 = vpop.f32.mrf.mxu1 }
 0x197   : > { %v9362_v1 = vadd.f32 %v6571_v45, %v2111_v38  ;;  %v2109_v9 = vadd.f32 %v2054_v35, %v9269_v58 }
 0x198   : > { %v2811_v42 = vpop.f32.mrf.mxu0  ;;  %v6524_v30 = vpop.f32.mrf.mxu1 }
 0x199   : > { %v9365_v36 = vadd.f32 %v2808_v23, %v2109_v9  ;;  %v2112_v24 = vadd.f32 %v6524_v30, %v9272_v26 }
 0x19a   : > { %v6575_v61 = vpop.f32.mrf.mxu0  ;;  %v2057_v39 = vpop.f32.mrf.mxu1 }
 0x19b   : > { %v9368_v20 = vadd.f32 %v6572_v18, %v2112_v24  ;;  %v2110_v41 = vadd.f32 %v2057_v39, %v9275_v59 }
 0x19c   : > { %v2824_v19 = vpop.f32.mrf.mxu0  ;;  %v6527_v40 = vpop.f32.mrf.mxu1 }
 0x19d   : > { %9832 = vst [vmem:[#allocation3_spill] sm:$0xff] %v9368_v20  ;;  %v9371_v54 = vadd.f32 %v2811_v42, %v2110_v41  ;;  %v2115_v15 = vadd.f32 %v6527_v40, %v9278_v5 }
 0x19e   : > { %v6576_v12 = vpop.f32.mrf.mxu0  ;;  %v2070_v58 = vpop.f32.mrf.mxu1 }
 0x19f   : > { %9833 = vst [vmem:[#allocation7_spill] sm:$0xff] %v9371_v54  ;;  %v9374_v22 = vadd.f32 %v6575_v61, %v2115_v15  ;;  %v2113_v53 = vadd.f32 %v2070_v58, %v9281_v60 }
 0x1a0   : > { %v2827_v25 = vpop.f32.mrf.mxu0  ;;  %v6528_v26 = vpop.f32.mrf.mxu1 }
 0x1a1   : > { %v9377_v29 = vadd.f32 %v2824_v19, %v2113_v53  ;;  %v2116_v14 = vadd.f32 %v6528_v26, %v9284_v28 }
 0x1a2   : > { %v6643_v51 = vpop.f32.mrf.mxu0  ;;  %v2073_v59 = vpop.f32.mrf.mxu1 }
 0x1a3   : > { %v9380_v57 = vadd.f32 %v6576_v12, %v2116_v14  ;;  %v2114_v7 = vadd.f32 %v2073_v59, %v9287_v46 }
 0x1a4   : > { %v3597_v62 = vpop.f32.mrf.mxu0  ;;  %v6595_v5 = vpop.f32.mrf.mxu1 }
 0x1a5   : > { %9834 = vst [vmem:[#allocation9_spill] sm:$0xff] %v9380_v57  ;;  %v9383_v3 = vadd.f32 %v2827_v25, %v2114_v7  ;;  %v3339_v45 = vadd.f32 %v6595_v5, %v9290_v56 }
 0x1a6   : > { %v9386_v33 = vpop.f32.mrf.mxu0  ;;  %v3210_v60 = vpop.f32.mrf.mxu1 }
 0x1a7   : > { %9835 = vst [vmem:[#allocation18_spill] sm:$0xff] %v9383_v3  ;;  %v9388_v52 = vadd.f32 %v6643_v51, %v3339_v45  ;;  %v3337_v23 = vadd.f32 %v3210_v60, %v9293_v8 }
 0x1a8   : > { %v9391_v28 = vpop.f32.mrf.mxu0  ;;  %v9393_v49 = vpop.f32.mrf.mxu1 }
 0x1a9   : > { %v9395_v38 = vadd.f32 %v3597_v62, %v3337_v23 }
 0x1aa   : > { %v6647_v46 = vpop.f32.mrf.mxu0  ;;  %v9397_v18 = vpop.f32.mrf.mxu1 }
 0x1ac   : > { %v3613_v35 = vpop.f32.mrf.mxu0  ;;  %v6599_v9 = vpop.f32.mrf.mxu1 }
 0x1ad   : > { %v3343_v56 = vadd.f32 %v6599_v9, %v9302_v21 }
 0x1ae   : > { %v9400_v42 = vpop.f32.mrf.mxu0  ;;  %v3226_v30 = vpop.f32.mrf.mxu1 }
 0x1af   : > { %v9402_v24 = vadd.f32 %v6647_v46, %v3343_v56  ;;  %v3341_v8 = vadd.f32 %v3226_v30, %v9305_v63 }
 0x1b0   : > { %v9405_v61 = vpop.f32.mrf.mxu0  ;;  %v9407_v39 = vpop.f32.mrf.mxu1 }
 0x1b1   : > { %v9409_v41 = vadd.f32 %v3613_v35, %v3341_v8 }
 0x1b2   : > { %v6651_v19 = vpop.f32.mrf.mxu0  ;;  %v9411_v40 = vpop.f32.mrf.mxu1 }
 0x1b4   : > { %v3629_v15 = vpop.f32.mrf.mxu0  ;;  %v6603_v12 = vpop.f32.mrf.mxu1 }
 0x1b5   : > { %v3347_v21 = vadd.f32 %v6603_v12, %v9314_v0 }
 0x1b6   : > { %v9414_v58 = vpop.f32.mrf.mxu0  ;;  %v3242_v53 = vpop.f32.mrf.mxu1 }
 0x1b7   : > { %v9416_v25 = vadd.f32 %v6651_v19, %v3347_v21  ;;  %v3345_v63 = vadd.f32 %v3242_v53, %v9317_v6 }
 0x1b8   : > { %v9419_v26 = vpop.f32.mrf.mxu0  ;;  %v9421_v14 = vpop.f32.mrf.mxu1 }
 0x1b9   : > { %v9423_v51 = vadd.f32 %v3629_v15, %v3345_v63 }
 0x1ba   : > { %v6655_v59 = vpop.f32.mrf.mxu0  ;;  %v9425_v7 = vpop.f32.mrf.mxu1 }
 0x1bc   : > { %v3645_v62 = vpop.f32.mrf.mxu0  ;;  %v6607_v5 = vpop.f32.mrf.mxu1 }
 0x1bd   : > { %v3351_v0 = vadd.f32 %v6607_v5, %v9326_v16 }
 0x1be   : > { %v9428_v45 = vpop.f32.mrf.mxu0  ;;  %v3258_v60 = vpop.f32.mrf.mxu1 }
 0x1bf   : > { %v9430_v23 = vadd.f32 %v6655_v59, %v3351_v0  ;;  %v3349_v6 = vadd.f32 %v3258_v60, %v9329_v37 }
 0x1c0   : > { %v9433_v46 = vpop.f32.mrf.mxu0  ;;  %v9435_v35 = vpop.f32.mrf.mxu1 }
 0x1c1   : > { %v9437_v9 = vadd.f32 %v3645_v62, %v3349_v6 }
 0x1c2   : > { %v6659_v56 = vpop.f32.mrf.mxu0  ;;  %v9439_v30 = vpop.f32.mrf.mxu1 }
 0x1c4   : > { %v3661_v8 = vpop.f32.mrf.mxu0  ;;  %v6611_v19 = vpop.f32.mrf.mxu1 }
 0x1c5   : > { %v3355_v16 = vadd.f32 %v6611_v19, %v9338_v55 }
 0x1c6   : > { %v9442_v15 = vpop.f32.mrf.mxu0  ;;  %v3274_v12 = vpop.f32.mrf.mxu1 }
 0x1c7   : > { %v9444_v21 = vadd.f32 %v6659_v56, %v3355_v16  ;;  %v3353_v37 = vadd.f32 %v3274_v12, %v9341_v13 }
 0x1c8   : > { %v9447_v53 = vpop.f32.mrf.mxu0  ;;  %v9449_v63 = vpop.f32.mrf.mxu1 }
 0x1c9   : > { %v9451_v59 = vadd.f32 %v3661_v8, %v3353_v37 }
 0x1ca   : > { %v6663_v62 = vpop.f32.mrf.mxu0  ;;  %v9453_v5 = vpop.f32.mrf.mxu1 }
 0x1cc   : > { %v3677_v0 = vpop.f32.mrf.mxu0  ;;  %v6615_v60 = vpop.f32.mrf.mxu1 }
 0x1cd   : > { %v3359_v55 = vadd.f32 %v6615_v60, %v9350_v31 }
 0x1ce   : > { %v9456_v6 = vpop.f32.mrf.mxu0  ;;  %v3290_v19 = vpop.f32.mrf.mxu1 }
 0x1cf   : > { %v9458_v56 = vadd.f32 %v6663_v62, %v3359_v55  ;;  %v3357_v13 = vadd.f32 %v3290_v19, %v9353_v10 }
 0x1d0   : > { %v9461_v16 = vpop.f32.mrf.mxu0  ;;  %v9463_v12 = vpop.f32.mrf.mxu1 }
 0x1d1   : > { %9836 = vst [vmem:[#allocation13_spill] sm:$0xff] %v9458_v56  ;;  %9837 = vst [vmem:[#allocation15_spill] sm:$0xff] %v9461_v16  ;;  %v9465_v8 = vadd.f32 %v3677_v0, %v3357_v13 }
 0x1d2   : > { %v6667_v37 = vpop.f32.mrf.mxu0  ;;  %v9467_v3 = vpop.f32.mrf.mxu1 }
 0x1d3   : > { %9838 = vst [vmem:[#allocation17_spill] sm:$0xff] %v9465_v8 }
 0x1d4   : > { %v3693_v57 = vpop.f32.mrf.mxu0  ;;  %v6619_v54 = vpop.f32.mrf.mxu1 }
 0x1d5   : > { %v3363_v31 = vadd.f32 %v6619_v54, %v9362_v1 }
 0x1d6   : > { %v9470_v60 = vpop.f32.mrf.mxu0  ;;  %v3306_v20 = vpop.f32.mrf.mxu1 }
 0x1d7   : > { %9839 = vst [vmem:[#allocation20_spill] sm:$0xff] %v9470_v60  ;;  %v9472_v62 = vadd.f32 %v6667_v37, %v3363_v31  ;;  %v3361_v10 = vadd.f32 %v3306_v20, %v9365_v36 }
 0x1d8   : > { %v9475_v55 = vpop.f32.mrf.mxu0  ;;  %v9477_v19 = vpop.f32.mrf.mxu1 }
 0x1d9   : > { %9840 = vst [vmem:[#allocation2_spill] sm:$0xff] %v9472_v62  ;;  %v9479_v0 = vadd.f32 %v3693_v57, %v3361_v10  ;;  %v3340_v62 = vadd.f32 %v9393_v49, %v9296_v50 }
 0x1da   : > { %v6671_v13 = vpop.f32.mrf.mxu0  ;;  %v9481_v8 = vpop.f32.mrf.mxu1 }
 0x1db   : > { %9841 = vst [vmem:[#allocation5_spill] sm:$0xff] %v9479_v0 }
 0x1dc   : > { %v3709_v56 = vpop.f32.mrf.mxu0  ;;  %v6623_v16 = vpop.f32.mrf.mxu1 }
 0x1dd   : > { %v3367_v1 = vadd.f32 %v6623_v16, %v9374_v22 }
 0x1de   : > { %v9484_v54 = vpop.f32.mrf.mxu0  ;;  %v3322_v60 = vpop.f32.mrf.mxu1 }
 0x1df   : > { %9842 = vst [vmem:[#allocation4_spill] sm:$0xff] %v9484_v54  ;;  %v9486_v37 = vadd.f32 %v6671_v13, %v3367_v1  ;;  %v3365_v36 = vadd.f32 %v3322_v60, %v9377_v29  ;;  %v3338_v29 = vadd.f32 %v9397_v18, %v9299_v4  ;;  %v9505_v60 = vld [vmem:[%s9668_s2] ss:$0 sm:$0xff]  ;;  %v3727_v1 = vadd.f32 %v9386_v33, %v3340_v62 }
 0x1e0   : > { %v9489_v20 = vpop.f32.mrf.mxu0  ;;  %v9491_v31 = vpop.f32.mrf.mxu1  ;;  %v9515_v4 = vld [vmem:[%s9669_s3] ss:$0 sm:$0xff] }
 0x1e1   : > { %9843 = vst [vmem:[#allocation6_spill] sm:$0xff] %v9486_v37  ;;  %9844 = vst [vmem:[#allocation8_spill] sm:$0xff] %v9489_v20  ;;  %v9493_v57 = vadd.f32 %v3709_v56, %v3365_v36  ;;  %v3725_v33 = vadd.f32 %v9391_v28, %v3338_v29  ;;  %v3346_v29 = vadd.f32 %v9425_v7, %v9323_v34 }
 0x1e2   : > { %v9495_v0 = vpop.f32.mrf.mxu1 }
 0x1e3   : > { %9845 = vst [vmem:[#allocation10_spill] sm:$0xff] %v9493_v57  ;;  %v6739_v10 = vpop.f32.mrf.mxu0  ;;  %9846 = vst [vmem:[#allocation11_spill] sm:$0xff] %v9495_v0 }
 0x1e4   : > { %v6691_v16 = vpop.f32.mrf.mxu1 }
 0x1e5   : > { %v4849_v22 = vpop.f32.mrf.mxu0  ;;  %v4480_v54 = vadd.f32 %v6691_v16, %v9388_v52  ;;  %v3344_v52 = vadd.f32 %v9407_v39, %v9308_v32 }
 0x1e6   : > { %v4351_v56 = vpop.f32.mrf.mxu1 }
 0x1e7   : > { %v6740_v13 = vpop.f32.mrf.mxu0  ;;  %v4978_v36 = vadd.f32 %v6739_v10, %v4480_v54  ;;  %v4478_v57 = vadd.f32 %v4351_v56, %v9395_v38  ;;  %v3342_v38 = vadd.f32 %v9411_v40, %v9311_v48  ;;  %v3731_v0 = vadd.f32 %v9400_v42, %v3344_v52 }
 0x1e8   : > { %v6692_v49 = vpop.f32.mrf.mxu1  ;;  %v3348_v48 = vadd.f32 %v9421_v14, %v9320_v47 }
 0x1e9   : > { %v4852_v50 = vpop.f32.mrf.mxu0  ;;  %v5017_v16 = vadd.f32 %v9505_v60, %v4978_v36  ;;  %v4976_v18 = vadd.f32 %v4849_v22, %v4478_v57  ;;  %v4481_v20 = vadd.f32 %v6692_v49, %v3727_v1  ;;  %v3729_v28 = vadd.f32 %v9405_v61, %v3342_v38 }
 0x1ea   : > { %v4354_v62 = vpop.f32.mrf.mxu1 }
 0x1eb   : > { %v6743_v37 = vpop.f32.mrf.mxu0  ;;  %v4979_v54 = vadd.f32 %v6740_v13, %v4481_v20  ;;  %v5088_v32 = vmul.f32 %v9515_v4, %v5017_v16  ;;  %v5015_v39 = vadd.f32 %v9505_v60, %v4976_v18  ;;  %v4479_v56 = vadd.f32 %v4354_v62, %v3725_v33 }
 0x1ec   : > { %v6695_v36 = vpop.f32.mrf.mxu1  ;;  %vm5049_vm6 = vcmp.ge.f32.partialorder %v5017_v16, 0.0 }
 0x1ed   : > { %v4865_v10 = vpop.f32.mrf.mxu0  ;;  %v5018_v57 = vadd.f32 %v9505_v60, %v4979_v54  ;;  %v4977_v40 = vadd.f32 %v4852_v50, %v4479_v56  ;;  %v4484_v20 = vadd.f32 %v6695_v36, %v9402_v24  ;;  %v5120_v52 = vsel %vm5049_vm6, %v5017_v16, %v5088_v32 }
 0x1ee   : > { %v4367_v13 = vpop.f32.mrf.mxu1  ;;  %v5086_v61 = vmul.f32 %v9515_v4, %v5015_v39  ;;  %vm5047_vm8 = vcmp.ge.f32.partialorder %v5015_v39, 0.0  ;;  %v3735_v32 = vadd.f32 %v9414_v58, %v3348_v48  ;;  %v3350_v48 = vadd.f32 %v9439_v30, %v9335_v17 }
 0x1ef   : > { %v6744_v22 = vpop.f32.mrf.mxu0  ;;  %vm5050_vm7 = vcmp.ge.f32.partialorder %v5018_v57, 0.0  ;;  %v5089_v42 = vmul.f32 %v9515_v4, %v5018_v57  ;;  %v4482_v1 = vadd.f32 %v4367_v13, %v9409_v41  ;;  %v5016_v18 = vadd.f32 %v9505_v60, %v4977_v40 }
 0x1f0   : > { %v4982_v47 = vadd.f32 %v6743_v37, %v4484_v20  ;;  %v6696_v14 = vpop.f32.mrf.mxu1  ;;  %v5118_v56 = vsel %vm5047_vm8, %v5015_v39, %v5086_v61 }
 0x1f1   : > { %v4868_v49 = vpop.f32.mrf.mxu0  ;;  %v5121_v34 = vsel %vm5050_vm7, %v5018_v57, %v5089_v42  ;;  %v4980_v24 = vadd.f32 %v4865_v10, %v4482_v1  ;;  %v4485_v7 = vadd.f32 %v6696_v14, %v3731_v0  ;;  %vm5048_vm9 = vcmp.ge.f32.partialorder %v5016_v18, 0.0 }
 0x1f2   : > { %v6034_v41 = vpack.c.bf16 %v5121_v34, %v5120_v52  ;;  %v5087_v16 = vmul.f32 %v9515_v4, %v5016_v18  ;;  %v5021_v33 = vadd.f32 %v9505_v60, %v4982_v47  ;;  %v4370_v38 = vpop.f32.mrf.mxu1  ;;  %v3733_v57 = vadd.f32 %v9419_v26, %v3346_v29 }
 0x1f3   : > { %v6747_v50 = vpop.f32.mrf.mxu0  ;;  %v4983_v37 = vadd.f32 %v6744_v22, %v4485_v7  ;;  %v4483_v62 = vadd.f32 %v4370_v38, %v3729_v28  ;;  %v5019_v10 = vadd.f32 %v9505_v60, %v4980_v24  ;;  %v3352_v22 = vadd.f32 %v9435_v35, %v9332_v2 }
 0x1f4   : > { %6106 = vst [vmem:[%s9538_s6 + $0x8] sm:$0xff] %v6034_v41   ;;  %v5119_v36 = vsel %vm5048_vm9, %v5016_v18, %v5087_v16  ;;  %v6699_v0 = vpop.f32.mrf.mxu1  ;;  %v5092_v20 = vmul.f32 %v9515_v4, %v5021_v33  ;;  %vm5053_vm10 = vcmp.ge.f32.partialorder %v5021_v33, 0.0 }
 0x1f5   : > { %v4881_v54 = vpop.f32.mrf.mxu0  ;;  %v6029_v40 = vpack.c.bf16 %v5119_v36, %v5118_v56  ;;  %v5022_v13 = vadd.f32 %v9505_v60, %v4983_v37  ;;  %v4981_v58 = vadd.f32 %v4868_v49, %v4483_v62  ;;  %v4488_v39 = vadd.f32 %v6699_v0, %v9416_v25 }
 0x1f6   : > { %v4383_v28 = vpop.f32.mrf.mxu1  ;;  %vm5051_vm12 = vcmp.ge.f32.partialorder %v5019_v10, 0.0  ;;  %v5090_v52 = vmul.f32 %v9515_v4, %v5019_v10  ;;  %v5124_v25 = vsel %vm5053_vm10, %v5021_v33, %v5092_v20  ;;  %v3739_v16 = vadd.f32 %v9428_v45, %v3352_v22 }
 0x1f7   : > { %v6748_v42 = vpop.f32.mrf.mxu0  ;;  %6030 = vst [vmem:[%s9538_s6] sm:$0xff] %v6029_v40   ;;  %vm5054_vm11 = vcmp.ge.f32.partialorder %v5022_v13, 0.0  ;;  %v5093_v26 = vmul.f32 %v9515_v4, %v5022_v13  ;;  %v4486_v29 = vadd.f32 %v4383_v28, %v9423_v51  ;;  %v5020_v2 = vadd.f32 %v9505_v60, %v4981_v58 }
 0x1f8   : > { %v4986_v35 = vadd.f32 %v6747_v50, %v4488_v39  ;;  %v6700_v49 = vpop.f32.mrf.mxu1  ;;  %v5122_v50 = vsel %vm5051_vm12, %v5019_v10, %v5090_v52  ;;  %v3737_v62 = vadd.f32 %v9433_v46, %v3350_v48  ;;  %v3356_v0 = vadd.f32 %v9449_v63, %v9344_v44 }
 0x1f9   : > { %v4884_v1 = vpop.f32.mrf.mxu0  ;;  %v5125_v61 = vsel %vm5054_vm11, %v5022_v13, %v5093_v26  ;;  %v4984_v18 = vadd.f32 %v4881_v54, %v4486_v29  ;;  %v4489_v47 = vadd.f32 %v6700_v49, %v3735_v32  ;;  %vm5052_vm13 = vcmp.ge.f32.partialorder %v5020_v2, 0.0 }
 0x1fa   : > { %v6044_v30 = vpack.c.bf16 %v5125_v61, %v5124_v25  ;;  %v5091_v14 = vmul.f32 %v9515_v4, %v5020_v2  ;;  %v5025_v51 = vadd.f32 %v9505_v60, %v4986_v35  ;;  %v4386_v34 = vpop.f32.mrf.mxu1  ;;  %v3354_v40 = vadd.f32 %v9453_v5, %v9347_v11 }
 0x1fb   : > { %v6751_v17 = vpop.f32.mrf.mxu0  ;;  %v4987_v24 = vadd.f32 %v6748_v42, %v4489_v47  ;;  %v4487_v7 = vadd.f32 %v4386_v34, %v3733_v57  ;;  %v5023_v38 = vadd.f32 %v9505_v60, %v4984_v18 }
 0x1fc   : > { %6108 = vst [vmem:[%s9538_s6 + $0x18] sm:$0xff] %v6044_v30   ;;  %v5123_v33 = vsel %vm5052_vm13, %v5020_v2, %v5091_v14  ;;  %v6703_v37 = vpop.f32.mrf.mxu1  ;;  %v5096_v32 = vmul.f32 %v9515_v4, %v5025_v51  ;;  %vm5057_vm14 = vcmp.ge.f32.partialorder %v5025_v51, 0.0  ;;  %v3743_v2 = vadd.f32 %v9442_v15, %v3356_v0 }
 0x1fd   : > { %v4897_v41 = vpop.f32.mrf.mxu0  ;;  %v6039_v54 = vpack.c.bf16 %v5123_v33, %v5122_v50  ;;  %v5026_v56 = vadd.f32 %v9505_v60, %v4987_v24  ;;  %v4985_v45 = vadd.f32 %v4884_v1, %v4487_v7  ;;  %v4492_v10 = vadd.f32 %v6703_v37, %v9430_v23 }
 0x1fe   : > { %v4399_v57 = vpop.f32.mrf.mxu1  ;;  %vm5055_vm0 = vcmp.ge.f32.partialorder %v5023_v38, 0.0  ;;  %v5094_v42 = vmul.f32 %v9515_v4, %v5023_v38  ;;  %v5128_v23 = vsel %vm5057_vm14, %v5025_v51, %v5096_v32  ;;  %v3741_v18 = vadd.f32 %v9447_v53, %v3354_v40 }
 0x1ff   : > { %v6752_v36 = vpop.f32.mrf.mxu0  ;;  %6107 = vst [vmem:[%s9538_s6 + $0x10] sm:$0xff] %v6039_v54   ;;  %vm5058_vm15 = vcmp.ge.f32.partialorder %v5026_v56, 0.0  ;;  %v5097_v46 = vmul.f32 %v9515_v4, %v5026_v56  ;;  %v4490_v20 = vadd.f32 %v4399_v57, %v9437_v9  ;;  %v5024_v44 = vadd.f32 %v9505_v60, %v4985_v45 }
 0x200   : > { %v4990_v63 = vadd.f32 %v6751_v17, %v4492_v10  ;;  %v6704_v22 = vpop.f32.mrf.mxu1  ;;  %v5126_v35 = vsel %vm5055_vm0, %v5023_v38, %v5094_v42  ;;  %v3360_v51 = vadd.f32 %v9463_v12, %v9356_v27  ;;  %v3358_v7 = vadd.f32 %v9467_v3, %v9359_v43 }
 0x201   : > { %v4900_v13 = vpop.f32.mrf.mxu0  ;;  %v5129_v58 = vsel %vm5058_vm15, %v5026_v56, %v5097_v46  ;;  %v4988_v39 = vadd.f32 %v4897_v41, %v4490_v20  ;;  %v4493_v28 = vadd.f32 %v6704_v22, %v3739_v16  ;;  %vm5056_vm1 = vcmp.ge.f32.partialorder %v5024_v44, 0.0  ;;  %v9847_v20 = vld [vmem:[#allocation15_spill] sm:$0xff] }
 0x202   : > { %v6054_v5 = vpack.c.bf16 %v5129_v58, %v5128_v23  ;;  %v5095_v48 = vmul.f32 %v9515_v4, %v5024_v44  ;;  %v5029_v9 = vadd.f32 %v9505_v60, %v4990_v63  ;;  %v4402_v26 = vpop.f32.mrf.mxu1  ;;  %v3747_v45 = vadd.f32 %v9456_v6, %v3360_v51  ;;  %v9848_v23 = vld [vmem:[#allocation3_spill] sm:$0xff] }
 0x203   : > { %v4991_v29 = vadd.f32 %v6752_v36, %v4493_v28  ;;  %v4491_v1 = vadd.f32 %v4402_v26, %v3737_v62  ;;  %v5027_v25 = vadd.f32 %v9505_v60, %v4988_v39  ;;  %v3364_v58 = vadd.f32 %v9477_v19, %v9848_v23  ;;  %v9849_v39 = vld [vmem:[#allocation13_spill] sm:$0xff]  ;;  %v9856_v23 = vld [vmem:[#allocation18_spill] sm:$0xff] }
 0x204   : > { %v6755_v11 = vpop.f32.mrf.mxu0  ;;  %6110 = vst [vmem:[%s9538_s6 + $0x28] sm:$0xff] %v6054_v5   ;;  %v5127_v49 = vsel %vm5056_vm1, %v5024_v44, %v5095_v48  ;;  %v6707_v61 = vpop.f32.mrf.mxu1  ;;  %v5100_v17 = vmul.f32 %v9515_v4, %v5029_v9  ;;  %vm5061_vm2 = vcmp.ge.f32.partialorder %v5029_v9, 0.0  ;;  %v9850_v5 = vld [vmem:[#allocation7_spill] sm:$0xff]  ;;  %v9851_v26 = vld [vmem:[#allocation17_spill] sm:$0xff] }
 0x205   : > { %v6049_v47 = vpack.c.bf16 %v5127_v49, %v5126_v35  ;;  %v5030_v30 = vadd.f32 %v9505_v60, %v4991_v29  ;;  %v4989_v15 = vadd.f32 %v4900_v13, %v4491_v1  ;;  %v4496_v34 = vadd.f32 %v6707_v61, %v9444_v21 }
 0x206   : > { %v4913_v52 = vpop.f32.mrf.mxu0  ;;  %v4415_v24 = vpop.f32.mrf.mxu1  ;;  %vm5059_vm4 = vcmp.ge.f32.partialorder %v5027_v25, 0.0  ;;  %v5098_v50 = vmul.f32 %v9515_v4, %v5027_v25  ;;  %v5132_v21 = vsel %vm5061_vm2, %v5029_v9, %v5100_v17  ;;  %v3745_v13 = vadd.f32 %v9847_v20, %v3358_v7 }
 0x207   : > { %6109 = vst [vmem:[%s9538_s6 + $0x20] sm:$0xff] %v6049_v47   ;;  %vm5062_vm3 = vcmp.ge.f32.partialorder %v5030_v30, 0.0  ;;  %v5101_v53 = vmul.f32 %v9515_v4, %v5030_v30  ;;  %v4494_v41 = vadd.f32 %v4415_v24, %v9451_v59  ;;  %v5028_v27 = vadd.f32 %v9505_v60, %v4989_v15 }
 0x208   : > { %v6756_v14 = vpop.f32.mrf.mxu0  ;;  %v4994_v12 = vadd.f32 %v6755_v11, %v4496_v34  ;;  %v6708_v33 = vpop.f32.mrf.mxu1  ;;  %v5130_v10 = vsel %vm5059_vm4, %v5027_v25, %v5098_v50  ;;  %v3362_v48 = vadd.f32 %v9481_v8, %v9850_v5 }
 0x209   : > { %v5133_v38 = vsel %vm5062_vm3, %v5030_v30, %v5101_v53  ;;  %v4992_v37 = vadd.f32 %v4913_v52, %v4494_v41  ;;  %v4497_v62 = vadd.f32 %v6708_v33, %v3743_v2  ;;  %vm5060_vm5 = vcmp.ge.f32.partialorder %v5028_v27, 0.0 }
 0x20a   : > { %v4916_v16 = vpop.f32.mrf.mxu0  ;;  %v6064_v3 = vpack.c.bf16 %v5133_v38, %v5132_v21  ;;  %v5099_v54 = vmul.f32 %v9515_v4, %v5028_v27  ;;  %v5033_v59 = vadd.f32 %v9505_v60, %v4994_v12  ;;  %v4418_v32 = vpop.f32.mrf.mxu1  ;;  %v3749_v38 = vadd.f32 %v9475_v55, %v3362_v48 }
 0x20b   : > { %v4995_v56 = vadd.f32 %v6756_v14, %v4497_v62  ;;  %v4495_v36 = vadd.f32 %v4418_v32, %v3741_v18  ;;  %v5031_v40 = vadd.f32 %v9505_v60, %v4992_v37  ;;  %v9853_v62 = vld [vmem:[#allocation2_spill] sm:$0xff] }
 0x20c   : > { %v6759_v43 = vpop.f32.mrf.mxu0  ;;  %6112 = vst [vmem:[%s9538_s6 + $0x38] sm:$0xff] %v6064_v3   ;;  %v5131_v57 = vsel %vm5060_vm5, %v5028_v27, %v5099_v54  ;;  %v6711_v46 = vpop.f32.mrf.mxu1  ;;  %v5104_v44 = vmul.f32 %v9515_v4, %v5033_v59  ;;  %vm5065_vm6 = vcmp.ge.f32.partialorder %v5033_v59, 0.0  ;;  %v9854_v54 = vld [vmem:[#allocation9_spill] sm:$0xff] }
 0x20d   : > { %v6059_v42 = vpack.c.bf16 %v5131_v57, %v5130_v10  ;;  %v5034_v63 = vadd.f32 %v9505_v60, %v4995_v56  ;;  %v4993_v6 = vadd.f32 %v4916_v16, %v4495_v36  ;;  %v4500_v28 = vadd.f32 %v6711_v46, %v9849_v39  ;;  %v9852_v16 = vld [vmem:[#allocation20_spill] sm:$0xff]  ;;  %v9855_v56 = vld [vmem:[#allocation5_spill] sm:$0xff] }
 0x20e   : > { %v4929_v0 = vpop.f32.mrf.mxu0  ;;  %v4431_v11 = vpop.f32.mrf.mxu1  ;;  %vm5063_vm8 = vcmp.ge.f32.partialorder %v5031_v40, 0.0  ;;  %v5102_v52 = vmul.f32 %v9515_v4, %v5031_v40  ;;  %v5136_v49 = vsel %vm5065_vm6, %v5033_v59, %v5104_v44  ;;  %v3751_v50 = vadd.f32 %v9852_v16, %v3364_v58  ;;  %v9857_v58 = vld [vmem:[#allocation11_spill] sm:$0xff] }
 0x20f   : > { %6111 = vst [vmem:[%s9538_s6 + $0x30] sm:$0xff] %v6059_v42   ;;  %vm5066_vm7 = vcmp.ge.f32.partialorder %v5034_v63, 0.0  ;;  %v5105_v9 = vmul.f32 %v9515_v4, %v5034_v63  ;;  %v4498_v29 = vadd.f32 %v4431_v11, %v9851_v26  ;;  %v5032_v19 = vadd.f32 %v9505_v60, %v4993_v6 }
 0x210   : > { %v6760_v22 = vpop.f32.mrf.mxu0  ;;  %v4998_v2 = vadd.f32 %v6759_v43, %v4500_v28  ;;  %v6712_v35 = vpop.f32.mrf.mxu1  ;;  %v5134_v24 = vsel %vm5063_vm8, %v5031_v40, %v5102_v52  ;;  %v3368_v59 = vadd.f32 %v9491_v31, %v9854_v54  ;;  %v3366_v6 = vadd.f32 %v9857_v58, %v9856_v23 }
 0x211   : > { %v5137_v25 = vsel %vm5066_vm7, %v5034_v63, %v5105_v9  ;;  %v4996_v61 = vadd.f32 %v4929_v0, %v4498_v29  ;;  %v4501_v18 = vadd.f32 %v6712_v35, %v3747_v45  ;;  %vm5064_vm9 = vcmp.ge.f32.partialorder %v5032_v19, 0.0 }
 0x212   : > { %v4932_v1 = vpop.f32.mrf.mxu0  ;;  %v6074_v47 = vpack.c.bf16 %v5137_v25, %v5136_v49  ;;  %v5103_v17 = vmul.f32 %v9515_v4, %v5032_v19  ;;  %v5037_v30 = vadd.f32 %v9505_v60, %v4998_v2  ;;  %v4434_v14 = vpop.f32.mrf.mxu1  ;;  %v9859_v49 = vld [vmem:[#allocation6_spill] sm:$0xff] }
 0x213   : > { %v4999_v51 = vadd.f32 %v6760_v22, %v4501_v18  ;;  %v4499_v15 = vadd.f32 %v4434_v14, %v3745_v13  ;;  %v5035_v53 = vadd.f32 %v9505_v60, %v4996_v61  ;;  %v9860_v18 = vld [vmem:[#allocation8_spill] sm:$0xff] }
 0x214   : > { %v6763_v8 = vpop.f32.mrf.mxu0  ;;  %6114 = vst [vmem:[%s9538_s6 + $0x48] sm:$0xff] %v6074_v47   ;;  %v5135_v7 = vsel %vm5064_vm9, %v5032_v19, %v5103_v17  ;;  %v6715_v41 = vpop.f32.mrf.mxu1  ;;  %v5108_v12 = vmul.f32 %v9515_v4, %v5037_v30  ;;  %vm5069_vm10 = vcmp.ge.f32.partialorder %v5037_v30, 0.0  ;;  %v9858_v19 = vld [vmem:[#allocation4_spill] sm:$0xff]  ;;  %v9861_v17 = vld [vmem:[#allocation10_spill] sm:$0xff] }
 0x215   : > { %v6069_v27 = vpack.c.bf16 %v5135_v7, %v5134_v24  ;;  %v5038_v33 = vadd.f32 %v9505_v60, %v4999_v51  ;;  %v4997_v37 = vadd.f32 %v4932_v1, %v4499_v15  ;;  %v4504_v43 = vadd.f32 %v6715_v41, %v9853_v62 }
 0x216   : > { %v4945_v34 = vpop.f32.mrf.mxu0  ;;  %v4447_v3 = vpop.f32.mrf.mxu1  ;;  %vm5067_vm12 = vcmp.ge.f32.partialorder %v5035_v53, 0.0  ;;  %v5106_v45 = vmul.f32 %v9515_v4, %v5035_v53  ;;  %v5140_v40 = vsel %vm5069_vm10, %v5037_v30, %v5108_v12  ;;  %v3755_v2 = vadd.f32 %v9858_v19, %v3368_v59 }
 0x217   : > { %6113 = vst [vmem:[%s9538_s6 + $0x40] sm:$0xff] %v6069_v27   ;;  %vm5070_vm11 = vcmp.ge.f32.partialorder %v5038_v33, 0.0  ;;  %v5109_v32 = vmul.f32 %v9515_v4, %v5038_v33  ;;  %v4502_v36 = vadd.f32 %v4447_v3, %v9855_v56  ;;  %v5036_v55 = vadd.f32 %v9505_v60, %v4997_v37 }
 0x218   : > { %v6764_v21 = vpop.f32.mrf.mxu0  ;;  %v5002_v10 = vadd.f32 %v6763_v8, %v4504_v43  ;;  %v6716_v57 = vpop.f32.mrf.mxu1  ;;  %v5138_v11 = vsel %vm5067_vm12, %v5035_v53, %v5106_v45  ;;  %v3753_v8 = vadd.f32 %v9860_v18, %v3366_v6 }
 0x219   : > { %v5141_v46 = vsel %vm5070_vm11, %v5038_v33, %v5109_v32  ;;  %v5000_v20 = vadd.f32 %v4945_v34, %v4502_v36  ;;  %v4505_v13 = vadd.f32 %v6716_v57, %v3751_v50  ;;  %vm5068_vm13 = vcmp.ge.f32.partialorder %v5036_v55, 0.0 }
 0x21a   : > { %v4948_v0 = vpop.f32.mrf.mxu0  ;;  %v6084_v42 = vpack.c.bf16 %v5141_v46, %v5140_v40  ;;  %v5107_v44 = vmul.f32 %v9515_v4, %v5036_v55  ;;  %v5041_v63 = vadd.f32 %v9505_v60, %v5002_v10  ;;  %v4450_v22 = vpop.f32.mrf.mxu1 }
 0x21b   : > { %v5003_v39 = vadd.f32 %v6764_v21, %v4505_v13  ;;  %v4503_v28 = vadd.f32 %v4450_v22, %v3749_v38  ;;  %v5039_v48 = vadd.f32 %v9505_v60, %v5000_v20 }
 0x21c   : > { %v6767_v31 = vpop.f32.mrf.mxu0  ;;  %6116 = vst [vmem:[%s9538_s6 + $0x58] sm:$0xff] %v6084_v42   ;;  %v5139_v5 = vsel %vm5068_vm13, %v5036_v55, %v5107_v44  ;;  %v6719_v9 = vpop.f32.mrf.mxu1  ;;  %v5112_v29 = vmul.f32 %v9515_v4, %v5041_v63  ;;  %vm5073_vm14 = vcmp.ge.f32.partialorder %v5041_v63, 0.0 }
 0x21d   : > { %v6079_v26 = vpack.c.bf16 %v5139_v5, %v5138_v11  ;;  %v5042_v1 = vadd.f32 %v9505_v60, %v5003_v39  ;;  %v5001_v35 = vadd.f32 %v4948_v0, %v4503_v28  ;;  %v4508_v25 = vadd.f32 %v6719_v9, %v9859_v49 }
 0x21e   : > { %v4961_v52 = vpop.f32.mrf.mxu0  ;;  %v4463_v61 = vpop.f32.mrf.mxu1  ;;  %vm5071_vm0 = vcmp.ge.f32.partialorder %v5039_v48, 0.0  ;;  %v5110_v14 = vmul.f32 %v9515_v4, %v5039_v48  ;;  %v5144_v24 = vsel %vm5073_vm14, %v5041_v63, %v5112_v29 }
 0x21f   : > { %6115 = vst [vmem:[%s9538_s6 + $0x50] sm:$0xff] %v6079_v26   ;;  %vm5074_vm15 = vcmp.ge.f32.partialorder %v5042_v1, 0.0  ;;  %v5113_v47 = vmul.f32 %v9515_v4, %v5042_v1  ;;  %v4506_v30 = vadd.f32 %v4463_v61, %v9861_v17  ;;  %v5040_v51 = vadd.f32 %v9505_v60, %v5001_v35 }
 0x220   : > { %v5006_v15 = vadd.f32 %v6767_v31, %v4508_v25  ;;  %v6720_v34 = vpop.f32.mrf.mxu1  ;;  %v6768_v16 = vpop.f32.mrf.mxu0  ;;  %v5142_v37 = vsel %vm5071_vm0, %v5039_v48, %v5110_v14 }
 0x221   : > { %v5145_v7 = vsel %vm5074_vm15, %v5042_v1, %v5113_v47  ;;  %v5004_v53 = vadd.f32 %v4961_v52, %v4506_v30  ;;  %v4509_v41 = vadd.f32 %v6720_v34, %v3755_v2  ;;  %vm5072_vm1 = vcmp.ge.f32.partialorder %v5040_v51, 0.0 }
 0x222   : > { %v6094_v50 = vpack.c.bf16 %v5145_v7, %v5144_v24  ;;  %v5111_v27 = vmul.f32 %v9515_v4, %v5040_v51  ;;  %v5045_v12 = vadd.f32 %v9505_v60, %v5006_v15  ;;  %v4466_v33 = vpop.f32.mrf.mxu1  ;;  %v4964_v32 = vpop.f32.mrf.mxu0 }
 0x223   : > { %v5007_v21 = vadd.f32 %v6768_v16, %v4509_v41  ;;  %v4507_v38 = vadd.f32 %v4466_v33, %v3753_v8  ;;  %v5043_v43 = vadd.f32 %v9505_v60, %v5004_v53 }
 0x224   : > { %6118 = vst [vmem:[%s9538_s6 + $0x68] sm:$0xff] %v6094_v50   ;;  %v5143_v62 = vsel %vm5072_vm1, %v5040_v51, %v5111_v27  ;;  %v5116_v54 = vmul.f32 %v9515_v4, %v5045_v12  ;;  %vm5077_vm2 = vcmp.ge.f32.partialorder %v5045_v12, 0.0 }
 0x225   : > { %v6089_v3 = vpack.c.bf16 %v5143_v62, %v5142_v37  ;;  %v5046_v59 = vadd.f32 %v9505_v60, %v5007_v21  ;;  %v5005_v56 = vadd.f32 %v4964_v32, %v4507_v38  ;;  %v5114_v0 = vmul.f32 %v9515_v4, %v5043_v43 }
 0x226   : > { %v5148_v55 = vsel %vm5077_vm2, %v5045_v12, %v5116_v54  ;;  %vm5075_vm4 = vcmp.ge.f32.partialorder %v5043_v43, 0.0 }
 0x227   : > { %6117 = vst [vmem:[%s9538_s6 + $0x60] sm:$0xff] %v6089_v3   ;;  %vm5078_vm3 = vcmp.ge.f32.partialorder %v5046_v59, 0.0  ;;  %v5117_v36 = vmul.f32 %v9515_v4, %v5046_v59  ;;  %v5044_v45 = vadd.f32 %v9505_v60, %v5005_v56  ;;  %v5146_v46 = vsel %vm5075_vm4, %v5043_v43, %v5114_v0 }
 0x229   : > { %v5149_v10 = vsel %vm5078_vm3, %v5046_v59, %v5117_v36  ;;  %vm5076_vm5 = vcmp.ge.f32.partialorder %v5044_v45, 0.0  ;;  %v5115_v40 = vmul.f32 %v9515_v4, %v5044_v45 }
 0x22a   : > { %v6104_v57 = vpack.c.bf16 %v5149_v10, %v5148_v55 }
 0x22b   : > { %v5147_v20 = vsel %vm5076_vm5, %v5044_v45, %v5115_v40 }
 0x22c   : > { %6120 = vst [vmem:[%s9538_s6 + $0x78] sm:$0xff] %v6104_v57   ;;  %v6099_v13 = vpack.c.bf16 %v5147_v20, %v5146_v46 }
 0x22e   : > { %6119 = vst [vmem:[%s9538_s6 + $0x70] sm:$0xff] %v6099_v13  }
 0x22f PF: > { %s14_s15 = sadd.s32 1, %s6929_s15  }
 0x230   : > { %p11_p4 = scmp.ge.s32.totalorder %s14_s15, 4  }
 0x232   :  { %13 = sbr.rel (!%p11_p4) target bundleno = 1 (0x1), region = 76 }

</bundles_post_ra>
